<compile_context>
chip_gen: v5e
topology: v5e:2x2
jax: 0.10.0
libtpu: 0.0.40
codegen_flags: <defaults>
</compile_context>

<pallas_src>
import jax
import jax.numpy as jnp
from jax import lax
from jax.experimental import pallas as pl
from jax.experimental.pallas import tpu as pltpu


def bilstm_kernel(x_ref, wih_ref, whh_ref, b_ref, h0_ref, c0_ref,
                  out_ref, hn_ref, cn_ref, gx_ref, hseq_ref):
    """Fused bidirectional single-layer LSTM.

    x_ref   : (T*B, 2I)  time-major rows (row = t*B + b); cols [0:I] hold x[t],
                         cols [I:2I] hold x[T-1-t] (pre-blended host-side)
    wih_ref : (2I, 8H)   input->gate weights; rows [0:I] feed forward gate
                         columns only, rows [I:2I] feed backward gate columns
                         only, so the projection is already direction-blended
    whh_ref : (2H, 8H)   hidden->gate weights, block-diagonal over directions
    b_ref   : (1, 8H)    summed bias (b_ih + b_hh)
    h0/c0   : (2, B, H)  initial hidden / cell state per direction
    out_ref : (T, B, 2H) fused output [h_fwd | h_bwd] per timestep
    hn/cn   : (2, B, H)  final hidden / cell state per direction
    gx_ref  : (T*B, 8H)  VMEM scratch: blended input projection + bias
    hseq_ref: (T, B, 2H) VMEM scratch: per-step packed hidden [h_fwd | h_bwd]

    Gate column layout (each block H wide; sigmoid gates first, tanh gate last):
        [i_f | i_b | f_f | f_b | o_f | o_b | g_f | g_b]
    so every activation slice below is a multiple of 2H = 128 lanes.
    """
    T, B, H2 = out_ref.shape
    H = H2 // 2
    G = 8 * H
    S6 = 6 * H
    TB, I2 = x_ref.shape

    # --- input projection as VPU rank-1 broadcast FMAs (I2 = 2*input_size is
    #     static and tiny). Result is already direction-blended.
    acc = b_ref[...] + x_ref[:, 0:1] * wih_ref[0:1, :]
    for k in range(1, I2):
        acc = acc + x_ref[:, k:k + 1] * wih_ref[k:k + 1, :]
    gx_ref[...] = acc

    # packed state: lanes [0:H] = forward dir, [H:2H] = backward dir
    h = jnp.concatenate([h0_ref[0], h0_ref[1]], axis=-1)  # (B, 2H)
    c = jnp.concatenate([c0_ref[0], c0_ref[1]], axis=-1)  # (B, 2H)

    # --- fused, fully-unrolled recurrence (T is static and small).
    # W_hh is deliberately NOT hoisted into a value: each dot reads whh_ref[...]
    # so the (2H, 8H) RHS is streamed from VMEM rather than pinned as 64 live vregs.
    for t in range(T):
        gates = gx_ref[pl.ds(t * B, B)] + jnp.dot(
            h, whh_ref[...], preferred_element_type=jnp.float32)
        sg = jax.nn.sigmoid(gates[:, 0:S6])      # i|f|o : one 6H-wide sigmoid
        g = jnp.tanh(gates[:, S6:G])             # g     : one 2H-wide tanh
        i = sg[:, 0:2 * H]
        f = sg[:, 2 * H:4 * H]
        o = sg[:, 4 * H:6 * H]
        c = f * c + i * g
        h = o * jnp.tanh(c)
        hseq_ref[t] = h                          # one unmasked 128-lane store

    hn_ref[0] = h[:, 0:H]
    hn_ref[1] = h[:, H:2 * H]
    cn_ref[0] = c[:, 0:H]
    cn_ref[1] = c[:, H:2 * H]

    # --- epilogue (off the serial critical path): forward half keeps time t,
    #     backward half gets un-reversed in time.
    lane = lax.broadcasted_iota(jnp.int32, (B, H2), 1)
    is_fwd_lane = lane < H
    for t in range(T):
        out_ref[t] = jnp.where(is_fwd_lane, hseq_ref[t], hseq_ref[T - 1 - t])


def rnn_decoder_forward(tgt, hidden, params):
    """Pallas-backed forward of the bidirectional LSTM inside RNNDecoderBase.

    tgt    : (T, B, I) float32
    hidden : (h0, c0), each (2, B, H) float32
    returns (output, (h_n, c_n)) with output (T, B, 2H).
    """
    h0, c0 = hidden
    T, B, I = tgt.shape
    H = h0.shape[-1]
    # Layout is tuned for 2H == 128 (gate slices = whole vregs); other sizes
    # would silently fall off the fast path.
    assert 2 * H == 128, "kernel layout assumes 2*H == 128 lanes"

    # Pre-blend input rows host-side: forward gate columns will consume x[t],
    # backward gate columns will consume x[T-1-t] (pure layout plumbing).
    x_comb = jnp.concatenate(
        [tgt.reshape(T * B, I), tgt[::-1].reshape(T * B, I)], axis=-1)

    vmem = pl.BlockSpec(memory_space=pltpu.MemorySpace.VMEM)

    w_ih, w_hh, b = params["w_ih"], params["w_hh"], params["b"]
    flops = 2 * T * B * (2 * H) * (8 * H) + 2 * T * B * (2 * I) * (8 * H)
    transcendentals = T * B * 10 * H
    bytes_accessed = 4 * (x_comb.size + w_ih.size + w_hh.size + b.size
                          + h0.size + c0.size
                          + T * B * 2 * H + 2 * 2 * B * H)

    out, h_n, c_n = pl.pallas_call(
        bilstm_kernel,
        out_shape=(
            jax.ShapeDtypeStruct((T, B, 2 * H), jnp.float32),
            jax.ShapeDtypeStruct((2, B, H), jnp.float32),
            jax.ShapeDtypeStruct((2, B, H), jnp.float32),
        ),
        in_specs=[vmem] * 6,
        out_specs=(vmem, vmem, vmem),
        scratch_shapes=[
            pltpu.VMEM((T * B, 8 * H), jnp.float32),   # blended input projection
            pltpu.VMEM((T, B, 2 * H), jnp.float32),    # per-step packed hidden
        ],
        cost_estimate=pl.CostEstimate(flops=flops,
                                      transcendentals=transcendentals,
                                      bytes_accessed=bytes_accessed),
    )(x_comb, w_ih, w_hh, b, h0, c0)

    return out, (h_n, c_n)


def make_params(key, input_size, hidden_dir):
    """Deterministic LSTM params (PyTorch-style uniform(-1/sqrt(H), 1/sqrt(H)))
    plus the interleaved / block-structured matrices used by the kernel."""
    H = hidden_dir
    bound = 1.0 / (H ** 0.5)
    ks = jax.random.split(key, 4)
    # PyTorch shapes: weight_ih (4H, I), weight_hh (4H, H), bias (4H,) per direction,
    # gate order [i | f | g | o].
    w_ih = jax.random.uniform(ks[0], (2, 4 * H, input_size), jnp.float32, -bound, bound)
    w_hh = jax.random.uniform(ks[1], (2, 4 * H, H), jnp.float32, -bound, bound)
    b_ih = jax.random.uniform(ks[2], (2, 4 * H), jnp.float32, -bound, bound)
    b_hh = jax.random.uniform(ks[3], (2, 4 * H), jnp.float32, -bound, bound)

    def interleave(fw, bw):
        # (..., 4H) per direction with [i|f|g|o]  ->  (..., 8H) with
        # [i_f|i_b|f_f|f_b|o_f|o_b|g_f|g_b]: sigmoid gates grouped first so the
        # kernel applies one sigmoid over 6H lanes and one tanh over 2H lanes.
        blocks = []
        for g in (0, 1, 3, 2):          # i, f, o, g (PyTorch indices)
            blocks.append(fw[..., g * H:(g + 1) * H])
            blocks.append(bw[..., g * H:(g + 1) * H])
        return jnp.concatenate(blocks, axis=-1)

    wih_f_t, wih_b_t = w_ih[0].T, w_ih[1].T      # (I, 4H)
    whh_f_t, whh_b_t = w_hh[0].T, w_hh[1].T      # (H, 4H)

    # (2I, 8H): rows [0:I] feed forward gate columns, rows [I:2I] backward ones,
    # so a pre-blended x row yields the blended gate projection directly.
    w_ih_comb = jnp.concatenate(
        [interleave(wih_f_t, jnp.zeros_like(wih_b_t)),
         interleave(jnp.zeros_like(wih_f_t), wih_b_t)], axis=0)
    # (2H, 8H), block-diagonal over directions.
    w_hh_comb = jnp.concatenate(
        [interleave(whh_f_t, jnp.zeros_like(whh_b_t)),
         interleave(jnp.zeros_like(whh_f_t), whh_b_t)], axis=0)
    b_f = (b_ih[0] + b_hh[0])[None, :]
    b_b = (b_ih[1] + b_hh[1])[None, :]
    b_comb = interleave(b_f, b_b)                # (1, 8H)

    return {
        "w_ih": w_ih_comb,
        "w_hh": w_hh_comb,
        "b": b_comb,
        "_raw": (w_ih, w_hh, b_ih, b_hh),
    }


def reference_bilstm(tgt, hidden, params):
    """Pure-JAX reference (PyTorch nn.LSTM semantics) for validation."""
    (w_ih, w_hh, b_ih, b_hh) = params["_raw"]
    h0, c0 = hidden
    H = h0.shape[-1]

    def cell(d, x_t, h, c):
        gates = x_t @ w_ih[d].T + b_ih[d] + h @ w_hh[d].T + b_hh[d]
        i = jax.nn.sigmoid(gates[:, 0:H])
        f = jax.nn.sigmoid(gates[:, H:2 * H])
        g = jnp.tanh(gates[:, 2 * H:3 * H])
        o = jax.nn.sigmoid(gates[:, 3 * H:4 * H])
        c = f * c + i * g
        h = o * jnp.tanh(c)
        return h, c

    def scan_dir(d, xs):
        def step(carry, x_t):
            h, c = carry
            h, c = cell(d, x_t, h, c)
            return (h, c), h
        (hT, cT), hs = lax.scan(step, (h0[d], c0[d]), xs)
        return hs, hT, cT

    hs_f, hT_f, cT_f = scan_dir(0, tgt)
    hs_b_rev, hT_b, cT_b = scan_dir(1, tgt[::-1])
    hs_b = hs_b_rev[::-1]
    out = jnp.concatenate([hs_f, hs_b], axis=-1)
    return out, (jnp.stack([hT_f, hT_b]), jnp.stack([cT_f, cT_b]))


if __name__ == "__main__":
    # Module config: rnn_type="LSTM", bidirectional=True, num_layers=1,
    # input_size=2, hidden_size=128 -> per-direction H = 64.
    T, B, I, H = 8, 2, 2, 64

    key = jax.random.PRNGKey(0)
    k_p, k_x, k_h, k_c = jax.random.split(key, 4)

    params = make_params(k_p, I, H)
    tgt = jax.random.normal(k_x, (T, B, I), jnp.float32)
    h0 = jax.random.normal(k_h, (2, B, H), jnp.float32)
    c0 = jax.random.normal(k_c, (2, B, H), jnp.float32)

    out, (h_n, c_n) = rnn_decoder_forward(tgt, (h0, c0), params)
    jax.block_until_ready(out)

    out_ref, (h_ref, c_ref) = reference_bilstm(tgt, (h0, c0), params)
    assert out.shape == (T, B, 2 * H)
    assert h_n.shape == (2, B, H) and c_n.shape == (2, B, H)
    assert jnp.allclose(out, out_ref, atol=1e-5, rtol=1e-5)
    assert jnp.allclose(h_n, h_ref, atol=1e-5, rtol=1e-5)
    assert jnp.allclose(c_n, c_ref, atol=1e-5, rtol=1e-5)

    print("KERNEL_OK")
</pallas_src>

<mosaic_0001>
module attributes {stable_mosaic.version = 11 : i64} {
  func.func @bilstm_kernel(%arg0: memref<16x4xf32, #tpu.memory_space<vmem>>, %arg1: memref<4x512xf32, #tpu.memory_space<vmem>>, %arg2: memref<128x512xf32, #tpu.memory_space<vmem>>, %arg3: memref<1x512xf32, #tpu.memory_space<vmem>>, %arg4: memref<2x2x64xf32, #tpu.memory_space<vmem>>, %arg5: memref<2x2x64xf32, #tpu.memory_space<vmem>>, %arg6: memref<8x2x128xf32, #tpu.memory_space<vmem>>, %arg7: memref<2x2x64xf32, #tpu.memory_space<vmem>>, %arg8: memref<2x2x64xf32, #tpu.memory_space<vmem>>, %arg9: memref<16x512xf32, #tpu.memory_space<vmem>>, %arg10: memref<8x2x128xf32, #tpu.memory_space<vmem>>) attributes {dimension_semantics = [], scalar_prefetch = 0 : i64, scratch_operands = 2 : i64, tpu.core_type = #tpu.core_type<tc>} {
    %c0 = arith.constant 0 : index
    %c0_0 = arith.constant 0 : index
    %0 = vector.load %arg3[%c0, %c0_0] : memref<1x512xf32, #tpu.memory_space<vmem>>, vector<1x512xf32>
    %c0_1 = arith.constant 0 : index
    %c0_2 = arith.constant 0 : index
    %1 = vector.load %arg0[%c0_1, %c0_2] : memref<16x4xf32, #tpu.memory_space<vmem>>, vector<16x1xf32>
    %c0_3 = arith.constant 0 : index
    %c0_4 = arith.constant 0 : index
    %2 = vector.load %arg1[%c0_3, %c0_4] : memref<4x512xf32, #tpu.memory_space<vmem>>, vector<1x512xf32>
    %3 = vector.broadcast %1 : vector<16x1xf32> to vector<16x512xf32>
    %4 = vector.broadcast %2 : vector<1x512xf32> to vector<16x512xf32>
    %5 = arith.mulf %3, %4 : vector<16x512xf32>
    %6 = vector.broadcast %0 : vector<1x512xf32> to vector<16x512xf32>
    %7 = arith.addf %6, %5 : vector<16x512xf32>
    %c0_5 = arith.constant 0 : index
    %c1 = arith.constant 1 : index
    %8 = vector.load %arg0[%c0_5, %c1] : memref<16x4xf32, #tpu.memory_space<vmem>>, vector<16x1xf32>
    %c1_6 = arith.constant 1 : index
    %c0_7 = arith.constant 0 : index
    %9 = vector.load %arg1[%c1_6, %c0_7] : memref<4x512xf32, #tpu.memory_space<vmem>>, vector<1x512xf32>
    %10 = vector.broadcast %8 : vector<16x1xf32> to vector<16x512xf32>
    %11 = vector.broadcast %9 : vector<1x512xf32> to vector<16x512xf32>
    %12 = arith.mulf %10, %11 : vector<16x512xf32>
    %13 = arith.addf %7, %12 : vector<16x512xf32>
    %c0_8 = arith.constant 0 : index
    %c2 = arith.constant 2 : index
    %14 = vector.load %arg0[%c0_8, %c2] : memref<16x4xf32, #tpu.memory_space<vmem>>, vector<16x1xf32>
    %c2_9 = arith.constant 2 : index
    %c0_10 = arith.constant 0 : index
    %15 = vector.load %arg1[%c2_9, %c0_10] : memref<4x512xf32, #tpu.memory_space<vmem>>, vector<1x512xf32>
    %16 = vector.broadcast %14 : vector<16x1xf32> to vector<16x512xf32>
    %17 = vector.broadcast %15 : vector<1x512xf32> to vector<16x512xf32>
    %18 = arith.mulf %16, %17 : vector<16x512xf32>
    %19 = arith.addf %13, %18 : vector<16x512xf32>
    %c0_11 = arith.constant 0 : index
    %c3 = arith.constant 3 : index
    %20 = vector.load %arg0[%c0_11, %c3] : memref<16x4xf32, #tpu.memory_space<vmem>>, vector<16x1xf32>
    %c3_12 = arith.constant 3 : index
    %c0_13 = arith.constant 0 : index
    %21 = vector.load %arg1[%c3_12, %c0_13] : memref<4x512xf32, #tpu.memory_space<vmem>>, vector<1x512xf32>
    %22 = vector.broadcast %20 : vector<16x1xf32> to vector<16x512xf32>
    %23 = vector.broadcast %21 : vector<1x512xf32> to vector<16x512xf32>
    %24 = arith.mulf %22, %23 : vector<16x512xf32>
    %25 = arith.addf %19, %24 : vector<16x512xf32>
    %c0_14 = arith.constant 0 : index
    %c0_15 = arith.constant 0 : index
    %26 = vector.load %arg9[%c0_14, %c0_15] : memref<16x512xf32, #tpu.memory_space<vmem>>, vector<16x512xf32>
    tpu.vector_store %arg9[%c0_14, %c0_15], %25 {strides = array<i32>} : memref<16x512xf32, #tpu.memory_space<vmem>>, vector<16x512xf32>,
    %c0_16 = arith.constant 0 : index
    %c0_17 = arith.constant 0 : index
    %c0_18 = arith.constant 0 : index
    %27 = vector.load %arg4[%c0_16, %c0_17, %c0_18] : memref<2x2x64xf32, #tpu.memory_space<vmem>>, vector<1x2x64xf32>
    %28 = vector.shape_cast %27 : vector<1x2x64xf32> to vector<2x64xf32>
    %c1_19 = arith.constant 1 : index
    %c0_20 = arith.constant 0 : index
    %c0_21 = arith.constant 0 : index
    %29 = vector.load %arg4[%c1_19, %c0_20, %c0_21] : memref<2x2x64xf32, #tpu.memory_space<vmem>>, vector<1x2x64xf32>
    %30 = vector.shape_cast %29 : vector<1x2x64xf32> to vector<2x64xf32>
    %31 = tpu.concatenate %28, %30 in 1 : vector<2x64xf32>, vector<2x64xf32> -> vector<2x128xf32>
    %c0_22 = arith.constant 0 : index
    %c0_23 = arith.constant 0 : index
    %c0_24 = arith.constant 0 : index
    %32 = vector.load %arg5[%c0_22, %c0_23, %c0_24] : memref<2x2x64xf32, #tpu.memory_space<vmem>>, vector<1x2x64xf32>
    %33 = vector.shape_cast %32 : vector<1x2x64xf32> to vector<2x64xf32>
    %c1_25 = arith.constant 1 : index
    %c0_26 = arith.constant 0 : index
    %c0_27 = arith.constant 0 : index
    %34 = vector.load %arg5[%c1_25, %c0_26, %c0_27] : memref<2x2x64xf32, #tpu.memory_space<vmem>>, vector<1x2x64xf32>
    %35 = vector.shape_cast %34 : vector<1x2x64xf32> to vector<2x64xf32>
    %36 = tpu.concatenate %33, %35 in 1 : vector<2x64xf32>, vector<2x64xf32> -> vector<2x128xf32>
    %c0_28 = arith.constant 0 : index
    %c0_29 = arith.constant 0 : index
    %37 = vector.load %arg9[%c0_28, %c0_29] : memref<16x512xf32, #tpu.memory_space<vmem>>, vector<2x512xf32>
    %c0_30 = arith.constant 0 : index
    %c0_31 = arith.constant 0 : index
    %38 = vector.load %arg2[%c0_30, %c0_31] : memref<128x512xf32, #tpu.memory_space<vmem>>, vector<128x512xf32>
    %cst = arith.constant dense<0.000000e+00> : vector<2x512xf32>
    %39 = tpu.matmul %31, %38, %cst {dimension_numbers = #tpu.dot_dimension_numbers<[1], [0], [0], [1], [0, 0, 1, 1], [], []>} : vector<2x128xf32>, vector<128x512xf32>, vector<2x512xf32> -> vector<2x512xf32>
    %40 = arith.addf %37, %39 : vector<2x512xf32>
    %41 = vector.extract_strided_slice %40 {offsets = [0, 0], sizes = [2, 384], strides = [1, 1]} : vector<2x512xf32> to vector<2x384xf32>
    %42 = arith.negf %41 : vector<2x384xf32>
    %43 = math.exp %42 : vector<2x384xf32>
    %cst_32 = arith.constant 1.000000e+00 : f32
    %44 = vector.broadcast %cst_32 : f32 to vector<2x384xf32>
    %45 = arith.addf %44, %43 : vector<2x384xf32>
    %46 = arith.divf %44, %45 : vector<2x384xf32>
    %47 = vector.extract_strided_slice %40 {offsets = [0, 384], sizes = [2, 128], strides = [1, 1]} : vector<2x512xf32> to vector<2x128xf32>
    %48 = math.tanh %47 : vector<2x128xf32>
    %49 = vector.extract_strided_slice %46 {offsets = [0, 0], sizes = [2, 128], strides = [1, 1]} : vector<2x384xf32> to vector<2x128xf32>
    %50 = vector.extract_strided_slice %46 {offsets = [0, 128], sizes = [2, 128], strides = [1, 1]} : vector<2x384xf32> to vector<2x128xf32>
    %51 = vector.extract_strided_slice %46 {offsets = [0, 256], sizes = [2, 128], strides = [1, 1]} : vector<2x384xf32> to vector<2x128xf32>
    %52 = arith.mulf %50, %36 : vector<2x128xf32>
    %53 = arith.mulf %49, %48 : vector<2x128xf32>
    %54 = arith.addf %52, %53 : vector<2x128xf32>
    %55 = math.tanh %54 : vector<2x128xf32>
    %56 = arith.mulf %51, %55 : vector<2x128xf32>
    %c0_33 = arith.constant 0 : index
    %c0_34 = arith.constant 0 : index
    %c0_35 = arith.constant 0 : index
    %57 = vector.load %arg10[%c0_33, %c0_34, %c0_35] : memref<8x2x128xf32, #tpu.memory_space<vmem>>, vector<1x2x128xf32>
    %58 = vector.shape_cast %57 : vector<1x2x128xf32> to vector<2x128xf32>
    %59 = vector.shape_cast %56 : vector<2x128xf32> to vector<1x2x128xf32>
    tpu.vector_store %arg10[%c0_33, %c0_34, %c0_35], %59 {strides = array<i32>} : memref<8x2x128xf32, #tpu.memory_space<vmem>>, vector<1x2x128xf32>,
    %c2_36 = arith.constant 2 : index
    %c0_37 = arith.constant 0 : index
    %60 = vector.load %arg9[%c2_36, %c0_37] : memref<16x512xf32, #tpu.memory_space<vmem>>, vector<2x512xf32>
    %c0_38 = arith.constant 0 : index
    %c0_39 = arith.constant 0 : index
    %61 = vector.load %arg2[%c0_38, %c0_39] : memref<128x512xf32, #tpu.memory_space<vmem>>, vector<128x512xf32>
    %cst_40 = arith.constant dense<0.000000e+00> : vector<2x512xf32>
    %62 = tpu.matmul %56, %61, %cst_40 {dimension_numbers = #tpu.dot_dimension_numbers<[1], [0], [0], [1], [0, 0, 1, 1], [], []>} : vector<2x128xf32>, vector<128x512xf32>, vector<2x512xf32> -> vector<2x512xf32>
    %63 = arith.addf %60, %62 : vector<2x512xf32>
    %64 = vector.extract_strided_slice %63 {offsets = [0, 0], sizes = [2, 384], strides = [1, 1]} : vector<2x512xf32> to vector<2x384xf32>
    %65 = arith.negf %64 : vector<2x384xf32>
    %66 = math.exp %65 : vector<2x384xf32>
    %cst_41 = arith.constant 1.000000e+00 : f32
    %67 = vector.broadcast %cst_41 : f32 to vector<2x384xf32>
    %68 = arith.addf %67, %66 : vector<2x384xf32>
    %69 = arith.divf %67, %68 : vector<2x384xf32>
    %70 = vector.extract_strided_slice %63 {offsets = [0, 384], sizes = [2, 128], strides = [1, 1]} : vector<2x512xf32> to vector<2x128xf32>
    %71 = math.tanh %70 : vector<2x128xf32>
    %72 = vector.extract_strided_slice %69 {offsets = [0, 0], sizes = [2, 128], strides = [1, 1]} : vector<2x384xf32> to vector<2x128xf32>
    %73 = vector.extract_strided_slice %69 {offsets = [0, 128], sizes = [2, 128], strides = [1, 1]} : vector<2x384xf32> to vector<2x128xf32>
    %74 = vector.extract_strided_slice %69 {offsets = [0, 256], sizes = [2, 128], strides = [1, 1]} : vector<2x384xf32> to vector<2x128xf32>
    %75 = arith.mulf %73, %54 : vector<2x128xf32>
    %76 = arith.mulf %72, %71 : vector<2x128xf32>
    %77 = arith.addf %75, %76 : vector<2x128xf32>
    %78 = math.tanh %77 : vector<2x128xf32>
    %79 = arith.mulf %74, %78 : vector<2x128xf32>
    %c1_42 = arith.constant 1 : index
    %c0_43 = arith.constant 0 : index
    %c0_44 = arith.constant 0 : index
    %80 = vector.load %arg10[%c1_42, %c0_43, %c0_44] : memref<8x2x128xf32, #tpu.memory_space<vmem>>, vector<1x2x128xf32>
    %81 = vector.shape_cast %80 : vector<1x2x128xf32> to vector<2x128xf32>
    %82 = vector.shape_cast %79 : vector<2x128xf32> to vector<1x2x128xf32>
    tpu.vector_store %arg10[%c1_42, %c0_43, %c0_44], %82 {strides = array<i32>} : memref<8x2x128xf32, #tpu.memory_space<vmem>>, vector<1x2x128xf32>,
    %c4 = arith.constant 4 : index
    %c0_45 = arith.constant 0 : index
    %83 = vector.load %arg9[%c4, %c0_45] : memref<16x512xf32, #tpu.memory_space<vmem>>, vector<2x512xf32>
    %c0_46 = arith.constant 0 : index
    %c0_47 = arith.constant 0 : index
    %84 = vector.load %arg2[%c0_46, %c0_47] : memref<128x512xf32, #tpu.memory_space<vmem>>, vector<128x512xf32>
    %cst_48 = arith.constant dense<0.000000e+00> : vector<2x512xf32>
    %85 = tpu.matmul %79, %84, %cst_48 {dimension_numbers = #tpu.dot_dimension_numbers<[1], [0], [0], [1], [0, 0, 1, 1], [], []>} : vector<2x128xf32>, vector<128x512xf32>, vector<2x512xf32> -> vector<2x512xf32>
    %86 = arith.addf %83, %85 : vector<2x512xf32>
    %87 = vector.extract_strided_slice %86 {offsets = [0, 0], sizes = [2, 384], strides = [1, 1]} : vector<2x512xf32> to vector<2x384xf32>
    %88 = arith.negf %87 : vector<2x384xf32>
    %89 = math.exp %88 : vector<2x384xf32>
    %cst_49 = arith.constant 1.000000e+00 : f32
    %90 = vector.broadcast %cst_49 : f32 to vector<2x384xf32>
    %91 = arith.addf %90, %89 : vector<2x384xf32>
    %92 = arith.divf %90, %91 : vector<2x384xf32>
    %93 = vector.extract_strided_slice %86 {offsets = [0, 384], sizes = [2, 128], strides = [1, 1]} : vector<2x512xf32> to vector<2x128xf32>
    %94 = math.tanh %93 : vector<2x128xf32>
    %95 = vector.extract_strided_slice %92 {offsets = [0, 0], sizes = [2, 128], strides = [1, 1]} : vector<2x384xf32> to vector<2x128xf32>
    %96 = vector.extract_strided_slice %92 {offsets = [0, 128], sizes = [2, 128], strides = [1, 1]} : vector<2x384xf32> to vector<2x128xf32>
    %97 = vector.extract_strided_slice %92 {offsets = [0, 256], sizes = [2, 128], strides = [1, 1]} : vector<2x384xf32> to vector<2x128xf32>
    %98 = arith.mulf %96, %77 : vector<2x128xf32>
    %99 = arith.mulf %95, %94 : vector<2x128xf32>
    %100 = arith.addf %98, %99 : vector<2x128xf32>
    %101 = math.tanh %100 : vector<2x128xf32>
    %102 = arith.mulf %97, %101 : vector<2x128xf32>
    %c2_50 = arith.constant 2 : index
    %c0_51 = arith.constant 0 : index
    %c0_52 = arith.constant 0 : index
    %103 = vector.load %arg10[%c2_50, %c0_51, %c0_52] : memref<8x2x128xf32, #tpu.memory_space<vmem>>, vector<1x2x128xf32>
    %104 = vector.shape_cast %103 : vector<1x2x128xf32> to vector<2x128xf32>
    %105 = vector.shape_cast %102 : vector<2x128xf32> to vector<1x2x128xf32>
    tpu.vector_store %arg10[%c2_50, %c0_51, %c0_52], %105 {strides = array<i32>} : memref<8x2x128xf32, #tpu.memory_space<vmem>>, vector<1x2x128xf32>,
    %c6 = arith.constant 6 : index
    %c0_53 = arith.constant 0 : index
    %106 = vector.load %arg9[%c6, %c0_53] : memref<16x512xf32, #tpu.memory_space<vmem>>, vector<2x512xf32>
    %c0_54 = arith.constant 0 : index
    %c0_55 = arith.constant 0 : index
    %107 = vector.load %arg2[%c0_54, %c0_55] : memref<128x512xf32, #tpu.memory_space<vmem>>, vector<128x512xf32>
    %cst_56 = arith.constant dense<0.000000e+00> : vector<2x512xf32>
    %108 = tpu.matmul %102, %107, %cst_56 {dimension_numbers = #tpu.dot_dimension_numbers<[1], [0], [0], [1], [0, 0, 1, 1], [], []>} : vector<2x128xf32>, vector<128x512xf32>, vector<2x512xf32> -> vector<2x512xf32>
    %109 = arith.addf %106, %108 : vector<2x512xf32>
    %110 = vector.extract_strided_slice %109 {offsets = [0, 0], sizes = [2, 384], strides = [1, 1]} : vector<2x512xf32> to vector<2x384xf32>
    %111 = arith.negf %110 : vector<2x384xf32>
    %112 = math.exp %111 : vector<2x384xf32>
    %cst_57 = arith.constant 1.000000e+00 : f32
    %113 = vector.broadcast %cst_57 : f32 to vector<2x384xf32>
    %114 = arith.addf %113, %112 : vector<2x384xf32>
    %115 = arith.divf %113, %114 : vector<2x384xf32>
    %116 = vector.extract_strided_slice %109 {offsets = [0, 384], sizes = [2, 128], strides = [1, 1]} : vector<2x512xf32> to vector<2x128xf32>
    %117 = math.tanh %116 : vector<2x128xf32>
    %118 = vector.extract_strided_slice %115 {offsets = [0, 0], sizes = [2, 128], strides = [1, 1]} : vector<2x384xf32> to vector<2x128xf32>
    %119 = vector.extract_strided_slice %115 {offsets = [0, 128], sizes = [2, 128], strides = [1, 1]} : vector<2x384xf32> to vector<2x128xf32>
    %120 = vector.extract_strided_slice %115 {offsets = [0, 256], sizes = [2, 128], strides = [1, 1]} : vector<2x384xf32> to vector<2x128xf32>
    %121 = arith.mulf %119, %100 : vector<2x128xf32>
    %122 = arith.mulf %118, %117 : vector<2x128xf32>
    %123 = arith.addf %121, %122 : vector<2x128xf32>
    %124 = math.tanh %123 : vector<2x128xf32>
    %125 = arith.mulf %120, %124 : vector<2x128xf32>
    %c3_58 = arith.constant 3 : index
    %c0_59 = arith.constant 0 : index
    %c0_60 = arith.constant 0 : index
    %126 = vector.load %arg10[%c3_58, %c0_59, %c0_60] : memref<8x2x128xf32, #tpu.memory_space<vmem>>, vector<1x2x128xf32>
    %127 = vector.shape_cast %126 : vector<1x2x128xf32> to vector<2x128xf32>
    %128 = vector.shape_cast %125 : vector<2x128xf32> to vector<1x2x128xf32>
    tpu.vector_store %arg10[%c3_58, %c0_59, %c0_60], %128 {strides = array<i32>} : memref<8x2x128xf32, #tpu.memory_space<vmem>>, vector<1x2x128xf32>,
    %c8 = arith.constant 8 : index
    %c0_61 = arith.constant 0 : index
    %129 = vector.load %arg9[%c8, %c0_61] : memref<16x512xf32, #tpu.memory_space<vmem>>, vector<2x512xf32>
    %c0_62 = arith.constant 0 : index
    %c0_63 = arith.constant 0 : index
    %130 = vector.load %arg2[%c0_62, %c0_63] : memref<128x512xf32, #tpu.memory_space<vmem>>, vector<128x512xf32>
    %cst_64 = arith.constant dense<0.000000e+00> : vector<2x512xf32>
    %131 = tpu.matmul %125, %130, %cst_64 {dimension_numbers = #tpu.dot_dimension_numbers<[1], [0], [0], [1], [0, 0, 1, 1], [], []>} : vector<2x128xf32>, vector<128x512xf32>, vector<2x512xf32> -> vector<2x512xf32>
    %132 = arith.addf %129, %131 : vector<2x512xf32>
    %133 = vector.extract_strided_slice %132 {offsets = [0, 0], sizes = [2, 384], strides = [1, 1]} : vector<2x512xf32> to vector<2x384xf32>
    %134 = arith.negf %133 : vector<2x384xf32>
    %135 = math.exp %134 : vector<2x384xf32>
    %cst_65 = arith.constant 1.000000e+00 : f32
    %136 = vector.broadcast %cst_65 : f32 to vector<2x384xf32>
    %137 = arith.addf %136, %135 : vector<2x384xf32>
    %138 = arith.divf %136, %137 : vector<2x384xf32>
    %139 = vector.extract_strided_slice %132 {offsets = [0, 384], sizes = [2, 128], strides = [1, 1]} : vector<2x512xf32> to vector<2x128xf32>
    %140 = math.tanh %139 : vector<2x128xf32>
    %141 = vector.extract_strided_slice %138 {offsets = [0, 0], sizes = [2, 128], strides = [1, 1]} : vector<2x384xf32> to vector<2x128xf32>
    %142 = vector.extract_strided_slice %138 {offsets = [0, 128], sizes = [2, 128], strides = [1, 1]} : vector<2x384xf32> to vector<2x128xf32>
    %143 = vector.extract_strided_slice %138 {offsets = [0, 256], sizes = [2, 128], strides = [1, 1]} : vector<2x384xf32> to vector<2x128xf32>
    %144 = arith.mulf %142, %123 : vector<2x128xf32>
    %145 = arith.mulf %141, %140 : vector<2x128xf32>
    %146 = arith.addf %144, %145 : vector<2x128xf32>
    %147 = math.tanh %146 : vector<2x128xf32>
    %148 = arith.mulf %143, %147 : vector<2x128xf32>
    %c4_66 = arith.constant 4 : index
    %c0_67 = arith.constant 0 : index
    %c0_68 = arith.constant 0 : index
    %149 = vector.load %arg10[%c4_66, %c0_67, %c0_68] : memref<8x2x128xf32, #tpu.memory_space<vmem>>, vector<1x2x128xf32>
    %150 = vector.shape_cast %149 : vector<1x2x128xf32> to vector<2x128xf32>
    %151 = vector.shape_cast %148 : vector<2x128xf32> to vector<1x2x128xf32>
    tpu.vector_store %arg10[%c4_66, %c0_67, %c0_68], %151 {strides = array<i32>} : memref<8x2x128xf32, #tpu.memory_space<vmem>>, vector<1x2x128xf32>,
    %c10 = arith.constant 10 : index
    %c0_69 = arith.constant 0 : index
    %152 = vector.load %arg9[%c10, %c0_69] : memref<16x512xf32, #tpu.memory_space<vmem>>, vector<2x512xf32>
    %c0_70 = arith.constant 0 : index
    %c0_71 = arith.constant 0 : index
    %153 = vector.load %arg2[%c0_70, %c0_71] : memref<128x512xf32, #tpu.memory_space<vmem>>, vector<128x512xf32>
    %cst_72 = arith.constant dense<0.000000e+00> : vector<2x512xf32>
    %154 = tpu.matmul %148, %153, %cst_72 {dimension_numbers = #tpu.dot_dimension_numbers<[1], [0], [0], [1], [0, 0, 1, 1], [], []>} : vector<2x128xf32>, vector<128x512xf32>, vector<2x512xf32> -> vector<2x512xf32>
    %155 = arith.addf %152, %154 : vector<2x512xf32>
    %156 = vector.extract_strided_slice %155 {offsets = [0, 0], sizes = [2, 384], strides = [1, 1]} : vector<2x512xf32> to vector<2x384xf32>
    %157 = arith.negf %156 : vector<2x384xf32>
    %158 = math.exp %157 : vector<2x384xf32>
    %cst_73 = arith.constant 1.000000e+00 : f32
    %159 = vector.broadcast %cst_73 : f32 to vector<2x384xf32>
    %160 = arith.addf %159, %158 : vector<2x384xf32>
    %161 = arith.divf %159, %160 : vector<2x384xf32>
    %162 = vector.extract_strided_slice %155 {offsets = [0, 384], sizes = [2, 128], strides = [1, 1]} : vector<2x512xf32> to vector<2x128xf32>
    %163 = math.tanh %162 : vector<2x128xf32>
    %164 = vector.extract_strided_slice %161 {offsets = [0, 0], sizes = [2, 128], strides = [1, 1]} : vector<2x384xf32> to vector<2x128xf32>
    %165 = vector.extract_strided_slice %161 {offsets = [0, 128], sizes = [2, 128], strides = [1, 1]} : vector<2x384xf32> to vector<2x128xf32>
    %166 = vector.extract_strided_slice %161 {offsets = [0, 256], sizes = [2, 128], strides = [1, 1]} : vector<2x384xf32> to vector<2x128xf32>
    %167 = arith.mulf %165, %146 : vector<2x128xf32>
    %168 = arith.mulf %164, %163 : vector<2x128xf32>
    %169 = arith.addf %167, %168 : vector<2x128xf32>
    %170 = math.tanh %169 : vector<2x128xf32>
    %171 = arith.mulf %166, %170 : vector<2x128xf32>
    %c5 = arith.constant 5 : index
    %c0_74 = arith.constant 0 : index
    %c0_75 = arith.constant 0 : index
    %172 = vector.load %arg10[%c5, %c0_74, %c0_75] : memref<8x2x128xf32, #tpu.memory_space<vmem>>, vector<1x2x128xf32>
    %173 = vector.shape_cast %172 : vector<1x2x128xf32> to vector<2x128xf32>
    %174 = vector.shape_cast %171 : vector<2x128xf32> to vector<1x2x128xf32>
    tpu.vector_store %arg10[%c5, %c0_74, %c0_75], %174 {strides = array<i32>} : memref<8x2x128xf32, #tpu.memory_space<vmem>>, vector<1x2x128xf32>,
    %c12 = arith.constant 12 : index
    %c0_76 = arith.constant 0 : index
    %175 = vector.load %arg9[%c12, %c0_76] : memref<16x512xf32, #tpu.memory_space<vmem>>, vector<2x512xf32>
    %c0_77 = arith.constant 0 : index
    %c0_78 = arith.constant 0 : index
    %176 = vector.load %arg2[%c0_77, %c0_78] : memref<128x512xf32, #tpu.memory_space<vmem>>, vector<128x512xf32>
    %cst_79 = arith.constant dense<0.000000e+00> : vector<2x512xf32>
    %177 = tpu.matmul %171, %176, %cst_79 {dimension_numbers = #tpu.dot_dimension_numbers<[1], [0], [0], [1], [0, 0, 1, 1], [], []>} : vector<2x128xf32>, vector<128x512xf32>, vector<2x512xf32> -> vector<2x512xf32>
    %178 = arith.addf %175, %177 : vector<2x512xf32>
    %179 = vector.extract_strided_slice %178 {offsets = [0, 0], sizes = [2, 384], strides = [1, 1]} : vector<2x512xf32> to vector<2x384xf32>
    %180 = arith.negf %179 : vector<2x384xf32>
    %181 = math.exp %180 : vector<2x384xf32>
    %cst_80 = arith.constant 1.000000e+00 : f32
    %182 = vector.broadcast %cst_80 : f32 to vector<2x384xf32>
    %183 = arith.addf %182, %181 : vector<2x384xf32>
    %184 = arith.divf %182, %183 : vector<2x384xf32>
    %185 = vector.extract_strided_slice %178 {offsets = [0, 384], sizes = [2, 128], strides = [1, 1]} : vector<2x512xf32> to vector<2x128xf32>
    %186 = math.tanh %185 : vector<2x128xf32>
    %187 = vector.extract_strided_slice %184 {offsets = [0, 0], sizes = [2, 128], strides = [1, 1]} : vector<2x384xf32> to vector<2x128xf32>
    %188 = vector.extract_strided_slice %184 {offsets = [0, 128], sizes = [2, 128], strides = [1, 1]} : vector<2x384xf32> to vector<2x128xf32>
    %189 = vector.extract_strided_slice %184 {offsets = [0, 256], sizes = [2, 128], strides = [1, 1]} : vector<2x384xf32> to vector<2x128xf32>
    %190 = arith.mulf %188, %169 : vector<2x128xf32>
    %191 = arith.mulf %187, %186 : vector<2x128xf32>
    %192 = arith.addf %190, %191 : vector<2x128xf32>
    %193 = math.tanh %192 : vector<2x128xf32>
    %194 = arith.mulf %189, %193 : vector<2x128xf32>
    %c6_81 = arith.constant 6 : index
    %c0_82 = arith.constant 0 : index
    %c0_83 = arith.constant 0 : index
    %195 = vector.load %arg10[%c6_81, %c0_82, %c0_83] : memref<8x2x128xf32, #tpu.memory_space<vmem>>, vector<1x2x128xf32>
    %196 = vector.shape_cast %195 : vector<1x2x128xf32> to vector<2x128xf32>
    %197 = vector.shape_cast %194 : vector<2x128xf32> to vector<1x2x128xf32>
    tpu.vector_store %arg10[%c6_81, %c0_82, %c0_83], %197 {strides = array<i32>} : memref<8x2x128xf32, #tpu.memory_space<vmem>>, vector<1x2x128xf32>,
    %c14 = arith.constant 14 : index
    %c0_84 = arith.constant 0 : index
    %198 = vector.load %arg9[%c14, %c0_84] : memref<16x512xf32, #tpu.memory_space<vmem>>, vector<2x512xf32>
    %c0_85 = arith.constant 0 : index
    %c0_86 = arith.constant 0 : index
    %199 = vector.load %arg2[%c0_85, %c0_86] : memref<128x512xf32, #tpu.memory_space<vmem>>, vector<128x512xf32>
    %cst_87 = arith.constant dense<0.000000e+00> : vector<2x512xf32>
    %200 = tpu.matmul %194, %199, %cst_87 {dimension_numbers = #tpu.dot_dimension_numbers<[1], [0], [0], [1], [0, 0, 1, 1], [], []>} : vector<2x128xf32>, vector<128x512xf32>, vector<2x512xf32> -> vector<2x512xf32>
    %201 = arith.addf %198, %200 : vector<2x512xf32>
    %202 = vector.extract_strided_slice %201 {offsets = [0, 0], sizes = [2, 384], strides = [1, 1]} : vector<2x512xf32> to vector<2x384xf32>
    %203 = arith.negf %202 : vector<2x384xf32>
    %204 = math.exp %203 : vector<2x384xf32>
    %cst_88 = arith.constant 1.000000e+00 : f32
    %205 = vector.broadcast %cst_88 : f32 to vector<2x384xf32>
    %206 = arith.addf %205, %204 : vector<2x384xf32>
    %207 = arith.divf %205, %206 : vector<2x384xf32>
    %208 = vector.extract_strided_slice %201 {offsets = [0, 384], sizes = [2, 128], strides = [1, 1]} : vector<2x512xf32> to vector<2x128xf32>
    %209 = math.tanh %208 : vector<2x128xf32>
    %210 = vector.extract_strided_slice %207 {offsets = [0, 0], sizes = [2, 128], strides = [1, 1]} : vector<2x384xf32> to vector<2x128xf32>
    %211 = vector.extract_strided_slice %207 {offsets = [0, 128], sizes = [2, 128], strides = [1, 1]} : vector<2x384xf32> to vector<2x128xf32>
    %212 = vector.extract_strided_slice %207 {offsets = [0, 256], sizes = [2, 128], strides = [1, 1]} : vector<2x384xf32> to vector<2x128xf32>
    %213 = arith.mulf %211, %192 : vector<2x128xf32>
    %214 = arith.mulf %210, %209 : vector<2x128xf32>
    %215 = arith.addf %213, %214 : vector<2x128xf32>
    %216 = math.tanh %215 : vector<2x128xf32>
    %217 = arith.mulf %212, %216 : vector<2x128xf32>
    %c7 = arith.constant 7 : index
    %c0_89 = arith.constant 0 : index
    %c0_90 = arith.constant 0 : index
    %218 = vector.load %arg10[%c7, %c0_89, %c0_90] : memref<8x2x128xf32, #tpu.memory_space<vmem>>, vector<1x2x128xf32>
    %219 = vector.shape_cast %218 : vector<1x2x128xf32> to vector<2x128xf32>
    %220 = vector.shape_cast %217 : vector<2x128xf32> to vector<1x2x128xf32>
    tpu.vector_store %arg10[%c7, %c0_89, %c0_90], %220 {strides = array<i32>} : memref<8x2x128xf32, #tpu.memory_space<vmem>>, vector<1x2x128xf32>,
    %221 = vector.extract_strided_slice %217 {offsets = [0, 0], sizes = [2, 64], strides = [1, 1]} : vector<2x128xf32> to vector<2x64xf32>
    %c0_91 = arith.constant 0 : index
    %c0_92 = arith.constant 0 : index
    %c0_93 = arith.constant 0 : index
    %222 = vector.load %arg7[%c0_91, %c0_92, %c0_93] : memref<2x2x64xf32, #tpu.memory_space<vmem>>, vector<1x2x64xf32>
    %223 = vector.shape_cast %222 : vector<1x2x64xf32> to vector<2x64xf32>
    %224 = vector.shape_cast %221 : vector<2x64xf32> to vector<1x2x64xf32>
    tpu.vector_store %arg7[%c0_91, %c0_92, %c0_93], %224 {strides = array<i32>} : memref<2x2x64xf32, #tpu.memory_space<vmem>>, vector<1x2x64xf32>,
    %225 = vector.extract_strided_slice %217 {offsets = [0, 64], sizes = [2, 64], strides = [1, 1]} : vector<2x128xf32> to vector<2x64xf32>
    %c1_94 = arith.constant 1 : index
    %c0_95 = arith.constant 0 : index
    %c0_96 = arith.constant 0 : index
    %226 = vector.load %arg7[%c1_94, %c0_95, %c0_96] : memref<2x2x64xf32, #tpu.memory_space<vmem>>, vector<1x2x64xf32>
    %227 = vector.shape_cast %226 : vector<1x2x64xf32> to vector<2x64xf32>
    %228 = vector.shape_cast %225 : vector<2x64xf32> to vector<1x2x64xf32>
    tpu.vector_store %arg7[%c1_94, %c0_95, %c0_96], %228 {strides = array<i32>} : memref<2x2x64xf32, #tpu.memory_space<vmem>>, vector<1x2x64xf32>,
    %229 = vector.extract_strided_slice %215 {offsets = [0, 0], sizes = [2, 64], strides = [1, 1]} : vector<2x128xf32> to vector<2x64xf32>
    %c0_97 = arith.constant 0 : index
    %c0_98 = arith.constant 0 : index
    %c0_99 = arith.constant 0 : index
    %230 = vector.load %arg8[%c0_97, %c0_98, %c0_99] : memref<2x2x64xf32, #tpu.memory_space<vmem>>, vector<1x2x64xf32>
    %231 = vector.shape_cast %230 : vector<1x2x64xf32> to vector<2x64xf32>
    %232 = vector.shape_cast %229 : vector<2x64xf32> to vector<1x2x64xf32>
    tpu.vector_store %arg8[%c0_97, %c0_98, %c0_99], %232 {strides = array<i32>} : memref<2x2x64xf32, #tpu.memory_space<vmem>>, vector<1x2x64xf32>,
    %233 = vector.extract_strided_slice %215 {offsets = [0, 64], sizes = [2, 64], strides = [1, 1]} : vector<2x128xf32> to vector<2x64xf32>
    %c1_100 = arith.constant 1 : index
    %c0_101 = arith.constant 0 : index
    %c0_102 = arith.constant 0 : index
    %234 = vector.load %arg8[%c1_100, %c0_101, %c0_102] : memref<2x2x64xf32, #tpu.memory_space<vmem>>, vector<1x2x64xf32>
    %235 = vector.shape_cast %234 : vector<1x2x64xf32> to vector<2x64xf32>
    %236 = vector.shape_cast %233 : vector<2x64xf32> to vector<1x2x64xf32>
    tpu.vector_store %arg8[%c1_100, %c0_101, %c0_102], %236 {strides = array<i32>} : memref<2x2x64xf32, #tpu.memory_space<vmem>>, vector<1x2x64xf32>,
    %237 = tpu.iota {dimensions = array<i32: 1>} : vector<2x128xi32>
    %c64_i32 = arith.constant 64 : i32
    %238 = vector.broadcast %c64_i32 : i32 to vector<2x128xi32>
    %239 = arith.cmpi slt, %237, %238 : vector<2x128xi32>
    %c0_103 = arith.constant 0 : index
    %c0_104 = arith.constant 0 : index
    %c0_105 = arith.constant 0 : index
    %240 = vector.load %arg10[%c0_103, %c0_104, %c0_105] : memref<8x2x128xf32, #tpu.memory_space<vmem>>, vector<1x2x128xf32>
    %241 = vector.shape_cast %240 : vector<1x2x128xf32> to vector<2x128xf32>
    %c7_106 = arith.constant 7 : index
    %c0_107 = arith.constant 0 : index
    %c0_108 = arith.constant 0 : index
    %242 = vector.load %arg10[%c7_106, %c0_107, %c0_108] : memref<8x2x128xf32, #tpu.memory_space<vmem>>, vector<1x2x128xf32>
    %243 = vector.shape_cast %242 : vector<1x2x128xf32> to vector<2x128xf32>
    %244 = arith.select %239, %241, %243 : vector<2x128xi1>, vector<2x128xf32>
    %c0_109 = arith.constant 0 : index
    %c0_110 = arith.constant 0 : index
    %c0_111 = arith.constant 0 : index
    %245 = vector.load %arg6[%c0_109, %c0_110, %c0_111] : memref<8x2x128xf32, #tpu.memory_space<vmem>>, vector<1x2x128xf32>
    %246 = vector.shape_cast %245 : vector<1x2x128xf32> to vector<2x128xf32>
    %247 = vector.shape_cast %244 : vector<2x128xf32> to vector<1x2x128xf32>
    tpu.vector_store %arg6[%c0_109, %c0_110, %c0_111], %247 {strides = array<i32>} : memref<8x2x128xf32, #tpu.memory_space<vmem>>, vector<1x2x128xf32>,
    %c1_112 = arith.constant 1 : index
    %c0_113 = arith.constant 0 : index
    %c0_114 = arith.constant 0 : index
    %248 = vector.load %arg10[%c1_112, %c0_113, %c0_114] : memref<8x2x128xf32, #tpu.memory_space<vmem>>, vector<1x2x128xf32>
    %249 = vector.shape_cast %248 : vector<1x2x128xf32> to vector<2x128xf32>
    %c6_115 = arith.constant 6 : index
    %c0_116 = arith.constant 0 : index
    %c0_117 = arith.constant 0 : index
    %250 = vector.load %arg10[%c6_115, %c0_116, %c0_117] : memref<8x2x128xf32, #tpu.memory_space<vmem>>, vector<1x2x128xf32>
    %251 = vector.shape_cast %250 : vector<1x2x128xf32> to vector<2x128xf32>
    %252 = arith.select %239, %249, %251 : vector<2x128xi1>, vector<2x128xf32>
    %c1_118 = arith.constant 1 : index
    %c0_119 = arith.constant 0 : index
    %c0_120 = arith.constant 0 : index
    %253 = vector.load %arg6[%c1_118, %c0_119, %c0_120] : memref<8x2x128xf32, #tpu.memory_space<vmem>>, vector<1x2x128xf32>
    %254 = vector.shape_cast %253 : vector<1x2x128xf32> to vector<2x128xf32>
    %255 = vector.shape_cast %252 : vector<2x128xf32> to vector<1x2x128xf32>
    tpu.vector_store %arg6[%c1_118, %c0_119, %c0_120], %255 {strides = array<i32>} : memref<8x2x128xf32, #tpu.memory_space<vmem>>, vector<1x2x128xf32>,
    %c2_121 = arith.constant 2 : index
    %c0_122 = arith.constant 0 : index
    %c0_123 = arith.constant 0 : index
    %256 = vector.load %arg10[%c2_121, %c0_122, %c0_123] : memref<8x2x128xf32, #tpu.memory_space<vmem>>, vector<1x2x128xf32>
    %257 = vector.shape_cast %256 : vector<1x2x128xf32> to vector<2x128xf32>
    %c5_124 = arith.constant 5 : index
    %c0_125 = arith.constant 0 : index
    %c0_126 = arith.constant 0 : index
    %258 = vector.load %arg10[%c5_124, %c0_125, %c0_126] : memref<8x2x128xf32, #tpu.memory_space<vmem>>, vector<1x2x128xf32>
    %259 = vector.shape_cast %258 : vector<1x2x128xf32> to vector<2x128xf32>
    %260 = arith.select %239, %257, %259 : vector<2x128xi1>, vector<2x128xf32>
    %c2_127 = arith.constant 2 : index
    %c0_128 = arith.constant 0 : index
    %c0_129 = arith.constant 0 : index
    %261 = vector.load %arg6[%c2_127, %c0_128, %c0_129] : memref<8x2x128xf32, #tpu.memory_space<vmem>>, vector<1x2x128xf32>
    %262 = vector.shape_cast %261 : vector<1x2x128xf32> to vector<2x128xf32>
    %263 = vector.shape_cast %260 : vector<2x128xf32> to vector<1x2x128xf32>
    tpu.vector_store %arg6[%c2_127, %c0_128, %c0_129], %263 {strides = array<i32>} : memref<8x2x128xf32, #tpu.memory_space<vmem>>, vector<1x2x128xf32>,
    %c3_130 = arith.constant 3 : index
    %c0_131 = arith.constant 0 : index
    %c0_132 = arith.constant 0 : index
    %264 = vector.load %arg10[%c3_130, %c0_131, %c0_132] : memref<8x2x128xf32, #tpu.memory_space<vmem>>, vector<1x2x128xf32>
    %265 = vector.shape_cast %264 : vector<1x2x128xf32> to vector<2x128xf32>
    %c4_133 = arith.constant 4 : index
    %c0_134 = arith.constant 0 : index
    %c0_135 = arith.constant 0 : index
    %266 = vector.load %arg10[%c4_133, %c0_134, %c0_135] : memref<8x2x128xf32, #tpu.memory_space<vmem>>, vector<1x2x128xf32>
    %267 = vector.shape_cast %266 : vector<1x2x128xf32> to vector<2x128xf32>
    %268 = arith.select %239, %265, %267 : vector<2x128xi1>, vector<2x128xf32>
    %c3_136 = arith.constant 3 : index
    %c0_137 = arith.constant 0 : index
    %c0_138 = arith.constant 0 : index
    %269 = vector.load %arg6[%c3_136, %c0_137, %c0_138] : memref<8x2x128xf32, #tpu.memory_space<vmem>>, vector<1x2x128xf32>
    %270 = vector.shape_cast %269 : vector<1x2x128xf32> to vector<2x128xf32>
    %271 = vector.shape_cast %268 : vector<2x128xf32> to vector<1x2x128xf32>
    tpu.vector_store %arg6[%c3_136, %c0_137, %c0_138], %271 {strides = array<i32>} : memref<8x2x128xf32, #tpu.memory_space<vmem>>, vector<1x2x128xf32>,
    %c4_139 = arith.constant 4 : index
    %c0_140 = arith.constant 0 : index
    %c0_141 = arith.constant 0 : index
    %272 = vector.load %arg10[%c4_139, %c0_140, %c0_141] : memref<8x2x128xf32, #tpu.memory_space<vmem>>, vector<1x2x128xf32>
    %273 = vector.shape_cast %272 : vector<1x2x128xf32> to vector<2x128xf32>
    %c3_142 = arith.constant 3 : index
    %c0_143 = arith.constant 0 : index
    %c0_144 = arith.constant 0 : index
    %274 = vector.load %arg10[%c3_142, %c0_143, %c0_144] : memref<8x2x128xf32, #tpu.memory_space<vmem>>, vector<1x2x128xf32>
    %275 = vector.shape_cast %274 : vector<1x2x128xf32> to vector<2x128xf32>
    %276 = arith.select %239, %273, %275 : vector<2x128xi1>, vector<2x128xf32>
    %c4_145 = arith.constant 4 : index
    %c0_146 = arith.constant 0 : index
    %c0_147 = arith.constant 0 : index
    %277 = vector.load %arg6[%c4_145, %c0_146, %c0_147] : memref<8x2x128xf32, #tpu.memory_space<vmem>>, vector<1x2x128xf32>
    %278 = vector.shape_cast %277 : vector<1x2x128xf32> to vector<2x128xf32>
    %279 = vector.shape_cast %276 : vector<2x128xf32> to vector<1x2x128xf32>
    tpu.vector_store %arg6[%c4_145, %c0_146, %c0_147], %279 {strides = array<i32>} : memref<8x2x128xf32, #tpu.memory_space<vmem>>, vector<1x2x128xf32>,
    %c5_148 = arith.constant 5 : index
    %c0_149 = arith.constant 0 : index
    %c0_150 = arith.constant 0 : index
    %280 = vector.load %arg10[%c5_148, %c0_149, %c0_150] : memref<8x2x128xf32, #tpu.memory_space<vmem>>, vector<1x2x128xf32>
    %281 = vector.shape_cast %280 : vector<1x2x128xf32> to vector<2x128xf32>
    %c2_151 = arith.constant 2 : index
    %c0_152 = arith.constant 0 : index
    %c0_153 = arith.constant 0 : index
    %282 = vector.load %arg10[%c2_151, %c0_152, %c0_153] : memref<8x2x128xf32, #tpu.memory_space<vmem>>, vector<1x2x128xf32>
    %283 = vector.shape_cast %282 : vector<1x2x128xf32> to vector<2x128xf32>
    %284 = arith.select %239, %281, %283 : vector<2x128xi1>, vector<2x128xf32>
    %c5_154 = arith.constant 5 : index
    %c0_155 = arith.constant 0 : index
    %c0_156 = arith.constant 0 : index
    %285 = vector.load %arg6[%c5_154, %c0_155, %c0_156] : memref<8x2x128xf32, #tpu.memory_space<vmem>>, vector<1x2x128xf32>
    %286 = vector.shape_cast %285 : vector<1x2x128xf32> to vector<2x128xf32>
    %287 = vector.shape_cast %284 : vector<2x128xf32> to vector<1x2x128xf32>
    tpu.vector_store %arg6[%c5_154, %c0_155, %c0_156], %287 {strides = array<i32>} : memref<8x2x128xf32, #tpu.memory_space<vmem>>, vector<1x2x128xf32>,
    %c6_157 = arith.constant 6 : index
    %c0_158 = arith.constant 0 : index
    %c0_159 = arith.constant 0 : index
    %288 = vector.load %arg10[%c6_157, %c0_158, %c0_159] : memref<8x2x128xf32, #tpu.memory_space<vmem>>, vector<1x2x128xf32>
    %289 = vector.shape_cast %288 : vector<1x2x128xf32> to vector<2x128xf32>
    %c1_160 = arith.constant 1 : index
    %c0_161 = arith.constant 0 : index
    %c0_162 = arith.constant 0 : index
    %290 = vector.load %arg10[%c1_160, %c0_161, %c0_162] : memref<8x2x128xf32, #tpu.memory_space<vmem>>, vector<1x2x128xf32>
    %291 = vector.shape_cast %290 : vector<1x2x128xf32> to vector<2x128xf32>
    %292 = arith.select %239, %289, %291 : vector<2x128xi1>, vector<2x128xf32>
    %c6_163 = arith.constant 6 : index
    %c0_164 = arith.constant 0 : index
    %c0_165 = arith.constant 0 : index
    %293 = vector.load %arg6[%c6_163, %c0_164, %c0_165] : memref<8x2x128xf32, #tpu.memory_space<vmem>>, vector<1x2x128xf32>
    %294 = vector.shape_cast %293 : vector<1x2x128xf32> to vector<2x128xf32>
    %295 = vector.shape_cast %292 : vector<2x128xf32> to vector<1x2x128xf32>
    tpu.vector_store %arg6[%c6_163, %c0_164, %c0_165], %295 {strides = array<i32>} : memref<8x2x128xf32, #tpu.memory_space<vmem>>, vector<1x2x128xf32>,
    %c7_166 = arith.constant 7 : index
    %c0_167 = arith.constant 0 : index
    %c0_168 = arith.constant 0 : index
    %296 = vector.load %arg10[%c7_166, %c0_167, %c0_168] : memref<8x2x128xf32, #tpu.memory_space<vmem>>, vector<1x2x128xf32>
    %297 = vector.shape_cast %296 : vector<1x2x128xf32> to vector<2x128xf32>
    %c0_169 = arith.constant 0 : index
    %c0_170 = arith.constant 0 : index
    %c0_171 = arith.constant 0 : index
    %298 = vector.load %arg10[%c0_169, %c0_170, %c0_171] : memref<8x2x128xf32, #tpu.memory_space<vmem>>, vector<1x2x128xf32>
    %299 = vector.shape_cast %298 : vector<1x2x128xf32> to vector<2x128xf32>
    %300 = arith.select %239, %297, %299 : vector<2x128xi1>, vector<2x128xf32>
    %c7_172 = arith.constant 7 : index
    %c0_173 = arith.constant 0 : index
    %c0_174 = arith.constant 0 : index
    %301 = vector.load %arg6[%c7_172, %c0_173, %c0_174] : memref<8x2x128xf32, #tpu.memory_space<vmem>>, vector<1x2x128xf32>
    %302 = vector.shape_cast %301 : vector<1x2x128xf32> to vector<2x128xf32>
    %303 = vector.shape_cast %300 : vector<2x128xf32> to vector<1x2x128xf32>
    tpu.vector_store %arg6[%c7_172, %c0_173, %c0_174], %303 {strides = array<i32>} : memref<8x2x128xf32, #tpu.memory_space<vmem>>, vector<1x2x128xf32>,
    return
  }
}

</mosaic_0001>

<bundles_post_ra>
// kernel: tpu_custom_call.1
= control target key start
LH: loop header
LB: loop body
LE: loop exit
PB: predicated region body
PF: predicated region fallthrough
CT: control target
= control target key end

     0   :  { %14 = vsyncpa [#allocation5], 0  ;;  %s3748_s0 = inlined_call_operand.vmem [shape: f32[16,4], index: 0, kind: input, shape index: {}]   ;;  %s3749_s1 = inlined_call_operand.vmem [shape: f32[4,512], index: 1, kind: input, shape index: {}]   ;;  %s3750_s2 = inlined_call_operand.hbm [shape: f32[128,512], index: 2, kind: input, shape index: {}]   ;;  %s3751_s3 = inlined_call_operand.vmem [shape: f32[1,512], index: 3, kind: input, shape index: {}]   ;;  %s3752_s4 = inlined_call_operand.hbm [shape: f32[2,2,64], index: 4, kind: input, shape index: {}]   ;;  %s3753_s5 = inlined_call_operand.vmem [shape: f32[2,2,64], index: 5, kind: input, shape index: {}]   ;;  %s3754_s6 = inlined_call_operand.hbm [shape: f32[8,2,128], index: 6, kind: output, shape index: {0}]   ;;  %s3755_s7 = inlined_call_operand.hbm [shape: f32[2,2,64], index: 7, kind: output, shape index: {1}]   ;;  %s3756_s8 = inlined_call_operand.hbm [shape: f32[2,2,64], index: 8, kind: output, shape index: {2}]  }
   0x1   :  { %15 = vsyncpa [#allocation8], 0 }
   0x2   :  { %16 = vsyncpa [#allocation6], 0 }
   0x3   :  { %17 = vsyncpa [#allocation11], 0  ;;  %s26_s29 = sshll.u32 %s3750_s2, 4  ;;  %s2499_s30 = smov [#allocation4]   ;;  %s27_s29 = int_to_ptr.hbm [resolvable:$true] %s26_s29 }
   0x4   :  { %s28_s9 = sshll.u32 %s2499_s30, 4  ;;  %s41_s12 = sshll.u32 %s3752_s4, 4  ;;  %s29_s9 = int_to_ptr.vmem [resolvable:$true] %s28_s9  ;;  %s42_s12 = int_to_ptr.hbm [resolvable:$true] %s41_s12 }
   0x5   :  { %s2500_s13 = smov 512   ;;  %s2501_s14 = smov 32  }
   0x6   :  { %34 = dma.hbm_to_vmem [thread:$0]  %s27_s29, 8192, %s29_s9, [#allocation5], %s2500_s13, %s2500_s13, %s2501_s14  }
   0x7   :  { %s2502_s15 = smov [#allocation7]   ;;  %s2503_s17 = smov 2  }
   0x8   :  { %s43_s16 = sshll.u32 %s2502_s15, 4  ;;  %s44_s16 = int_to_ptr.vmem [resolvable:$true] %s43_s16 }
   0x9   :  { %49 = dma.hbm_to_vmem [thread:$0]  %s42_s12, 64, %s44_s16, [#allocation8], %s2501_s14, %s2501_s14, %s2503_s17  }
   0xa   :  { %2491 = dma.done.wait [#allocation5], 8192  }
   0xb   :  { %2492 = vsyncadd [#allocation5], 4294959104 }
   0xc   :  { %2493 = dma.done.wait [#allocation8], 64  }
   0xd   :  { %2494 = vsyncadd [#allocation8], 4294967232  ;;  %v3757_v0 = vmov 1   ;;  %v2505_v1 = vmov 0   ;;  %v223_v2 = vld [vmem:[#allocation7 + $0x2] sm:$0x3] }
   0xe   :  { %2235 = vset.pattern.permute.xlu1 %v3757_v0  ;;  %2234 = vset.pattern.permute.xlu0 %v2505_v1  ;;  %v2569_v3 = vld [vmem:[#allocation4 + $0x1e0] sm:$0xff]  ;;  %v2571_v4 = vld [vmem:[#allocation4 + $0x1e8] sm:$0xff]  ;;  %s2506_s2 = smov 64   ;;  %v2575_v5 = vld [vmem:[#allocation4 + $0x1f0] sm:$0xff]  ;;  %v2507_v51 = vmov 2   ;;  %vm228_vm0 = vcmask 523264  }
   0xf   :  { %225 = vrot.lane.b32.xlu0 %v223_v2, %s2506_s2  ;;  %306 = vmatpush.msra.mxu0 %v2569_v3  ;;  %v2577_v6 = vld [vmem:[#allocation4 + $0x1f8] sm:$0xff]  ;;  %v2579_v7 = vld [vmem:[#allocation4 + $0x1c0] sm:$0xff]  ;;  %v2583_v8 = vld [vmem:[#allocation4 + $0x1c8] sm:$0xff]  ;;  %s2144_s13 = sshll.u32 %s3754_s6, 4  ;;  %s2510_s15 = smov [#allocation10]   ;;  %s2145_s13 = int_to_ptr.hbm [resolvable:$true] %s2144_s13 }
  0x10   :  { %326 = vmatpush.msra.mxu1 %v2571_v4  ;;  %346 = vmatpush.msra.mxu2 %v2575_v5  ;;  %v2585_v9 = vld [vmem:[#allocation4 + $0x1d0] sm:$0xff]  ;;  %v2587_v10 = vld [vmem:[#allocation4 + $0x1d8] sm:$0xff]  ;;  %v2591_v11 = vld [vmem:[#allocation4 + $0x1a0] sm:$0xff]  ;;  %s2155_s6 = sshll.u32 %s2510_s15, 4  ;;  %s2157_s4 = sshll.u32 %s3755_s7, 4  ;;  %s2156_s6 = int_to_ptr.vmem [resolvable:$true] %s2155_s6  ;;  %s2158_s4 = int_to_ptr.hbm [resolvable:$true] %s2157_s4 }
  0x11   :  { %366 = vmatpush.msra.mxu3 %v2577_v6  ;;  %307 = vmatpush.msra.mxu0 %v2579_v7  ;;  %v2593_v12 = vld [vmem:[#allocation4 + $0x1a8] sm:$0xff]  ;;  %v2595_v13 = vld [vmem:[#allocation4 + $0x1b0] sm:$0xff]  ;;  %v2599_v14 = vld [vmem:[#allocation4 + $0x1b8] sm:$0xff]  ;;  %s2511_s18 = smov [#allocation12]   ;;  %s2170_s22 = sshll.u32 %s3756_s8, 4  ;;  %s2171_s22 = int_to_ptr.hbm [resolvable:$true] %s2170_s22 }
  0x12   :  { %327 = vmatpush.msra.mxu1 %v2583_v8  ;;  %347 = vmatpush.msra.mxu2 %v2585_v9  ;;  %v2601_v15 = vld [vmem:[#allocation4 + $0x180] sm:$0xff]  ;;  %v2605_v16 = vld [vmem:[#allocation4 + $0x188] sm:$0xff]  ;;  %v2607_v17 = vld [vmem:[#allocation4 + $0x190] sm:$0xff]  ;;  %s2168_s19 = sshll.u32 %s2511_s18, 4  ;;  %s2169_s19 = int_to_ptr.vmem [resolvable:$true] %s2168_s19 }
  0x13   :  { %367 = vmatpush.msra.mxu3 %v2587_v10  ;;  %308 = vmatpush.msra.mxu0 %v2591_v11  ;;  %v2611_v18 = vld [vmem:[#allocation4 + $0x198] sm:$0xff]  ;;  %v2613_v19 = vld [vmem:[#allocation4 + $0x160] sm:$0xff]  ;;  %v2617_v20 = vld [vmem:[#allocation4 + $0x168] sm:$0xff] }
  0x14   :  { %328 = vmatpush.msra.mxu1 %v2593_v12  ;;  %348 = vmatpush.msra.mxu2 %v2595_v13  ;;  %v2619_v21 = vld [vmem:[#allocation4 + $0x170] sm:$0xff]  ;;  %v2623_v22 = vld [vmem:[#allocation4 + $0x178] sm:$0xff]  ;;  %v2625_v23 = vld [vmem:[#allocation4 + $0x140] sm:$0xff] }
  0x15   :  { %368 = vmatpush.msra.mxu3 %v2599_v14  ;;  %309 = vmatpush.msra.mxu0 %v2601_v15  ;;  %v2629_v24 = vld [vmem:[#allocation4 + $0x148] sm:$0xff]  ;;  %v2631_v25 = vld [vmem:[#allocation4 + $0x150] sm:$0xff]  ;;  %v2635_v26 = vld [vmem:[#allocation4 + $0x158] sm:$0xff] }
  0x16   :  { %329 = vmatpush.msra.mxu1 %v2605_v16  ;;  %349 = vmatpush.msra.mxu2 %v2607_v17  ;;  %v2637_v27 = vld [vmem:[#allocation4 + $0x120] sm:$0xff]  ;;  %v2641_v28 = vld [vmem:[#allocation4 + $0x128] sm:$0xff]  ;;  %v2643_v29 = vld [vmem:[#allocation4 + $0x130] sm:$0xff] }
  0x17   :  { %369 = vmatpush.msra.mxu3 %v2611_v18  ;;  %310 = vmatpush.msra.mxu0 %v2613_v19  ;;  %v2647_v30 = vld [vmem:[#allocation4 + $0x138] sm:$0xff]  ;;  %v2652_v31 = vld [vmem:[%s3748_s0] sm:$0xff]  ;;  %v2656_v32 = vld [vmem:[#allocation4 + $0x100] sm:$0xff] }
  0x18   :  { %330 = vmatpush.msra.mxu1 %v2617_v20  ;;  %350 = vmatpush.msra.mxu2 %v2619_v21  ;;  %v2658_v33 = vld [vmem:[#allocation4 + $0x108] sm:$0xff]  ;;  %v2662_v34 = vld [vmem:[#allocation4 + $0x110] sm:$0xff]  ;;  %v2664_v35 = vld [vmem:[#allocation4 + $0x118] sm:$0xff] }
  0x19   :  { %370 = vmatpush.msra.mxu3 %v2623_v22  ;;  %311 = vmatpush.msra.mxu0 %v2625_v23  ;;  %v2668_v36 = vld [vmem:[#allocation4 + $0xe0] sm:$0xff]  ;;  %v2670_v37 = vld [vmem:[#allocation4 + $0xe8] sm:$0xff]  ;;  %v2674_v38 = vld [vmem:[#allocation4 + $0xf0] sm:$0xff] }
  0x1a   :  { %331 = vmatpush.msra.mxu1 %v2629_v24  ;;  %351 = vmatpush.msra.mxu2 %v2631_v25  ;;  %v2676_v39 = vld [vmem:[#allocation4 + $0xf8] sm:$0xff]  ;;  %v2680_v40 = vld [vmem:[#allocation4 + $0xc0] sm:$0xff]  ;;  %v2684_v41 = vld [vmem:[#allocation4 + $0xc8] sm:$0xff] }
  0x1b   :  { %371 = vmatpush.msra.mxu3 %v2635_v26  ;;  %312 = vmatpush.msra.mxu0 %v2637_v27  ;;  %v2686_v42 = vld [vmem:[#allocation4 + $0xd0] sm:$0xff]  ;;  %v2690_v43 = vld [vmem:[#allocation4 + $0xd8] sm:$0xff]  ;;  %v2692_v44 = vld [vmem:[#allocation4 + $0xa0] sm:$0xff] }
  0x1c   :  { %332 = vmatpush.msra.mxu1 %v2641_v28  ;;  %352 = vmatpush.msra.mxu2 %v2643_v29  ;;  %v2696_v45 = vld [vmem:[#allocation4 + $0xa8] sm:$0xff]  ;;  %v2698_v46 = vld [vmem:[#allocation4 + $0xb0] sm:$0xff]  ;;  %v2702_v47 = vld [vmem:[#allocation4 + $0xb8] sm:$0xff] }
  0x1d   :  { %372 = vmatpush.msra.mxu3 %v2647_v30  ;;  %111 = vperm.xlu1 %2235, %v2652_v31   ;;  %v2706_v48 = vld [vmem:[#allocation4 + $0x80] sm:$0xff]  ;;  %v2710_v49 = vld [vmem:[#allocation4 + $0x88] sm:$0xff]  ;;  %v2712_v50 = vld [vmem:[#allocation4 + $0x90] sm:$0xff] }
  0x1e   :  { %313 = vmatpush.msra.mxu0 %v2656_v32  ;;  %333 = vmatpush.msra.mxu1 %v2658_v33  ;;  %3837 = vst [vmem:[#allocation17_spill] sm:$0xff] %v2712_v50  ;;  %v2715_v52 = vld [vmem:[#allocation4 + $0x98] sm:$0xff]  ;;  %v2717_v53 = vld [vmem:[#allocation4 + $0x60] sm:$0xff]  ;;  %v2721_v54 = vld [vmem:[#allocation4 + $0x68] sm:$0xff] }
  0x1f   :  { %353 = vmatpush.msra.mxu2 %v2662_v34  ;;  %373 = vmatpush.msra.mxu3 %v2664_v35  ;;  %3838 = vst [vmem:[#allocation18_spill] sm:$0xff] %v2715_v52  ;;  %v2723_v55 = vld [vmem:[#allocation4 + $0x70] sm:$0xff]  ;;  %v2727_v56 = vld [vmem:[#allocation4 + $0x78] sm:$0xff]  ;;  %v2729_v57 = vld [vmem:[#allocation4 + $0x40] sm:$0xff] }
  0x20   :  { %314 = vmatpush.msra.mxu0 %v2668_v36  ;;  %334 = vmatpush.msra.mxu1 %v2670_v37  ;;  %3839 = vst [vmem:[#allocation19_spill] sm:$0xff] %v2717_v53  ;;  %v2733_v58 = vld [vmem:[#allocation4 + $0x48] sm:$0xff]  ;;  %v2735_v59 = vld [vmem:[#allocation4 + $0x50] sm:$0xff]  ;;  %v2739_v60 = vld [vmem:[#allocation4 + $0x58] sm:$0xff] }
  0x21   :  { %354 = vmatpush.msra.mxu2 %v2674_v38  ;;  %374 = vmatpush.msra.mxu3 %v2676_v39  ;;  %3840 = vst [vmem:[#allocation20_spill] sm:$0xff] %v2733_v58  ;;  %v2741_v61 = vld [vmem:[#allocation4 + $0x20] sm:$0xff]  ;;  %v2745_v62 = vld [vmem:[#allocation4 + $0x28] sm:$0xff]  ;;  %v2747_v63 = vld [vmem:[#allocation4 + $0x30] sm:$0xff] }
  0x22   :  { %66 = vperm.xlu0 %2234, %v2652_v31   ;;  %315 = vmatpush.msra.mxu0 %v2680_v40  ;;  %3841 = vst [vmem:[#allocation21_spill] sm:$0xff] %v2739_v60  ;;  %v2751_v2 = vld [vmem:[#allocation4 + $0x38] sm:$0xff]  ;;  %v2759_v0 = vld [vmem:[#allocation4] sm:$0xff] }
  0x23   :  { %335 = vmatpush.msra.mxu1 %v2684_v41  ;;  %355 = vmatpush.msra.mxu2 %v2686_v42  ;;  %3842 = vst [vmem:[#allocation22_spill] sm:$0xff] %v2741_v61 }
  0x24   :  { %375 = vmatpush.msra.mxu3 %v2690_v43  ;;  %316 = vmatpush.msra.mxu0 %v2692_v44 }
  0x25   :  { %336 = vmatpush.msra.mxu1 %v2696_v45  ;;  %356 = vmatpush.msra.mxu2 %v2698_v46 }
  0x26   :  { %376 = vmatpush.msra.mxu3 %v2702_v47  ;;  %2236 = vset.pattern.permute.xlu1 %v2507_v51 }
  0x27   :  { %146 = vperm.xlu1 %2236, %v2652_v31   ;;  %317 = vmatpush.msra.mxu0 %v2706_v48 }
  0x28   :  { %337 = vmatpush.msra.mxu1 %v2710_v49  ;;  %357 = vmatpush.msra.mxu2 %v2712_v50 }
  0x29   :  { %377 = vmatpush.msra.mxu3 %v2715_v52  ;;  %318 = vmatpush.msra.mxu0 %v2717_v53 }
  0x2a   :  { %338 = vmatpush.msra.mxu1 %v2721_v54  ;;  %358 = vmatpush.msra.mxu2 %v2723_v55 }
  0x2b   :  { %378 = vmatpush.msra.mxu3 %v2727_v56  ;;  %319 = vmatpush.msra.mxu0 %v2729_v57 }
  0x2c   :  { %339 = vmatpush.msra.mxu1 %v2733_v58  ;;  %359 = vmatpush.msra.mxu2 %v2735_v59  ;;  %v2761_v58 = vld [vmem:[#allocation4 + $0x8] sm:$0xff] }
  0x2d   :  { %379 = vmatpush.msra.mxu3 %v2739_v60  ;;  %320 = vmatpush.msra.mxu0 %v2741_v61  ;;  %v2765_v60 = vld [vmem:[#allocation4 + $0x10] sm:$0xff]  ;;  %v2767_v61 = vld [vmem:[#allocation4 + $0x18] sm:$0xff] }
  0x2e   :  { %340 = vmatpush.msra.mxu1 %v2745_v62  ;;  %360 = vmatpush.msra.mxu2 %v2747_v63 }
  0x2f   :  { %380 = vmatpush.msra.mxu3 %v2751_v2  ;;  %2238 = vset.pattern.permute.xlu1 %v2505_v1  ;;  %v3764_v1 = vmov 3  }
  0x30   :  { %2240 = vset.pattern.permute.xlu0 %v2507_v51  ;;  %321 = vmatpush.msra.mxu0 %v2759_v0  ;;  %v221_v51 = vld [vmem:[#allocation7] sm:$0x3] }
  0x31   :  { %341 = vmatpush.msra.mxu1 %v2761_v58  ;;  %361 = vmatpush.msra.mxu2 %v2765_v60 }
  0x32   :  { %381 = vmatpush.msra.mxu3 %v2767_v61  ;;  %522 = vmatpush.msrb.mxu0 %v2569_v3 }
  0x33   :  { %542 = vmatpush.msrb.mxu1 %v2571_v4  ;;  %2237 = vset.pattern.permute.xlu2 %v3764_v1 }
  0x34   :  { %562 = vmatpush.msrb.mxu2 %v2575_v5  ;;  %181 = vperm.xlu2 %2237, %v2652_v31   ;;  %v2196_v31 = vld [vmem:[%s3753_s5 + $0x2] sm:$0x3] }
  0x35   :  { %582 = vmatpush.msrb.mxu3 %v2577_v6  ;;  %523 = vmatpush.msrb.mxu0 %v2579_v7 }
  0x36   :  { %543 = vmatpush.msrb.mxu1 %v2583_v8  ;;  %563 = vmatpush.msrb.mxu2 %v2585_v9 }
  0x37   :  { %583 = vmatpush.msrb.mxu3 %v2587_v10  ;;  %524 = vmatpush.msrb.mxu0 %v2591_v11 }
  0x38   :  { %544 = vmatpush.msrb.mxu1 %v2593_v12  ;;  %564 = vmatpush.msrb.mxu2 %v2595_v13 }
  0x39   :  { %584 = vmatpush.msrb.mxu3 %v2599_v14  ;;  %525 = vmatpush.msrb.mxu0 %v2601_v15 }
  0x3a   :  { %545 = vmatpush.msrb.mxu1 %v2605_v16  ;;  %565 = vmatpush.msrb.mxu2 %v2607_v17 }
  0x3b   :  { %585 = vmatpush.msrb.mxu3 %v2611_v18  ;;  %526 = vmatpush.msrb.mxu0 %v2613_v19 }
  0x3c   :  { %546 = vmatpush.msrb.mxu1 %v2617_v20  ;;  %234 = vrot.lane.b32.xlu2 %v2196_v31, %s2506_s2  ;;  %v3843_v31 = vld [vmem:[#allocation20_spill] sm:$0xff] }
  0x3d   :  { %566 = vmatpush.msrb.mxu2 %v2619_v21  ;;  %586 = vmatpush.msrb.mxu3 %v2623_v22 }
  0x3e   :  { %527 = vmatpush.msrb.mxu0 %v2625_v23  ;;  %547 = vmatpush.msrb.mxu1 %v2629_v24 }
  0x3f   :  { %567 = vmatpush.msrb.mxu2 %v2631_v25  ;;  %587 = vmatpush.msrb.mxu3 %v2635_v26 }
  0x40   :  { %528 = vmatpush.msrb.mxu0 %v2637_v27  ;;  %548 = vmatpush.msrb.mxu1 %v2641_v28 }
  0x41   :  { %568 = vmatpush.msrb.mxu2 %v2643_v29  ;;  %588 = vmatpush.msrb.mxu3 %v2647_v30 }
  0x42   :  { %529 = vmatpush.msrb.mxu0 %v2656_v32  ;;  %549 = vmatpush.msrb.mxu1 %v2658_v33 }
  0x43   :  { %569 = vmatpush.msrb.mxu2 %v2662_v34  ;;  %589 = vmatpush.msrb.mxu3 %v2664_v35 }
  0x44   :  { %530 = vmatpush.msrb.mxu0 %v2668_v36  ;;  %550 = vmatpush.msrb.mxu1 %v2670_v37 }
  0x45   :  { %570 = vmatpush.msrb.mxu2 %v2674_v38  ;;  %590 = vmatpush.msrb.mxu3 %v2676_v39 }
  0x46   :  { %531 = vmatpush.msrb.mxu0 %v2680_v40  ;;  %551 = vmatpush.msrb.mxu1 %v2684_v41 }
  0x47   :  { %571 = vmatpush.msrb.mxu2 %v2686_v42  ;;  %591 = vmatpush.msrb.mxu3 %v2690_v43 }
  0x48   :  { %532 = vmatpush.msrb.mxu0 %v2692_v44  ;;  %552 = vmatpush.msrb.mxu1 %v2696_v45 }
  0x49   :  { %572 = vmatpush.msrb.mxu2 %v2698_v46  ;;  %592 = vmatpush.msrb.mxu3 %v2702_v47 }
  0x4a   :  { %533 = vmatpush.msrb.mxu0 %v2706_v48  ;;  %553 = vmatpush.msrb.mxu1 %v2710_v49 }
  0x4b   :  { %573 = vmatpush.msrb.mxu2 %v2712_v50  ;;  %593 = vmatpush.msrb.mxu3 %v2715_v52  ;;  %v3844_v50 = vld [vmem:[#allocation21_spill] sm:$0xff]  ;;  %v3845_v52 = vld [vmem:[#allocation22_spill] sm:$0xff] }
  0x4c   :  { %534 = vmatpush.msrb.mxu0 %v2717_v53  ;;  %554 = vmatpush.msrb.mxu1 %v2721_v54 }
  0x4d   :  { %574 = vmatpush.msrb.mxu2 %v2723_v55  ;;  %594 = vmatpush.msrb.mxu3 %v2727_v56 }
  0x4e   :  { %535 = vmatpush.msrb.mxu0 %v2729_v57  ;;  %555 = vmatpush.msrb.mxu1 %v3843_v31 }
  0x4f   :  { %575 = vmatpush.msrb.mxu2 %v2735_v59  ;;  %595 = vmatpush.msrb.mxu3 %v3844_v50 }
  0x50   :  { %536 = vmatpush.msrb.mxu0 %v3845_v52  ;;  %556 = vmatpush.msrb.mxu1 %v2745_v62 }
  0x51   :  { %576 = vmatpush.msrb.mxu2 %v2747_v63  ;;  %596 = vmatpush.msrb.mxu3 %v2751_v2 }
  0x52   :  { %537 = vmatpush.msrb.mxu0 %v2759_v0  ;;  %557 = vmatpush.msrb.mxu1 %v2761_v58 }
  0x53   :  { %577 = vmatpush.msrb.mxu2 %v2765_v60  ;;  %597 = vmatpush.msrb.mxu3 %v2767_v61 }
  0x81   :  { %v226_v1 = vpop.permute.xlu0 %225 }
  0x82   :  { %v229_v53 = vsel %vm228_vm0, %v221_v51, %v226_v1 }
  0x83   :  { %322 = vmatmul.f32.vlgmr.msra.gmra.mxu0 %v229_v53  ;;  %342 = vmatmul.f32.vlgmr.msra.gmra.mxu1 %v229_v53 }
  0x84   :  { %362 = vmatmul.f32.vlgmr.msra.gmra.mxu2 %v229_v53  ;;  %382 = vmatmul.f32.vlgmr.msra.gmra.mxu3 %v229_v53 }
  0x85   :  { %757 = vmatpush.msra.mxu0 %v2569_v3  ;;  %777 = vmatpush.msra.mxu1 %v2571_v4  ;;  %v3846_v3 = vld [vmem:[#allocation17_spill] sm:$0xff]  ;;  %v3847_v4 = vld [vmem:[#allocation18_spill] sm:$0xff] }
  0x86   :  { %797 = vmatpush.msra.mxu2 %v2575_v5  ;;  %817 = vmatpush.msra.mxu3 %v2577_v6  ;;  %v3848_v5 = vld [vmem:[#allocation19_spill] sm:$0xff]  ;;  %v3849_v6 = vmov 1  }
  0x87   :  { %758 = vmatpush.msra.mxu0 %v2579_v7  ;;  %778 = vmatpush.msra.mxu1 %v2583_v8  ;;  %v2910_v7 = vld [vmem:[%s3749_s1] ss:$4 sm:$0xf]  ;;  %v2915_v8 = vld [vmem:[%s3749_s1 + $0x1] ss:$4 sm:$0xf] }
  0x88   :  { %798 = vmatpush.msra.mxu2 %v2585_v9  ;;  %818 = vmatpush.msra.mxu3 %v2587_v10  ;;  %3850 = vst [vmem:[#allocation20_spill] sm:$0xff] %v2910_v7  ;;  %v3783_v10 = vperm.slane %v2910_v7, 1 }
  0x89   :  { %759 = vmatpush.msra.mxu0 %v2591_v11  ;;  %779 = vmatpush.msra.mxu1 %v2593_v12  ;;  %3851 = vst [vmem:[#allocation21_spill] sm:$0xff] %v2915_v8  ;;  %v3782_v11 = vperm.slane %v2910_v7, 2 }
  0x8a   :  { %799 = vmatpush.msra.mxu2 %v2595_v13  ;;  %819 = vmatpush.msra.mxu3 %v2599_v14  ;;  %v2923_v13 = vld [vmem:[%s3751_s3] sm:$0xf]  ;;  %v3781_v14 = vperm.slane %v2910_v7, 3 }
  0x8b   :  { %760 = vmatpush.msra.mxu0 %v2601_v15  ;;  %780 = vmatpush.msra.mxu1 %v2605_v16  ;;  %3852 = vst [vmem:[#allocation22_spill] sm:$0xff] %v2923_v13  ;;  %v3788_v15 = vperm.slane %v2915_v8, 0  ;;  %v3787_v16 = vperm.slane %v2915_v8, 1 }
  0x8c   :  { %800 = vmatpush.msra.mxu2 %v2607_v17  ;;  %820 = vmatpush.msra.mxu3 %v2611_v18 }
  0x8d   :  { %761 = vmatpush.msra.mxu0 %v2613_v19  ;;  %781 = vmatpush.msra.mxu1 %v2617_v20  ;;  %v3780_v19 = vperm.slane %v2923_v13, 0  ;;  %v3779_v20 = vperm.slane %v2923_v13, 1 }
  0x8e   :  { %801 = vmatpush.msra.mxu2 %v2619_v21  ;;  %821 = vmatpush.msra.mxu3 %v2623_v22  ;;  %v2937_v21 = vld [vmem:[%s3749_s1 + $0x2] ss:$4 sm:$0xf]  ;;  %v3786_v22 = vperm.slane %v2915_v8, 2 }
  0x8f   :  { %762 = vmatpush.msra.mxu0 %v2625_v23  ;;  %782 = vmatpush.msra.mxu1 %v2629_v24  ;;  %v112_v9 = vpop.permute.xlu1 %111  ;;  %3853 = vst [vmem:[#allocation17_spill] sm:$0xff] %v2937_v21  ;;  %v3778_v24 = vperm.slane %v2923_v13, 2 }
  0x90   :  { %802 = vmatpush.msra.mxu2 %v2631_v25  ;;  %822 = vmatpush.msra.mxu3 %v2635_v26  ;;  %v3785_v25 = vperm.slane %v2915_v8, 3 }
  0x91   :  { %763 = vmatpush.msra.mxu0 %v2637_v27  ;;  %783 = vmatpush.msra.mxu1 %v2641_v28  ;;  %v3777_v27 = vperm.slane %v2923_v13, 3  ;;  %v3776_v28 = vperm.slane %v2937_v21, 0  ;;  %v3169_v13 = vld [vmem:[#allocation4 + $0x28] sm:$0xff] }
  0x92   :  { %803 = vmatpush.msra.mxu2 %v2643_v29  ;;  %823 = vmatpush.msra.mxu3 %v2647_v30  ;;  %v127_v29 = vmul.f32 %v3788_v15, %v112_v9  ;;  %v128_v30 = vmul.f32 %v3787_v16, %v112_v9  ;;  %v3155_v16 = vld [vmem:[#allocation4 + $0x40] sm:$0xff]  ;;  %v3161_v15 = vld [vmem:[#allocation4 + $0x50] sm:$0xff] }
  0x93   :  { %764 = vmatpush.msra.mxu0 %v2656_v32  ;;  %784 = vmatpush.msra.mxu1 %v2658_v33  ;;  %3871 = vst [vmem:[#allocation38_spill] sm:$0xff] %v3155_v16 }
  0x94   :  { %804 = vmatpush.msra.mxu2 %v2662_v34  ;;  %824 = vmatpush.msra.mxu3 %v2664_v35  ;;  %v67_v12 = vpop.permute.xlu0 %66  ;;  %v129_v34 = vmul.f32 %v3786_v22, %v112_v9  ;;  %v3153_v22 = vld [vmem:[#allocation4 + $0x78] sm:$0xff]  ;;  %3873 = vst [vmem:[#allocation40_spill] sm:$0xff] %v3161_v15 }
  0x95   :  { %765 = vmatpush.msra.mxu0 %v2668_v36  ;;  %785 = vmatpush.msra.mxu1 %v2670_v37  ;;  %v84_v18 = vmul.f32 %v3783_v10, %v67_v12  ;;  %v85_v23 = vmul.f32 %v3782_v11, %v67_v12  ;;  %v86_v26 = vmul.f32 %v3781_v14, %v67_v12  ;;  %v3775_v36 = vperm.slane %v2937_v21, 1  ;;  %v3139_v14 = vld [vmem:[#allocation4 + $0x90] sm:$0xff]  ;;  %v3141_v11 = vld [vmem:[#allocation4 + $0x98] sm:$0xff] }
  0x96   :  { %805 = vmatpush.msra.mxu2 %v2674_v38  ;;  %825 = vmatpush.msra.mxu3 %v2676_v39  ;;  %v3774_v37 = vperm.slane %v2937_v21, 2  ;;  %v130_v38 = vmul.f32 %v3785_v25, %v112_v9  ;;  %v3149_v25 = vld [vmem:[#allocation4 + $0x70] sm:$0xff]  ;;  %3870 = vst [vmem:[#allocation37_spill] sm:$0xff] %v3153_v22 }
  0x97   :  { %766 = vmatpush.msra.mxu0 %v2680_v40  ;;  %786 = vmatpush.msra.mxu1 %v2684_v41  ;;  %v101_v33 = vadd.f32 %v3779_v20, %v84_v18  ;;  %v102_v35 = vadd.f32 %v3778_v24, %v85_v23  ;;  %v103_v39 = vadd.f32 %v3777_v27, %v86_v26  ;;  %v3773_v40 = vperm.slane %v2937_v21, 3  ;;  %v3133_v20 = vld [vmem:[#allocation4 + $0x80] sm:$0xff] }
  0x98   :  { %806 = vmatpush.msra.mxu2 %v2686_v42  ;;  %826 = vmatpush.msra.mxu3 %v2690_v43  ;;  %3869 = vst [vmem:[#allocation36_spill] sm:$0xff] %v3149_v25  ;;  %v3167_v21 = vld [vmem:[#allocation4 + $0x20] sm:$0xff] }
  0x99   :  { %767 = vmatpush.msra.mxu0 %v2692_v44  ;;  %787 = vmatpush.msra.mxu1 %v2696_v45  ;;  %v147_v41 = vpop.permute.xlu1 %146  ;;  %v136_v43 = vadd.f32 %v128_v30, %v101_v33  ;;  %v2970_v44 = vld [vmem:[%s3749_s1 + $0x3] ss:$4 sm:$0xf]  ;;  %v137_v45 = vadd.f32 %v129_v34, %v102_v35 }
  0x9a   :  { %807 = vmatpush.msra.mxu2 %v2698_v46  ;;  %827 = vmatpush.msra.mxu3 %v2702_v47  ;;  %3854 = vst [vmem:[#allocation18_spill] sm:$0xff] %v2970_v44  ;;  %v162_v46 = vmul.f32 %v3776_v28, %v147_v41  ;;  %v163_v47 = vmul.f32 %v3775_v36, %v147_v41  ;;  %v3771_v53 = vperm.slane %v2970_v44, 1  ;;  %v3115_v36 = vld [vmem:[#allocation4 + $0xd0] sm:$0xff]  ;;  %v3119_v28 = vld [vmem:[#allocation4 + $0xd8] sm:$0xff] }
  0x9b   :  { %768 = vmatpush.msra.mxu0 %v2706_v48  ;;  %788 = vmatpush.msra.mxu1 %v2710_v49  ;;  %v164_v48 = vmul.f32 %v3774_v37, %v147_v41  ;;  %v138_v49 = vadd.f32 %v130_v38, %v103_v39  ;;  %v3113_v37 = vld [vmem:[#allocation4 + $0xc8] sm:$0xff] }
  0x9c   :  { %808 = vmatpush.msra.mxu2 %v3846_v3  ;;  %828 = vmatpush.msra.mxu3 %v3847_v4 }
  0x9d   :  { %769 = vmatpush.msra.mxu0 %v3848_v5  ;;  %789 = vmatpush.msra.mxu1 %v2721_v54  ;;  %v3770_v54 = vperm.slane %v2970_v44, 2 }
  0x9e   :  { %809 = vmatpush.msra.mxu2 %v2723_v55  ;;  %829 = vmatpush.msra.mxu3 %v2727_v56  ;;  %v3769_v55 = vperm.slane %v2970_v44, 3 }
  0x9f   :  { %770 = vmatpush.msra.mxu0 %v2729_v57  ;;  %790 = vmatpush.msra.mxu1 %v3843_v31  ;;  %v171_v57 = vadd.f32 %v163_v47, %v136_v43 }
  0xa0   :  { %810 = vmatpush.msra.mxu2 %v2735_v59  ;;  %830 = vmatpush.msra.mxu3 %v3844_v50  ;;  %v165_v50 = vmul.f32 %v3773_v40, %v147_v41  ;;  %v3111_v40 = vld [vmem:[#allocation4 + $0xc0] sm:$0xff] }
  0xa1   :  { %771 = vmatpush.msra.mxu0 %v3845_v52  ;;  %791 = vmatpush.msra.mxu1 %v2745_v62  ;;  %v3772_v52 = vperm.slane %v2970_v44, 0  ;;  %v3163_v44 = vld [vmem:[#allocation4 + $0x58] sm:$0xff] }
  0xa2   :  { %811 = vmatpush.msra.mxu2 %v2747_v63  ;;  %831 = vmatpush.msra.mxu3 %v2751_v2  ;;  %v173_v59 = vadd.f32 %v165_v50, %v138_v49 }
  0xa3   :  { %772 = vmatpush.msra.mxu0 %v2759_v0  ;;  %792 = vmatpush.msra.mxu1 %v2761_v58  ;;  %v3784_v0 = vperm.slane %v2910_v7, 0  ;;  %v172_v58 = vadd.f32 %v164_v48, %v137_v45 }
  0xa4   :  { %812 = vmatpush.msra.mxu2 %v2765_v60  ;;  %832 = vmatpush.msra.mxu3 %v2767_v61  ;;  %v182_v60 = vpop.permute.xlu2 %181 }
  0xa5   :  { %2239 = vset.pattern.permute.xlu2 %v3849_v6  ;;  %v83_v17 = vmul.f32 %v3784_v0, %v67_v12  ;;  %v197_v61 = vmul.f32 %v3772_v52, %v182_v60  ;;  %v198_v62 = vmul.f32 %v3771_v53, %v182_v60  ;;  %v199_v63 = vmul.f32 %v3770_v54, %v182_v60  ;;  %v3107_v52 = vld [vmem:[#allocation4 + $0xf8] sm:$0xff]  ;;  %v3145_v0 = vld [vmem:[#allocation4 + $0x60] sm:$0xff] }
  0xa6   :  { %v200_v2 = vmul.f32 %v3769_v55, %v182_v60  ;;  %v3103_v55 = vld [vmem:[#allocation4 + $0xf0] sm:$0xff]  ;;  %3867 = vst [vmem:[#allocation34_spill] sm:$0xff] %v3145_v0 }
  0xa7   :  { %v100_v32 = vadd.f32 %v3780_v19, %v83_v17  ;;  %v206_v51 = vadd.f32 %v198_v62, %v171_v57  ;;  %v207_v31 = vadd.f32 %v199_v63, %v172_v58  ;;  %v3137_v19 = vld [vmem:[#allocation4 + $0x88] sm:$0xff] }
  0xa8   :  { %v208_v3 = vadd.f32 %v200_v2, %v173_v59 }
  0xa9   :  { %v135_v42 = vadd.f32 %v127_v29, %v100_v32  ;;  %214 = vst [vmem:[#allocation2] sm:$0xff] %v206_v51 }
  0xaa   :  { %215 = vst [vmem:[#allocation2 + $0x18] sm:$0xff] %v207_v31 }
  0xab   :  { %v170_v56 = vadd.f32 %v162_v46, %v135_v42  ;;  %216 = vst [vmem:[#allocation2 + $0x10] sm:$0xff] %v208_v3 }
  0xac   :  { %v235_v62 = vpop.permute.xlu2 %234 }
  0xad   :  { %v205_v1 = vadd.f32 %v197_v61, %v170_v56  ;;  %v230_v61 = vld [vmem:[%s3753_s5] sm:$0x3] }
  0xaf   :  { %213 = vst [vmem:[#allocation2 + $0x30] sm:$0xff] %v205_v1 }
  0xb0   :  { %v239_v6 = vld [vmem:[#allocation2] sm:$0x3]  ;;  %v687_v53 = vld [vmem:[#allocation2] sm:$0x30] }
  0xb1   :  { %v240_v26 = vld [vmem:[#allocation2 + $0x18] sm:$0x3] }
  0xb2   :  { %v241_v43 = vld [vmem:[#allocation2 + $0x10] sm:$0x3] }
  0xb6   :  { %v238_v4 = vld [vmem:[#allocation2 + $0x30] sm:$0x3]  ;;  %v686_v54 = vld [vmem:[#allocation2 + $0x30] sm:$0x30] }
 0x100   :  { %v323_v5 = vpop.f32.mrf.mxu0  ;;  %v343_v9 = vpop.f32.mrf.mxu1 }
 0x101   :  { %v386_v12 = vadd.f32 %v323_v5, %v238_v4  ;;  %v387_v17 = vadd.f32 %v343_v9, %v239_v6  ;;  %v237_v5 = vsel %vm228_vm0, %v230_v61, %v235_v62 }
 0x103   :  { %v2197_v18 = vmul.f32 -1.442695, %v386_v12  ;;  %v2198_v23 = vmul.f32 -1.442695, %v387_v17 }
 0x105   :  { %2243 = vpow2.f32 %v2197_v18 }
 0x106   :  { %2245 = vpow2.f32 %v2198_v23 }
 0x107   :  { %v363_v29 = vpop.f32.mrf.mxu2  ;;  %v383_v39 = vpop.f32.mrf.mxu3 }
 0x108   :  { %v388_v30 = vadd.f32 %v363_v29, %v240_v26  ;;  %v389_v46 = vadd.f32 %v383_v39, %v241_v43 }
 0x10a   :  { %v2199_v32 = vmul.f32 -1.442695, %v388_v30 }
 0x10b   :  { %v2244_v33 = vpop.eup %2243 }
 0x10c   :  { %v2246_v34 = vpop.eup %2245  ;;  %v399_v35 = vadd.f32 1.0, %v2244_v33  ;;  %2247 = vpow2.f32 %v2199_v32 }
 0x10d   :  { %v400_v38 = vadd.f32 1.0, %v2246_v34 }
 0x10e   :  { %2249 = vrcp.f32 %v399_v35  ;;  %v413_v56 = vand.u32 2147483648, %v399_v35  ;;  %v411_v59 = vand.u32 2147483647, %v399_v35  ;;  %vm407_vm3 = vweird.f32 %v399_v35 }
 0x10f   :  { %2251 = vrcp.f32 %v400_v38  ;;  %v428_v60 = vand.u32 2147483648, %v400_v38  ;;  %v426_v2 = vand.u32 2147483647, %v400_v38  ;;  %vm422_vm5 = vweird.f32 %v400_v38 }
 0x110   :  { %v414_v3 = vor.u32 1.1754944e-38, %v413_v56  ;;  %vm412_vm6 = vcmp.eq.f32.partialorder %v411_v59, 8.507059e+37  ;;  %v454_v56 = vld [vmem:[#allocation2 + $0x30] sm:$0xc] }
 0x111   :  { %v429_v9 = vor.u32 1.1754944e-38, %v428_v60  ;;  %vm427_vm8 = vcmp.eq.f32.partialorder %v426_v2, 8.507059e+37 }
 0x112   :  { %v2248_v41 = vpop.eup %2247 }
 0x113   :  { %v401_v42 = vadd.f32 1.0, %v2248_v41 }
 0x114   :  { %v2250_v45 = vpop.eup %2249 }
 0x115   :  { %v2252_v47 = vpop.eup %2251  ;;  %v403_v48 = vmul.f32 %v2250_v45, %v399_v35  ;;  %2253 = vrcp.f32 %v401_v42  ;;  %vm408_vm1 = vweird.f32 %v2250_v45  ;;  %v443_v35 = vand.u32 2147483648, %v401_v42 }
 0x116   :  { %v418_v49 = vmul.f32 %v2252_v47, %v400_v38  ;;  %2255 = vtanh.f32 %v389_v46  ;;  %vm423_vm2 = vweird.f32 %v2252_v47  ;;  %vm409_vm4 = vmor %vm407_vm3, %vm408_vm1  ;;  %vm437_vm10 = vweird.f32 %v401_v42 }
 0x117   :  { %v404_v50 = vsub.f32 1.0, %v403_v48  ;;  %vm424_vm7 = vmor %vm422_vm5, %vm423_vm2  ;;  %v441_v38 = vand.u32 2147483647, %v401_v42  ;;  %v444_v41 = vor.u32 1.1754944e-38, %v443_v35 }
 0x118   :  { %v419_v57 = vsub.f32 1.0, %v418_v49 }
 0x119   :  { %v405_v58 = vmul.f32 %v2250_v45, %v404_v50  ;;  %vm442_vm12 = vcmp.eq.f32.partialorder %v441_v38, 8.507059e+37 }
 0x11a   :  { %v420_v63 = vmul.f32 %v2252_v47, %v419_v57  ;;  %v455_v57 = vld [vmem:[#allocation2] sm:$0xc] }
 0x11b   :  { %v2254_v1 = vpop.eup %2253  ;;  %v406_v51 = vadd.f32 %v2250_v45, %v405_v58 }
 0x11c   :  { %v433_v31 = vmul.f32 %v2254_v1, %v401_v42  ;;  %v421_v4 = vadd.f32 %v2252_v47, %v420_v63  ;;  %v2256_v12 = vpop.eup %2255  ;;  %vm438_vm9 = vweird.f32 %v2254_v1  ;;  %v456_v63 = vld [vmem:[#allocation2 + $0x18] sm:$0xc] }
 0x11d   :  { %v410_v6 = vsel %vm409_vm4, %v2250_v45, %v406_v51  ;;  %vm439_vm11 = vmor %vm437_vm10, %vm438_vm9 }
 0x11e   :  { %v434_v17 = vsub.f32 1.0, %v433_v31  ;;  %v415_v18 = vsel %vm412_vm6, %v414_v3, %v410_v6  ;;  %v425_v23 = vsel %vm424_vm7, %v2252_v47, %v421_v4 }
 0x11f   :  { %v430_v26 = vsel %vm427_vm8, %v429_v9, %v425_v23  ;;  %v449_v29 = vmul.f32 %v2256_v12, %v415_v18 }
 0x120   :  { %v435_v30 = vmul.f32 %v2254_v1, %v434_v17  ;;  %v448_v32 = vmul.f32 %v430_v26, %v237_v5  ;;  %v457_v17 = vld [vmem:[#allocation2 + $0x10] sm:$0xc] }
 0x122   :  { %v2996_v33 = vadd.f32 %v449_v29, %v448_v32  ;;  %v436_v34 = vadd.f32 %v2254_v1, %v435_v30 }
 0x124   :  { %2257 = vtanh.f32 %v2996_v33  ;;  %v440_v39 = vsel %vm439_vm11, %v2254_v1, %v436_v34 }
 0x125   :  { %v445_v45 = vsel %vm442_vm12, %v444_v41, %v440_v39 }
 0x12a   :  { %v2258_v43 = vpop.eup %2257 }
 0x12b   :  { %v452_v46 = vmul.f32 %v2258_v43, %v445_v45 }
 0x12d   :  { %453 = vst [vmem:[#allocation3] sm:$0x3] %v452_v46  ;;  %538 = vmatmul.f32.vlgmr.msrb.gmra.mxu0 %v452_v46  ;;  %558 = vmatmul.f32.vlgmr.msrb.gmra.mxu1 %v452_v46 }
 0x12e   :  { %578 = vmatmul.f32.vlgmr.msrb.gmra.mxu2 %v452_v46  ;;  %598 = vmatmul.f32.vlgmr.msrb.gmra.mxu3 %v452_v46 }
 0x1aa   :  { %v539_v47 = vpop.f32.mrf.mxu0  ;;  %v559_v48 = vpop.f32.mrf.mxu1 }
 0x1ab   :  { %v606_v49 = vrot.slane %v539_v47, 6  ;;  %v607_v50 = vrot.slane %v559_v48, 6 }
 0x1ad   :  { %v614_v58 = vadd.f32 %v606_v49, %v454_v56  ;;  %v615_v42 = vadd.f32 %v607_v50, %v455_v57  ;;  %v677_v56 = vrot.slane %v2996_v33, 6 }
 0x1af   :  { %v2200_v59 = vmul.f32 -1.442695, %v614_v58  ;;  %v2201_v60 = vmul.f32 -1.442695, %v615_v42 }
 0x1b1   :  { %2259 = vpow2.f32 %v2200_v59  ;;  %v579_v61 = vpop.f32.mrf.mxu2  ;;  %v599_v5 = vpop.f32.mrf.mxu3 }
 0x1b2   :  { %2261 = vpow2.f32 %v2201_v60  ;;  %v608_v62 = vrot.slane %v579_v61, 6  ;;  %v609_v6 = vrot.slane %v599_v5, 6 }
 0x1b4   :  { %v616_v2 = vadd.f32 %v608_v62, %v456_v63  ;;  %v617_v23 = vadd.f32 %v609_v6, %v457_v17 }
 0x1b6   :  { %v2202_v1 = vmul.f32 -1.442695, %v616_v2 }
 0x1b7   :  { %v2260_v51 = vpop.eup %2259 }
 0x1b8   :  { %v2262_v31 = vpop.eup %2261  ;;  %v627_v3 = vadd.f32 1.0, %v2260_v51  ;;  %2263 = vpow2.f32 %v2202_v1 }
 0x1b9   :  { %v628_v4 = vadd.f32 1.0, %v2262_v31 }
 0x1ba   :  { %2265 = vrcp.f32 %v627_v3  ;;  %v641_v35 = vand.u32 2147483648, %v627_v3  ;;  %v639_v41 = vand.u32 2147483647, %v627_v3  ;;  %vm635_vm15 = vweird.f32 %v627_v3 }
 0x1bb   :  { %2267 = vrcp.f32 %v628_v4  ;;  %v656_v38 = vand.u32 2147483648, %v628_v4  ;;  %v654_v45 = vand.u32 2147483647, %v628_v4  ;;  %vm650_vm0 = vweird.f32 %v628_v4 }
 0x1bc   :  { %v642_v49 = vor.u32 1.1754944e-38, %v641_v35  ;;  %vm640_vm3 = vcmp.eq.f32.partialorder %v639_v41, 8.507059e+37  ;;  %v3023_v35 = vld [vmem:[#allocation4 + $0x1d8] sm:$0xff]  ;;  %v3031_v41 = vld [vmem:[#allocation4 + $0x1b0] sm:$0xff] }
 0x1bd   :  { %v657_v57 = vor.u32 1.1754944e-38, %v656_v38  ;;  %vm655_vm4 = vcmp.eq.f32.partialorder %v654_v45, 8.507059e+37  ;;  %v3027_v38 = vld [vmem:[#allocation4 + $0x1a0] sm:$0xff]  ;;  %3859 = vst [vmem:[#allocation26_spill] sm:$0xff] %v3031_v41 }
 0x1be   :  { %v2264_v9 = vpop.eup %2263  ;;  %v3039_v45 = vld [vmem:[#allocation4 + $0x180] sm:$0xff] }
 0x1bf   :  { %v629_v12 = vadd.f32 1.0, %v2264_v9  ;;  %3861 = vst [vmem:[#allocation28_spill] sm:$0xff] %v3039_v45 }
 0x1c0   :  { %v2266_v18 = vpop.eup %2265 }
 0x1c1   :  { %v2268_v26 = vpop.eup %2267  ;;  %v631_v29 = vmul.f32 %v2266_v18, %v627_v3  ;;  %2269 = vrcp.f32 %v629_v12  ;;  %vm636_vm13 = vweird.f32 %v2266_v18  ;;  %v671_v33 = vand.u32 2147483648, %v629_v12 }
 0x1c2   :  { %v646_v30 = vmul.f32 %v2268_v26, %v628_v4  ;;  %2271 = vtanh.f32 %v617_v23  ;;  %vm651_vm14 = vweird.f32 %v2268_v26  ;;  %vm637_vm1 = vmor %vm635_vm15, %vm636_vm13  ;;  %vm665_vm6 = vweird.f32 %v629_v12  ;;  %v3003_v23 = vld [vmem:[#allocation4 + $0x1e0] sm:$0xff] }
 0x1c3   :  { %v632_v32 = vsub.f32 1.0, %v631_v29  ;;  %vm652_vm2 = vmor %vm650_vm0, %vm651_vm14  ;;  %v669_v3 = vand.u32 2147483647, %v629_v12  ;;  %v672_v5 = vor.u32 1.1754944e-38, %v671_v33  ;;  %3855 = vst [vmem:[#allocation19_spill] sm:$0xff] %v3003_v23  ;;  %v3007_v29 = vld [vmem:[#allocation4 + $0x1f0] sm:$0xff]  ;;  %992 = vmatpush.msrb.mxu0 %v3003_v23 }
 0x1c4   :  { %v647_v34 = vsub.f32 1.0, %v646_v30  ;;  %3856 = vst [vmem:[#allocation23_spill] sm:$0xff] %v3007_v29  ;;  %1032 = vmatpush.msrb.mxu2 %v3007_v29  ;;  %v3015_v30 = vld [vmem:[#allocation4 + $0x1c0] sm:$0xff]  ;;  %v3091_v33 = vld [vmem:[#allocation4 + $0x110] sm:$0xff] }
 0x1c5   :  { %v633_v39 = vmul.f32 %v2266_v18, %v632_v32  ;;  %vm670_vm8 = vcmp.eq.f32.partialorder %v669_v3, 8.507059e+37  ;;  %v3017_v32 = vld [vmem:[#allocation4 + $0x1c8] sm:$0xff]  ;;  %993 = vmatpush.msrb.mxu0 %v3015_v30 }
 0x1c6   :  { %v648_v43 = vmul.f32 %v2268_v26, %v647_v34  ;;  %v3019_v34 = vld [vmem:[#allocation4 + $0x1d0] sm:$0xff] }
 0x1c7   :  { %v2270_v46 = vpop.eup %2269  ;;  %v634_v47 = vadd.f32 %v2266_v18, %v633_v39  ;;  %1033 = vmatpush.msrb.mxu2 %v3019_v34  ;;  %v3029_v39 = vld [vmem:[#allocation4 + $0x1a8] sm:$0xff]  ;;  %994 = vmatpush.msrb.mxu0 %v3027_v38 }
 0x1c8   :  { %v661_v48 = vmul.f32 %v2270_v46, %v629_v12  ;;  %v649_v50 = vadd.f32 %v2268_v26, %v648_v43  ;;  %v2272_v42 = vpop.eup %2271  ;;  %vm666_vm5 = vweird.f32 %v2270_v46  ;;  %v3011_v12 = vld [vmem:[#allocation4 + $0x1f8] sm:$0xff]  ;;  %3858 = vst [vmem:[#allocation25_spill] sm:$0xff] %v3029_v39 }
 0x1c9   :  { %v638_v58 = vsel %vm637_vm1, %v2266_v18, %v634_v47  ;;  %vm667_vm7 = vmor %vm665_vm6, %vm666_vm5  ;;  %3857 = vst [vmem:[#allocation24_spill] sm:$0xff] %v3011_v12  ;;  %1052 = vmatpush.msrb.mxu3 %v3011_v12  ;;  %v3035_v43 = vld [vmem:[#allocation4 + $0x1b8] sm:$0xff]  ;;  %1034 = vmatpush.msrb.mxu2 %v3031_v41  ;;  %v3043_v47 = vld [vmem:[#allocation4 + $0x190] sm:$0xff] }
 0x1ca   :  { %v662_v59 = vsub.f32 1.0, %v661_v48  ;;  %v643_v60 = vsel %vm640_vm3, %v642_v49, %v638_v58  ;;  %v653_v61 = vsel %vm652_vm2, %v2268_v26, %v649_v50  ;;  %v3005_v26 = vld [vmem:[#allocation4 + $0x1e8] sm:$0xff]  ;;  %3860 = vst [vmem:[#allocation27_spill] sm:$0xff] %v3035_v43  ;;  %995 = vmatpush.msrb.mxu0 %v3039_v45  ;;  %v3047_v48 = vld [vmem:[#allocation4 + $0x198] sm:$0xff]  ;;  %v3051_v49 = vld [vmem:[#allocation4 + $0x160] sm:$0xff] }
 0x1cb   :  { %v658_v62 = vsel %vm655_vm4, %v657_v57, %v653_v61  ;;  %v680_v63 = vmul.f32 %v2272_v42, %v643_v60  ;;  %1012 = vmatpush.msrb.mxu1 %v3005_v26  ;;  %1053 = vmatpush.msrb.mxu3 %v3023_v35  ;;  %v3053_v50 = vld [vmem:[#allocation4 + $0x168] sm:$0xff]  ;;  %v3059_v57 = vld [vmem:[#allocation4 + $0x178] sm:$0xff]  ;;  %v3063_v58 = vld [vmem:[#allocation4 + $0x140] sm:$0xff] }
 0x1cc   :  { %v679_v2 = vmul.f32 %v677_v56, %v658_v62  ;;  %v663_v1 = vmul.f32 %v2270_v46, %v662_v59  ;;  %1035 = vmatpush.msrb.mxu2 %v3043_v47  ;;  %3862 = vst [vmem:[#allocation29_spill] sm:$0xff] %v3053_v50  ;;  %v3055_v56 = vld [vmem:[#allocation4 + $0x170] sm:$0xff]  ;;  %996 = vmatpush.msrb.mxu0 %v3051_v49  ;;  %v3065_v42 = vld [vmem:[#allocation4 + $0x148] sm:$0xff]  ;;  %v3071_v60 = vld [vmem:[#allocation4 + $0x158] sm:$0xff] }
 0x1cd   :  { %1013 = vmatpush.msrb.mxu1 %v3017_v32  ;;  %1054 = vmatpush.msrb.mxu3 %v3035_v43  ;;  %3863 = vst [vmem:[#allocation30_spill] sm:$0xff] %v3063_v58  ;;  %v3067_v59 = vld [vmem:[#allocation4 + $0x150] sm:$0xff]  ;;  %v3075_v61 = vld [vmem:[#allocation4 + $0x120] sm:$0xff]  ;;  %v3077_v62 = vld [vmem:[#allocation4 + $0x128] sm:$0xff] }
 0x1ce   :  { %v3000_v51 = vadd.f32 %v680_v63, %v679_v2  ;;  %v664_v31 = vadd.f32 %v2270_v46, %v663_v1  ;;  %1036 = vmatpush.msrb.mxu2 %v3055_v56  ;;  %3864 = vst [vmem:[#allocation31_spill] sm:$0xff] %v3065_v42  ;;  %997 = vmatpush.msrb.mxu0 %v3063_v58  ;;  %v3079_v63 = vld [vmem:[#allocation4 + $0x130] sm:$0xff]  ;;  %v3083_v2 = vld [vmem:[#allocation4 + $0x138] sm:$0xff]  ;;  %v3087_v1 = vld [vmem:[#allocation4 + $0x100] sm:$0xff] }
 0x1cf   :  { %1014 = vmatpush.msrb.mxu1 %v3029_v39  ;;  %1055 = vmatpush.msrb.mxu3 %v3047_v48  ;;  %3865 = vst [vmem:[#allocation32_spill] sm:$0xff] %v3067_v59 }
 0x1d0   :  { %2273 = vtanh.f32 %v3000_v51  ;;  %v668_v4 = vsel %vm667_vm7, %v2270_v46, %v664_v31  ;;  %v3041_v46 = vld [vmem:[#allocation4 + $0x188] sm:$0xff]  ;;  %3866 = vst [vmem:[#allocation33_spill] sm:$0xff] %v3071_v60  ;;  %1037 = vmatpush.msrb.mxu2 %v3067_v59  ;;  %998 = vmatpush.msrb.mxu0 %v3075_v61 }
 0x1d1   :  { %v673_v9 = vsel %vm670_vm8, %v672_v5, %v668_v4  ;;  %1015 = vmatpush.msrb.mxu1 %v3041_v46  ;;  %1056 = vmatpush.msrb.mxu3 %v3059_v57  ;;  %v3089_v31 = vld [vmem:[#allocation4 + $0x108] sm:$0xff]  ;;  %v3095_v5 = vld [vmem:[#allocation4 + $0x118] sm:$0xff] }
 0x1d2   :  { %1038 = vmatpush.msrb.mxu2 %v3079_v63  ;;  %999 = vmatpush.msrb.mxu0 %v3087_v1 }
 0x1d3   :  { %1016 = vmatpush.msrb.mxu1 %v3053_v50  ;;  %1057 = vmatpush.msrb.mxu3 %v3071_v60 }
 0x1d4   :  { %1039 = vmatpush.msrb.mxu2 %v3091_v33 }
 0x1d5   :  { %1017 = vmatpush.msrb.mxu1 %v3065_v42  ;;  %1058 = vmatpush.msrb.mxu3 %v3083_v2 }
 0x1d6   :  { %v2274_v6 = vpop.eup %2273  ;;  %1040 = vmatpush.msrb.mxu2 %v3103_v55 }
 0x1d7   :  { %v683_v17 = vmul.f32 %v2274_v6, %v673_v9  ;;  %1018 = vmatpush.msrb.mxu1 %v3077_v62  ;;  %1059 = vmatpush.msrb.mxu3 %v3095_v5 }
 0x1d8   :  { %1041 = vmatpush.msrb.mxu2 %v3115_v36 }
 0x1d9   :  { %685 = vst [vmem:[#allocation3] sm:$0xc] %v683_v17  ;;  %v755_v18 = vrot.slane %v683_v17, 2  ;;  %1019 = vmatpush.msrb.mxu1 %v3089_v31  ;;  %v3099_v17 = vld [vmem:[#allocation4 + $0xe0] sm:$0xff]  ;;  %1060 = vmatpush.msrb.mxu3 %v3107_v52 }
 0x1da   :  { %1000 = vmatpush.msrb.mxu0 %v3099_v17 }
 0x1db   :  { %773 = vmatmul.f32.vlgmr.msra.gmra.mxu0 %v755_v18  ;;  %793 = vmatmul.f32.vlgmr.msra.gmra.mxu1 %v755_v18 }
 0x1dc   :  { %813 = vmatmul.f32.vlgmr.msra.gmra.mxu2 %v755_v18  ;;  %833 = vmatmul.f32.vlgmr.msra.gmra.mxu3 %v755_v18  ;;  %v3101_v18 = vld [vmem:[#allocation4 + $0xe8] sm:$0xff] }
 0x1dd   :  { %1020 = vmatpush.msrb.mxu1 %v3101_v18  ;;  %1001 = vmatpush.msrb.mxu0 %v3111_v40 }
 0x1de   :  { %1061 = vmatpush.msrb.mxu3 %v3119_v28 }
 0x1df   :  { %1021 = vmatpush.msrb.mxu1 %v3113_v37 }
 0x258   :  { %v774_v3 = vpop.f32.mrf.mxu0  ;;  %v794_v4 = vpop.f32.mrf.mxu1 }
 0x259   :  { %v841_v6 = vrot.slane %v774_v3, 4  ;;  %v842_v9 = vrot.slane %v794_v4, 4 }
 0x25b   :  { %v849_v3 = vadd.f32 %v841_v6, %v686_v54  ;;  %v850_v4 = vadd.f32 %v842_v9, %v687_v53  ;;  %v3123_v53 = vld [vmem:[#allocation4 + $0xa0] sm:$0xff]  ;;  %v3125_v54 = vld [vmem:[#allocation4 + $0xa8] sm:$0xff]  ;;  %v3129_v6 = vld [vmem:[#allocation4 + $0xb0] sm:$0xff] }
 0x25c   :  { %1002 = vmatpush.msrb.mxu0 %v3123_v53  ;;  %1022 = vmatpush.msrb.mxu1 %v3125_v54  ;;  %v3131_v9 = vld [vmem:[#allocation4 + $0xb8] sm:$0xff] }
 0x25d   :  { %v2203_v27 = vmul.f32 -1.442695, %v849_v3  ;;  %v2204_v24 = vmul.f32 -1.442695, %v850_v4  ;;  %v688_v3 = vld [vmem:[#allocation2 + $0x18] sm:$0x30]  ;;  %1042 = vmatpush.msrb.mxu2 %v3129_v6  ;;  %1062 = vmatpush.msrb.mxu3 %v3131_v9 }
 0x25e   :  { %1003 = vmatpush.msrb.mxu0 %v3133_v20  ;;  %1023 = vmatpush.msrb.mxu1 %v3137_v19 }
 0x25f   :  { %2275 = vpow2.f32 %v2203_v27  ;;  %v814_v4 = vpop.f32.mrf.mxu2  ;;  %v3147_v27 = vld [vmem:[#allocation4 + $0x68] sm:$0xff]  ;;  %1043 = vmatpush.msrb.mxu2 %v3139_v14  ;;  %1063 = vmatpush.msrb.mxu3 %v3141_v11 }
 0x260   :  { %2277 = vpow2.f32 %v2204_v24  ;;  %v843_v10 = vrot.slane %v814_v4, 4  ;;  %3868 = vst [vmem:[#allocation35_spill] sm:$0xff] %v3147_v27  ;;  %v3157_v24 = vld [vmem:[#allocation4 + $0x48] sm:$0xff]  ;;  %1004 = vmatpush.msrb.mxu0 %v3145_v0  ;;  %1024 = vmatpush.msrb.mxu1 %v3147_v27 }
 0x261   :  { %3872 = vst [vmem:[#allocation39_spill] sm:$0xff] %v3157_v24  ;;  %1044 = vmatpush.msrb.mxu2 %v3149_v25  ;;  %1064 = vmatpush.msrb.mxu3 %v3153_v22  ;;  %v3179_v25 = vld [vmem:[#allocation4] sm:$0xff]  ;;  %v3181_v22 = vld [vmem:[#allocation4 + $0x8] sm:$0xff] }
 0x262   :  { %v851_v4 = vadd.f32 %v843_v10, %v688_v3  ;;  %1005 = vmatpush.msrb.mxu0 %v3155_v16  ;;  %1025 = vmatpush.msrb.mxu1 %v3157_v24  ;;  %v3173_v10 = vld [vmem:[#allocation4 + $0x30] sm:$0xff]  ;;  %v3175_v3 = vld [vmem:[#allocation4 + $0x38] sm:$0xff]  ;;  %3874 = vst [vmem:[#allocation41_spill] sm:$0xff] %v3181_v22 }
 0x263   :  { %1045 = vmatpush.msrb.mxu2 %v3161_v15  ;;  %1065 = vmatpush.msrb.mxu3 %v3163_v44  ;;  %v3189_v24 = vld [vmem:[#allocation4 + $0x18] sm:$0xff]  ;;  %v834_v15 = vpop.f32.mrf.mxu3 }
 0x264   :  { %v2205_v7 = vmul.f32 -1.442695, %v851_v4  ;;  %1006 = vmatpush.msrb.mxu0 %v3167_v21  ;;  %1026 = vmatpush.msrb.mxu1 %v3169_v13  ;;  %v3187_v4 = vld [vmem:[#allocation4 + $0x10] sm:$0xff] }
 0x265   :  { %v2276_v8 = vpop.eup %2275  ;;  %1046 = vmatpush.msrb.mxu2 %v3173_v10  ;;  %1066 = vmatpush.msrb.mxu3 %v3175_v3 }
 0x266   :  { %v2278_v27 = vpop.eup %2277  ;;  %v3183_v0 = vadd.f32 1.0, %v2276_v8  ;;  %2279 = vpow2.f32 %v2205_v7  ;;  %1007 = vmatpush.msrb.mxu0 %v3179_v25  ;;  %1027 = vmatpush.msrb.mxu1 %v3181_v22  ;;  %v844_v7 = vrot.slane %v834_v15, 4  ;;  %v689_v22 = vld [vmem:[#allocation2 + $0x10] sm:$0x30] }
 0x267   :  { %v3191_v16 = vadd.f32 1.0, %v2278_v27  ;;  %1047 = vmatpush.msrb.mxu2 %v3187_v4  ;;  %1067 = vmatpush.msrb.mxu3 %v3189_v24 }
 0x268   :  { %2281 = vrcp.f32 %v3183_v0  ;;  %1227 = vmatpush.msra.mxu0 %v3003_v23  ;;  %1247 = vmatpush.msra.mxu1 %v3005_v26  ;;  %v852_v23 = vadd.f32 %v844_v7, %v689_v22  ;;  %vm870_vm11 = vweird.f32 %v3183_v0 }
 0x269   :  { %2283 = vrcp.f32 %v3191_v16  ;;  %1267 = vmatpush.msra.mxu2 %v3007_v29  ;;  %1287 = vmatpush.msra.mxu3 %v3011_v12  ;;  %vm885_vm12 = vweird.f32 %v3191_v16 }
 0x26a   :  { %1228 = vmatpush.msra.mxu0 %v3015_v30  ;;  %1248 = vmatpush.msra.mxu1 %v3017_v32 }
 0x26b   :  { %1268 = vmatpush.msra.mxu2 %v3019_v34  ;;  %1288 = vmatpush.msra.mxu3 %v3023_v35 }
 0x26c   :  { %v2280_v8 = vpop.eup %2279  ;;  %1229 = vmatpush.msra.mxu0 %v3027_v38  ;;  %1249 = vmatpush.msra.mxu1 %v3029_v39  ;;  %v876_v39 = vand.u32 2147483648, %v3183_v0 }
 0x26d   :  { %v3207_v27 = vadd.f32 1.0, %v2280_v8  ;;  %1269 = vmatpush.msra.mxu2 %v3031_v41  ;;  %1289 = vmatpush.msra.mxu3 %v3035_v43  ;;  %v891_v43 = vand.u32 2147483648, %v3191_v16 }
 0x26e   :  { %v2282_v15 = vpop.eup %2281  ;;  %1230 = vmatpush.msra.mxu0 %v3039_v45  ;;  %1250 = vmatpush.msra.mxu1 %v3041_v46  ;;  %v874_v45 = vand.u32 2147483647, %v3183_v0 }
 0x26f   :  { %v2284_v29 = vpop.eup %2283  ;;  %v866_v12 = vmul.f32 %v2282_v15, %v3183_v0  ;;  %2285 = vrcp.f32 %v3207_v27  ;;  %1270 = vmatpush.msra.mxu2 %v3043_v47  ;;  %1290 = vmatpush.msra.mxu3 %v3047_v48  ;;  %vm871_vm9 = vweird.f32 %v2282_v15  ;;  %v892_v0 = vor.u32 1.1754944e-38, %v891_v43 }
 0x270   :  { %v881_v8 = vmul.f32 %v2284_v29, %v3191_v16  ;;  %2287 = vtanh.f32 %v852_v23  ;;  %1231 = vmatpush.msra.mxu0 %v3051_v49  ;;  %1251 = vmatpush.msra.mxu1 %v3053_v50  ;;  %vm886_vm10 = vweird.f32 %v2284_v29  ;;  %vm872_vm13 = vmor %vm870_vm11, %vm871_vm9  ;;  %vm875_vm15 = vcmp.eq.f32.partialorder %v874_v45, 8.507059e+37 }
 0x271   :  { %v867_v22 = vsub.f32 1.0, %v866_v12  ;;  %1271 = vmatpush.msra.mxu2 %v3055_v56  ;;  %1291 = vmatpush.msra.mxu3 %v3059_v57  ;;  %vm887_vm14 = vmor %vm885_vm12, %vm886_vm10  ;;  %vm900_vm2 = vweird.f32 %v3207_v27 }
 0x272   :  { %v882_v7 = vsub.f32 1.0, %v881_v8  ;;  %v889_v8 = vand.u32 2147483647, %v3191_v16  ;;  %1232 = vmatpush.msra.mxu0 %v3063_v58  ;;  %1252 = vmatpush.msra.mxu1 %v3065_v42 }
 0x273   :  { %v868_v41 = vmul.f32 %v2282_v15, %v867_v22  ;;  %1272 = vmatpush.msra.mxu2 %v3067_v59  ;;  %1292 = vmatpush.msra.mxu3 %v3071_v60 }
 0x274   :  { %v883_v12 = vmul.f32 %v2284_v29, %v882_v7  ;;  %v877_v7 = vor.u32 1.1754944e-38, %v876_v39  ;;  %1233 = vmatpush.msra.mxu0 %v3075_v61  ;;  %1253 = vmatpush.msra.mxu1 %v3077_v62  ;;  %vm890_vm0 = vcmp.eq.f32.partialorder %v889_v8, 8.507059e+37  ;;  %v3876_v8 = vld [vmem:[#allocation35_spill] sm:$0xff] }
 0x275   :  { %v3232_v23 = vpop.eup %2285  ;;  %v869_v50 = vadd.f32 %v2282_v15, %v868_v41  ;;  %v912_v41 = vrot.slane %v3000_v51, 6  ;;  %1273 = vmatpush.msra.mxu2 %v3079_v63  ;;  %1293 = vmatpush.msra.mxu3 %v3083_v2 }
 0x276   :  { %v896_v22 = vmul.f32 %v3232_v23, %v3207_v27  ;;  %v884_v58 = vadd.f32 %v2284_v29, %v883_v12  ;;  %v2288_v16 = vpop.eup %2287  ;;  %1234 = vmatpush.msra.mxu0 %v3087_v1  ;;  %1254 = vmatpush.msra.mxu1 %v3089_v31  ;;  %vm901_vm1 = vweird.f32 %v3232_v23 }
 0x277   :  { %v873_v59 = vsel %vm872_vm13, %v2282_v15, %v869_v50  ;;  %1274 = vmatpush.msra.mxu2 %v3091_v33  ;;  %1294 = vmatpush.msra.mxu3 %v3095_v5  ;;  %vm902_vm3 = vmor %vm900_vm2, %vm901_vm1  ;;  %v3875_v15 = vld [vmem:[#allocation34_spill] sm:$0xff] }
 0x278   :  { %v897_v60 = vsub.f32 1.0, %v896_v22  ;;  %v878_v42 = vsel %vm875_vm15, %v877_v7, %v873_v59  ;;  %v888_v39 = vsel %vm887_vm14, %v2284_v29, %v884_v58  ;;  %1235 = vmatpush.msra.mxu0 %v3099_v17  ;;  %1255 = vmatpush.msra.mxu1 %v3101_v18  ;;  %v906_v58 = vand.u32 2147483648, %v3207_v27  ;;  %v3878_v22 = vld [vmem:[#allocation37_spill] sm:$0xff] }
 0x279   :  { %v893_v12 = vsel %vm890_vm0, %v892_v0, %v888_v39  ;;  %v915_v51 = vmul.f32 %v2288_v16, %v878_v42  ;;  %1275 = vmatpush.msra.mxu2 %v3103_v55  ;;  %1295 = vmatpush.msra.mxu3 %v3107_v52  ;;  %v904_v42 = vand.u32 2147483647, %v3207_v27  ;;  %v3877_v27 = vld [vmem:[#allocation36_spill] sm:$0xff]  ;;  %v3879_v0 = vld [vmem:[#allocation38_spill] sm:$0xff]  ;;  %v3880_v16 = vld [vmem:[#allocation39_spill] sm:$0xff] }
 0x27a   :  { %v914_v43 = vmul.f32 %v912_v41, %v893_v12  ;;  %v898_v45 = vmul.f32 %v3232_v23, %v897_v60  ;;  %1236 = vmatpush.msra.mxu0 %v3111_v40  ;;  %1256 = vmatpush.msra.mxu1 %v3113_v37  ;;  %v907_v60 = vor.u32 1.1754944e-38, %v906_v58  ;;  %v3881_v39 = vld [vmem:[#allocation40_spill] sm:$0xff]  ;;  %v3886_v58 = vld [vmem:[#allocation25_spill] sm:$0xff] }
 0x27b   :  { %1276 = vmatpush.msra.mxu2 %v3115_v36  ;;  %1296 = vmatpush.msra.mxu3 %v3119_v28  ;;  %vm905_vm4 = vcmp.eq.f32.partialorder %v904_v42, 8.507059e+37  ;;  %v3887_v42 = vld [vmem:[#allocation26_spill] sm:$0xff] }
 0x27c   :  { %v3256_v29 = vadd.f32 %v915_v51, %v914_v43  ;;  %v899_v50 = vadd.f32 %v3232_v23, %v898_v45  ;;  %1237 = vmatpush.msra.mxu0 %v3123_v53  ;;  %1257 = vmatpush.msra.mxu1 %v3125_v54  ;;  %v3882_v51 = vld [vmem:[#allocation41_spill] sm:$0xff]  ;;  %v3883_v43 = vld [vmem:[#allocation19_spill] sm:$0xff] }
 0x27d   :  { %1277 = vmatpush.msra.mxu2 %v3129_v6  ;;  %1297 = vmatpush.msra.mxu3 %v3131_v9  ;;  %v3884_v45 = vld [vmem:[#allocation23_spill] sm:$0xff] }
 0x27e   :  { %2289 = vtanh.f32 %v3256_v29  ;;  %1238 = vmatpush.msra.mxu0 %v3133_v20  ;;  %1258 = vmatpush.msra.mxu1 %v3137_v19  ;;  %v903_v59 = vsel %vm902_vm3, %v3232_v23, %v899_v50  ;;  %v3885_v50 = vld [vmem:[#allocation24_spill] sm:$0xff] }
 0x27f   :  { %1278 = vmatpush.msra.mxu2 %v3139_v14  ;;  %1298 = vmatpush.msra.mxu3 %v3141_v11  ;;  %v908_v41 = vsel %vm905_vm4, %v907_v60, %v903_v59  ;;  %v3888_v59 = vld [vmem:[#allocation27_spill] sm:$0xff] }
 0x280   :  { %1239 = vmatpush.msra.mxu0 %v3875_v15  ;;  %1259 = vmatpush.msra.mxu1 %v3876_v8 }
 0x281   :  { %1279 = vmatpush.msra.mxu2 %v3877_v27  ;;  %1299 = vmatpush.msra.mxu3 %v3878_v22 }
 0x282   :  { %1240 = vmatpush.msra.mxu0 %v3879_v0  ;;  %1260 = vmatpush.msra.mxu1 %v3880_v16 }
 0x283   :  { %1280 = vmatpush.msra.mxu2 %v3881_v39  ;;  %1300 = vmatpush.msra.mxu3 %v3163_v44 }
 0x284   :  { %v2290_v7 = vpop.eup %2289  ;;  %1241 = vmatpush.msra.mxu0 %v3167_v21  ;;  %1261 = vmatpush.msra.mxu1 %v3169_v13 }
 0x285   :  { %v918_v23 = vmul.f32 %v2290_v7, %v908_v41  ;;  %1281 = vmatpush.msra.mxu2 %v3173_v10  ;;  %1301 = vmatpush.msra.mxu3 %v3175_v3  ;;  %v1147_v41 = vrot.slane %v3256_v29, 6 }
 0x286   :  { %1242 = vmatpush.msra.mxu0 %v3179_v25  ;;  %1262 = vmatpush.msra.mxu1 %v3882_v51 }
 0x287   :  { %920 = vst [vmem:[#allocation3] sm:$0x30] %v918_v23  ;;  %v990_v12 = vrot.slane %v918_v23, 4  ;;  %1282 = vmatpush.msra.mxu2 %v3187_v4  ;;  %1302 = vmatpush.msra.mxu3 %v3189_v24 }
 0x289   :  { %1008 = vmatmul.f32.vlgmr.msrb.gmra.mxu0 %v990_v12  ;;  %1028 = vmatmul.f32.vlgmr.msrb.gmra.mxu1 %v990_v12 }
 0x28a   :  { %1048 = vmatmul.f32.vlgmr.msrb.gmra.mxu2 %v990_v12  ;;  %1068 = vmatmul.f32.vlgmr.msrb.gmra.mxu3 %v990_v12 }
 0x28b   :  { %1447 = vmatpush.msrb.mxu0 %v3883_v43  ;;  %1467 = vmatpush.msrb.mxu1 %v3005_v26  ;;  %v3889_v26 = vld [vmem:[#allocation28_spill] sm:$0xff] }
 0x28c   :  { %1487 = vmatpush.msrb.mxu2 %v3884_v45  ;;  %1507 = vmatpush.msrb.mxu3 %v3885_v50 }
 0x28d   :  { %1448 = vmatpush.msrb.mxu0 %v3015_v30  ;;  %1468 = vmatpush.msrb.mxu1 %v3017_v32  ;;  %v3890_v30 = vld [vmem:[#allocation29_spill] sm:$0xff]  ;;  %v3891_v32 = vld [vmem:[#allocation30_spill] sm:$0xff] }
 0x28e   :  { %1488 = vmatpush.msrb.mxu2 %v3019_v34  ;;  %1508 = vmatpush.msrb.mxu3 %v3023_v35  ;;  %v3892_v34 = vld [vmem:[#allocation31_spill] sm:$0xff]  ;;  %v3893_v35 = vld [vmem:[#allocation32_spill] sm:$0xff] }
 0x28f   :  { %1449 = vmatpush.msrb.mxu0 %v3027_v38  ;;  %1469 = vmatpush.msrb.mxu1 %v3886_v58  ;;  %v3894_v38 = vld [vmem:[#allocation33_spill] sm:$0xff] }
 0x290   :  { %1489 = vmatpush.msrb.mxu2 %v3887_v42  ;;  %1509 = vmatpush.msrb.mxu3 %v3888_v59 }
 0x291   :  { %1450 = vmatpush.msrb.mxu0 %v3889_v26  ;;  %1470 = vmatpush.msrb.mxu1 %v3041_v46 }
 0x292   :  { %1490 = vmatpush.msrb.mxu2 %v3043_v47  ;;  %1510 = vmatpush.msrb.mxu3 %v3047_v48  ;;  %v3895_v48 = vmov 3  }
 0x293   :  { %1451 = vmatpush.msrb.mxu0 %v3051_v49  ;;  %1471 = vmatpush.msrb.mxu1 %v3890_v30 }
 0x294   :  { %1491 = vmatpush.msrb.mxu2 %v3055_v56  ;;  %1511 = vmatpush.msrb.mxu3 %v3059_v57 }
 0x295   :  { %1452 = vmatpush.msrb.mxu0 %v3891_v32  ;;  %1472 = vmatpush.msrb.mxu1 %v3892_v34 }
 0x296   :  { %1492 = vmatpush.msrb.mxu2 %v3893_v35  ;;  %1512 = vmatpush.msrb.mxu3 %v3894_v38 }
 0x297   :  { %1453 = vmatpush.msrb.mxu0 %v3075_v61  ;;  %1473 = vmatpush.msrb.mxu1 %v3077_v62 }
 0x298   :  { %1493 = vmatpush.msrb.mxu2 %v3079_v63  ;;  %1513 = vmatpush.msrb.mxu3 %v3083_v2 }
 0x299   :  { %1454 = vmatpush.msrb.mxu0 %v3087_v1  ;;  %1474 = vmatpush.msrb.mxu1 %v3089_v31  ;;  %v924_v31 = vld [vmem:[#allocation2 + $0x10] sm:$0xc0] }
 0x29a   :  { %1494 = vmatpush.msrb.mxu2 %v3091_v33  ;;  %1514 = vmatpush.msrb.mxu3 %v3095_v5 }
 0x29b   :  { %1455 = vmatpush.msrb.mxu0 %v3099_v17  ;;  %1475 = vmatpush.msrb.mxu1 %v3101_v18 }
 0x29c   :  { %1495 = vmatpush.msrb.mxu2 %v3103_v55  ;;  %1515 = vmatpush.msrb.mxu3 %v3107_v52  ;;  %v923_v55 = vld [vmem:[#allocation2 + $0x18] sm:$0xc0] }
 0x29d   :  { %1456 = vmatpush.msrb.mxu0 %v3111_v40  ;;  %1476 = vmatpush.msrb.mxu1 %v3113_v37  ;;  %v62_v37 = vld [vmem:[%s3748_s0 + $0x8] sm:$0xff]  ;;  %s2509_s0 = smov [#allocation9]  }
 0x29e   :  { %1496 = vmatpush.msrb.mxu2 %v3115_v36  ;;  %1516 = vmatpush.msrb.mxu3 %v3119_v28  ;;  %v921_v28 = vld [vmem:[#allocation2 + $0x30] sm:$0xc0]  ;;  %s2142_s10 = sshll.u32 %s2509_s0, 4  ;;  %s2143_s10 = int_to_ptr.vmem [resolvable:$true] %s2142_s10 }
 0x29f   :  { %1457 = vmatpush.msrb.mxu0 %v3123_v53  ;;  %1477 = vmatpush.msrb.mxu1 %v3125_v54 }
 0x2a0   :  { %1497 = vmatpush.msrb.mxu2 %v3129_v6  ;;  %1517 = vmatpush.msrb.mxu3 %v3131_v9 }
 0x2a1   :  { %1458 = vmatpush.msrb.mxu0 %v3133_v20  ;;  %1478 = vmatpush.msrb.mxu1 %v3137_v19 }
 0x2a2   :  { %1498 = vmatpush.msrb.mxu2 %v3139_v14  ;;  %1518 = vmatpush.msrb.mxu3 %v3141_v11 }
 0x2a3   :  { %1459 = vmatpush.msrb.mxu0 %v3875_v15  ;;  %1479 = vmatpush.msrb.mxu1 %v3876_v8 }
 0x2a4   :  { %1499 = vmatpush.msrb.mxu2 %v3877_v27  ;;  %1519 = vmatpush.msrb.mxu3 %v3878_v22 }
 0x2a5   :  { %1460 = vmatpush.msrb.mxu0 %v3879_v0  ;;  %1480 = vmatpush.msrb.mxu1 %v3880_v16 }
 0x2a6   :  { %1500 = vmatpush.msrb.mxu2 %v3881_v39  ;;  %1520 = vmatpush.msrb.mxu3 %v3163_v44 }
 0x2a7   :  { %1461 = vmatpush.msrb.mxu0 %v3167_v21  ;;  %1481 = vmatpush.msrb.mxu1 %v3169_v13  ;;  %v922_v21 = vld [vmem:[#allocation2] sm:$0xc0] }
 0x2a8   :  { %1501 = vmatpush.msrb.mxu2 %v3173_v10  ;;  %1521 = vmatpush.msrb.mxu3 %v3175_v3 }
 0x2a9   :  { %1462 = vmatpush.msrb.mxu0 %v3179_v25  ;;  %1482 = vmatpush.msrb.mxu1 %v3882_v51 }
 0x2aa   :  { %1502 = vmatpush.msrb.mxu2 %v3187_v4  ;;  %1522 = vmatpush.msrb.mxu3 %v3189_v24 }
 0x2ab   :  { %71 = vperm.xlu1 %2238, %v62_v37   ;;  %150 = vperm.xlu0 %2240, %v62_v37  }
 0x2ac   :  { %115 = vperm.xlu2 %2239, %v62_v37  }
 0x2b3   :  { %2241 = vset.pattern.permute.xlu1 %v3895_v48  ;;  %2242 = vset.pattern.permute.xlu0 %v3895_v48 }
 0x2b4   :  { %185 = vperm.xlu1 %2241, %v62_v37  }
 0x306   :  { %v1009_v11 = vpop.f32.mrf.mxu0  ;;  %v1029_v14 = vpop.f32.mrf.mxu1 }
 0x307   :  { %v1076_v19 = vrot.slane %v1009_v11, 2  ;;  %v1077_v20 = vrot.slane %v1029_v14, 2  ;;  %v116_v14 = vpop.permute.xlu2 %115 }
 0x309   :  { %v1084_v36 = vadd.f32 %v1076_v19, %v921_v28  ;;  %v1085_v13 = vadd.f32 %v1077_v20, %v922_v21  ;;  %v3896_v20 = vld [vmem:[#allocation21_spill] sm:$0xff] }
 0x30a   :  { %v3897_v28 = vperm.slane %v3896_v20, 0  ;;  %v3899_v37 = vperm.slane %v3896_v20, 2 }
 0x30b   :  { %v2206_v25 = vmul.f32 -1.442695, %v1084_v36  ;;  %v2207_v40 = vmul.f32 -1.442695, %v1085_v13  ;;  %v3898_v36 = vperm.slane %v3896_v20, 1 }
 0x30c   :  { %v131_v21 = vmul.f32 %v3897_v28, %v116_v14 }
 0x30d   :  { %2291 = vpow2.f32 %v2206_v25  ;;  %v1049_v44 = vpop.f32.mrf.mxu2  ;;  %v1069_v62 = vpop.f32.mrf.mxu3  ;;  %v132_v13 = vmul.f32 %v3898_v36, %v116_v14  ;;  %v133_v25 = vmul.f32 %v3899_v37, %v116_v14 }
 0x30e   :  { %2293 = vpow2.f32 %v2207_v40  ;;  %v1078_v52 = vrot.slane %v1049_v44, 2  ;;  %v1079_v63 = vrot.slane %v1069_v62, 2  ;;  %v3900_v40 = vperm.slane %v3896_v20, 3 }
 0x310   :  { %v1086_v46 = vadd.f32 %v1078_v52, %v923_v55  ;;  %v1087_v5 = vadd.f32 %v1079_v63, %v924_v31  ;;  %v134_v44 = vmul.f32 %v3900_v40, %v116_v14  ;;  %v3901_v52 = vld [vmem:[#allocation20_spill] sm:$0xff]  ;;  %v3906_v63 = vld [vmem:[#allocation22_spill] sm:$0xff] }
 0x311   :  { %v3902_v55 = vperm.slane %v3901_v52, 0  ;;  %v3908_v31 = vperm.slane %v3906_v63, 1 }
 0x312   :  { %v2208_v47 = vmul.f32 -1.442695, %v1086_v46 }
 0x313   :  { %v2292_v49 = vpop.eup %2291 }
 0x314   :  { %v2294_v56 = vpop.eup %2293  ;;  %v1097_v57 = vadd.f32 1.0, %v2292_v49  ;;  %2295 = vpow2.f32 %v2208_v47  ;;  %v3903_v47 = vperm.slane %v3901_v52, 1  ;;  %v3904_v49 = vperm.slane %v3901_v52, 2 }
 0x315   :  { %v1098_v61 = vadd.f32 1.0, %v2294_v56 }
 0x316   :  { %2297 = vrcp.f32 %v1097_v57  ;;  %v1111_v9 = vand.u32 2147483648, %v1097_v57  ;;  %v1109_v3 = vand.u32 2147483647, %v1097_v57  ;;  %vm1105_vm7 = vweird.f32 %v1097_v57 }
 0x317   :  { %2299 = vrcp.f32 %v1098_v61  ;;  %v1126_v24 = vand.u32 2147483648, %v1098_v61  ;;  %v1124_v60 = vand.u32 2147483647, %v1098_v61  ;;  %vm1120_vm8 = vweird.f32 %v1098_v61 }
 0x318   :  { %v1112_v22 = vor.u32 1.1754944e-38, %v1111_v9  ;;  %vm1110_vm11 = vcmp.eq.f32.partialorder %v1109_v3, 8.507059e+37 }
 0x319   :  { %v1127_v0 = vor.u32 1.1754944e-38, %v1126_v24  ;;  %vm1125_vm12 = vcmp.eq.f32.partialorder %v1124_v60, 8.507059e+37 }
 0x31a   :  { %v2296_v2 = vpop.eup %2295 }
 0x31b   :  { %v1099_v1 = vadd.f32 1.0, %v2296_v2  ;;  %v3907_v2 = vperm.slane %v3906_v63, 0 }
 0x31c   :  { %v2298_v33 = vpop.eup %2297 }
 0x31d   :  { %v2300_v17 = vpop.eup %2299  ;;  %v1101_v18 = vmul.f32 %v2298_v33, %v1097_v57  ;;  %2301 = vrcp.f32 %v1099_v1  ;;  %vm1106_vm5 = vweird.f32 %v2298_v33  ;;  %v1141_v29 = vand.u32 2147483648, %v1099_v1  ;;  %v72_v19 = vpop.permute.xlu1 %71 }
 0x31e   :  { %v1116_v53 = vmul.f32 %v2300_v17, %v1098_v61  ;;  %2303 = vtanh.f32 %v1087_v5  ;;  %vm1121_vm6 = vweird.f32 %v2300_v17  ;;  %vm1107_vm9 = vmor %vm1105_vm7, %vm1106_vm5  ;;  %vm1135_vm14 = vweird.f32 %v1099_v1  ;;  %v151_v62 = vpop.permute.xlu0 %150 }
 0x31f   :  { %v1102_v54 = vsub.f32 1.0, %v1101_v18  ;;  %vm1122_vm10 = vmor %vm1120_vm8, %vm1121_vm6  ;;  %v1139_v26 = vand.u32 2147483647, %v1099_v1  ;;  %v1142_v32 = vor.u32 1.1754944e-38, %v1141_v29  ;;  %v87_v46 = vmul.f32 %v3902_v55, %v72_v19 }
 0x320   :  { %v1117_v6 = vsub.f32 1.0, %v1116_v53  ;;  %v88_v48 = vmul.f32 %v3903_v47, %v72_v19  ;;  %v89_v56 = vmul.f32 %v3904_v49, %v72_v19  ;;  %v3905_v57 = vperm.slane %v3901_v52, 3 }
 0x321   :  { %v1103_v10 = vmul.f32 %v2298_v33, %v1102_v54  ;;  %vm1140_vm0 = vcmp.eq.f32.partialorder %v1139_v26, 8.507059e+37  ;;  %v3909_v5 = vperm.slane %v3906_v63, 2  ;;  %v3910_v18 = vperm.slane %v3906_v63, 3  ;;  %v3911_v54 = vld [vmem:[#allocation17_spill] sm:$0xff] }
 0x322   :  { %v1118_v4 = vmul.f32 %v2300_v17, %v1117_v6  ;;  %v90_v61 = vmul.f32 %v3905_v57, %v72_v19  ;;  %v3912_v6 = vperm.slane %v3911_v54, 0  ;;  %v3913_v24 = vperm.slane %v3911_v54, 1 }
 0x323   :  { %v2302_v15 = vpop.eup %2301  ;;  %v1104_v8 = vadd.f32 %v2298_v33, %v1103_v10  ;;  %v3914_v3 = vperm.slane %v3911_v54, 2  ;;  %v3915_v60 = vperm.slane %v3911_v54, 3 }
 0x324   :  { %v1131_v27 = vmul.f32 %v2302_v15, %v1099_v1  ;;  %v1119_v7 = vadd.f32 %v2300_v17, %v1118_v4  ;;  %v2304_v23 = vpop.eup %2303  ;;  %vm1136_vm13 = vweird.f32 %v2302_v15  ;;  %v104_v1 = vadd.f32 %v3907_v2, %v87_v46 }
 0x325   :  { %v1108_v16 = vsel %vm1107_vm9, %v2298_v33, %v1104_v8  ;;  %vm1137_vm15 = vmor %vm1135_vm14, %vm1136_vm13  ;;  %v105_v33 = vadd.f32 %v3908_v31, %v88_v48  ;;  %v107_v53 = vadd.f32 %v3910_v18, %v90_v61  ;;  %v166_v9 = vmul.f32 %v3912_v6, %v151_v62 }
 0x326   :  { %v1132_v39 = vsub.f32 1.0, %v1131_v27  ;;  %v1113_v12 = vsel %vm1110_vm11, %v1112_v22, %v1108_v16  ;;  %v1123_v51 = vsel %vm1122_vm10, %v2300_v17, %v1119_v7  ;;  %v106_v17 = vadd.f32 %v3909_v5, %v89_v56 }
 0x327   :  { %v1128_v43 = vsel %vm1125_vm12, %v1127_v0, %v1123_v51  ;;  %v1150_v45 = vmul.f32 %v2304_v23, %v1113_v12  ;;  %v167_v10 = vmul.f32 %v3913_v24, %v151_v62  ;;  %v168_v4 = vmul.f32 %v3914_v3, %v151_v62  ;;  %v3916_v12 = vld [vmem:[#allocation18_spill] sm:$0xff] }
 0x328   :  { %v1149_v50 = vmul.f32 %v1147_v41, %v1128_v43  ;;  %v1133_v58 = vmul.f32 %v2302_v15, %v1132_v39  ;;  %v139_v8 = vadd.f32 %v131_v21, %v104_v1  ;;  %v140_v27 = vadd.f32 %v132_v13, %v105_v33  ;;  %v186_v39 = vpop.permute.xlu1 %185 }
 0x329   :  { %v141_v22 = vadd.f32 %v133_v25, %v106_v17  ;;  %v142_v7 = vadd.f32 %v134_v44, %v107_v53  ;;  %v3917_v51 = vperm.slane %v3916_v12, 0  ;;  %v3920_v29 = vperm.slane %v3916_v12, 3 }
 0x32a   :  { %v3363_v42 = vadd.f32 %v1150_v45, %v1149_v50  ;;  %v1134_v59 = vadd.f32 %v2302_v15, %v1133_v58  ;;  %v174_v41 = vadd.f32 %v166_v9, %v139_v8  ;;  %v175_v0 = vadd.f32 %v167_v10, %v140_v27 }
 0x32b   :  { %v176_v16 = vadd.f32 %v168_v4, %v141_v22  ;;  %v201_v43 = vmul.f32 %v3917_v51, %v186_v39  ;;  %v3918_v45 = vperm.slane %v3916_v12, 1  ;;  %v3919_v58 = vperm.slane %v3916_v12, 2 }
 0x32c   :  { %2305 = vtanh.f32 %v3363_v42  ;;  %v1138_v30 = vsel %vm1137_vm15, %v2302_v15, %v1134_v59  ;;  %v169_v15 = vmul.f32 %v3915_v60, %v151_v62  ;;  %v204_v26 = vmul.f32 %v3920_v29, %v186_v39 }
 0x32d   :  { %v1143_v35 = vsel %vm1140_vm0, %v1142_v32, %v1138_v30  ;;  %v202_v50 = vmul.f32 %v3918_v45, %v186_v39  ;;  %v203_v59 = vmul.f32 %v3919_v58, %v186_v39  ;;  %v209_v30 = vadd.f32 %v201_v43, %v174_v41 }
 0x32e   :  { %v177_v23 = vadd.f32 %v169_v15, %v142_v7  ;;  %v1370_v15 = vrot.slane %v3363_v42, 6 }
 0x32f   :  { %v210_v32 = vadd.f32 %v202_v50, %v175_v0  ;;  %217 = vst [vmem:[#allocation2 + $0x8] sm:$0xff] %v209_v30 }
 0x331   :  { %218 = vst [vmem:[#allocation2 + $0x20] sm:$0xff] %v210_v32 }
 0x332   :  { %v2306_v34 = vpop.eup %2305 }
 0x333   :  { %v1153_v38 = vmul.f32 %v2306_v34, %v1143_v35  ;;  %v211_v34 = vadd.f32 %v203_v59, %v176_v16  ;;  %v212_v35 = vadd.f32 %v204_v26, %v177_v23  ;;  %v2096_v59 = vlaneseq }
 0x335   :  { %1155 = vst [vmem:[#allocation3] sm:$0xc0] %v1153_v38  ;;  %v1225_v11 = vrot.slane %v1153_v38, 6  ;;  %v3410_v26 = vand.u32 127, %v2096_v59  ;;  %v3547_v59 = vld [vmem:[#allocation4 + $0x80] sm:$0xff] }
 0x336   :  { %219 = vst [vmem:[#allocation2 + $0x28] sm:$0xff] %v211_v34  ;;  %v1156_v38 = vld [vmem:[#allocation2 + $0x8] sm:$0x3] }
 0x337   :  { %1243 = vmatmul.f32.vlgmr.msra.gmra.mxu0 %v1225_v11  ;;  %1263 = vmatmul.f32.vlgmr.msra.gmra.mxu1 %v1225_v11  ;;  %220 = vst [vmem:[#allocation2 + $0x38] sm:$0xff] %v212_v35  ;;  %vm2098_vm13 = vcmp.lt.s32.totalorder %v3410_v26, 64 }
 0x338   :  { %1283 = vmatmul.f32.vlgmr.msra.gmra.mxu2 %v1225_v11  ;;  %1303 = vmatmul.f32.vlgmr.msra.gmra.mxu3 %v1225_v11  ;;  %v1157_v14 = vld [vmem:[#allocation2 + $0x20] sm:$0x3]  ;;  %3921 = vst [vmem:[#allocation34_spill] sm:$0xff] %v3410_v26 }
 0x33c   :  { %v2113_v30 = vld [vmem:[#allocation3 + $0x6] sm:$0x3] }
 0x33d   :  { %v1158_v13 = vld [vmem:[#allocation2 + $0x28] sm:$0x3]  ;;  %v2119_v35 = vld [vmem:[#allocation3 + $0x6] sm:$0x3] }
 0x33e   :  { %v1159_v56 = vld [vmem:[#allocation2 + $0x38] sm:$0x3] }
 0x3b4   :  { %v1244_v11 = vpop.f32.mrf.mxu0  ;;  %v1264_v19 = vpop.f32.mrf.mxu1 }
 0x3b5   :  { %v1307_v20 = vadd.f32 %v1244_v11, %v1156_v38  ;;  %v1308_v28 = vadd.f32 %v1264_v19, %v1157_v14  ;;  %v3417_v14 = vld [vmem:[#allocation4 + $0x1e0] sm:$0xff]  ;;  %v3419_v19 = vld [vmem:[#allocation4 + $0x1e8] sm:$0xff] }
 0x3b6   :  { %1682 = vmatpush.msra.mxu0 %v3417_v14  ;;  %1702 = vmatpush.msra.mxu1 %v3419_v19 }
 0x3b7   :  { %v2209_v21 = vmul.f32 -1.442695, %v1307_v20  ;;  %v2210_v36 = vmul.f32 -1.442695, %v1308_v28  ;;  %v3421_v20 = vld [vmem:[#allocation4 + $0x1f0] sm:$0xff]  ;;  %v3425_v28 = vld [vmem:[#allocation4 + $0x1f8] sm:$0xff] }
 0x3b8   :  { %1722 = vmatpush.msra.mxu2 %v3421_v20  ;;  %1742 = vmatpush.msra.mxu3 %v3425_v28 }
 0x3b9   :  { %2307 = vpow2.f32 %v2209_v21  ;;  %v3429_v21 = vld [vmem:[#allocation4 + $0x1c0] sm:$0xff] }
 0x3ba   :  { %2309 = vpow2.f32 %v2210_v36  ;;  %v3431_v36 = vld [vmem:[#allocation4 + $0x1c8] sm:$0xff]  ;;  %1683 = vmatpush.msra.mxu0 %v3429_v21 }
 0x3bb   :  { %v1284_v37 = vpop.f32.mrf.mxu2  ;;  %v1304_v47 = vpop.f32.mrf.mxu3  ;;  %1703 = vmatpush.msra.mxu1 %v3431_v36 }
 0x3bc   :  { %v1309_v25 = vadd.f32 %v1284_v37, %v1158_v13  ;;  %v1310_v61 = vadd.f32 %v1304_v47, %v1159_v56  ;;  %v3433_v13 = vld [vmem:[#allocation4 + $0x1d0] sm:$0xff]  ;;  %v3437_v37 = vld [vmem:[#allocation4 + $0x1d8] sm:$0xff]  ;;  %v3467_v56 = vld [vmem:[#allocation4 + $0x168] sm:$0xff] }
 0x3bd   :  { %1723 = vmatpush.msra.mxu2 %v3433_v13  ;;  %1743 = vmatpush.msra.mxu3 %v3437_v37  ;;  %v3457_v47 = vld [vmem:[#allocation4 + $0x190] sm:$0xff] }
 0x3be   :  { %v2211_v40 = vmul.f32 -1.442695, %v1309_v25  ;;  %v3441_v25 = vld [vmem:[#allocation4 + $0x1a0] sm:$0xff] }
 0x3bf   :  { %v2308_v44 = vpop.eup %2307  ;;  %1684 = vmatpush.msra.mxu0 %v3441_v25 }
 0x3c0   :  { %v2310_v52 = vpop.eup %2309  ;;  %v1320_v55 = vadd.f32 1.0, %v2308_v44  ;;  %2311 = vpow2.f32 %v2211_v40  ;;  %v3443_v40 = vld [vmem:[#allocation4 + $0x1a8] sm:$0xff]  ;;  %v3445_v44 = vld [vmem:[#allocation4 + $0x1b0] sm:$0xff] }
 0x3c1   :  { %v1321_v46 = vadd.f32 1.0, %v2310_v52  ;;  %1704 = vmatpush.msra.mxu1 %v3443_v40  ;;  %v3449_v52 = vld [vmem:[#allocation4 + $0x1b8] sm:$0xff]  ;;  %1724 = vmatpush.msra.mxu2 %v3445_v44 }
 0x3c2   :  { %2313 = vrcp.f32 %v1320_v55  ;;  %v1334_v33 = vand.u32 2147483648, %v1320_v55  ;;  %v1332_v18 = vand.u32 2147483647, %v1320_v55  ;;  %vm1328_vm3 = vweird.f32 %v1320_v55  ;;  %1744 = vmatpush.msra.mxu3 %v3449_v52 }
 0x3c3   :  { %2315 = vrcp.f32 %v1321_v46  ;;  %v1349_v5 = vand.u32 2147483648, %v1321_v46  ;;  %v1347_v54 = vand.u32 2147483647, %v1321_v46  ;;  %vm1343_vm4 = vweird.f32 %v1321_v46  ;;  %1725 = vmatpush.msra.mxu2 %v3457_v47 }
 0x3c4   :  { %v1335_v10 = vor.u32 1.1754944e-38, %v1334_v33  ;;  %vm1333_vm7 = vcmp.eq.f32.partialorder %v1332_v18, 8.507059e+37  ;;  %v3491_v33 = vld [vmem:[#allocation4 + $0x128] sm:$0xff]  ;;  %v3501_v18 = vld [vmem:[#allocation4 + $0x100] sm:$0xff] }
 0x3c5   :  { %v1350_v4 = vor.u32 1.1754944e-38, %v1349_v5  ;;  %vm1348_vm8 = vcmp.eq.f32.partialorder %v1347_v54, 8.507059e+37  ;;  %v3493_v5 = vld [vmem:[#allocation4 + $0x130] sm:$0xff] }
 0x3c6   :  { %v2312_v48 = vpop.eup %2311  ;;  %v3505_v54 = vld [vmem:[#allocation4 + $0x110] sm:$0xff] }
 0x3c7   :  { %v1322_v49 = vadd.f32 1.0, %v2312_v48  ;;  %v3461_v48 = vld [vmem:[#allocation4 + $0x198] sm:$0xff] }
 0x3c8   :  { %v2314_v57 = vpop.eup %2313  ;;  %1745 = vmatpush.msra.mxu3 %v3461_v48 }
 0x3c9   :  { %v2316_v62 = vpop.eup %2315  ;;  %v1324_v63 = vmul.f32 %v2314_v57, %v1320_v55  ;;  %2317 = vrcp.f32 %v1322_v49  ;;  %vm1329_vm1 = vweird.f32 %v2314_v57  ;;  %v1364_v51 = vand.u32 2147483648, %v1322_v49  ;;  %v3453_v55 = vld [vmem:[#allocation4 + $0x180] sm:$0xff] }
 0x3ca   :  { %v1339_v2 = vmul.f32 %v2316_v62, %v1321_v46  ;;  %2319 = vtanh.f32 %v1310_v61  ;;  %vm1344_vm2 = vweird.f32 %v2316_v62  ;;  %vm1330_vm5 = vmor %vm1328_vm3, %vm1329_vm1  ;;  %vm1358_vm10 = vweird.f32 %v1322_v49  ;;  %v3455_v46 = vld [vmem:[#allocation4 + $0x188] sm:$0xff]  ;;  %1685 = vmatpush.msra.mxu0 %v3453_v55  ;;  %v3473_v61 = vld [vmem:[#allocation4 + $0x178] sm:$0xff] }
 0x3cb   :  { %v1325_v1 = vsub.f32 1.0, %v1324_v63  ;;  %vm1345_vm6 = vmor %vm1343_vm4, %vm1344_vm2  ;;  %v1362_v43 = vand.u32 2147483647, %v1322_v49  ;;  %v1365_v45 = vor.u32 1.1754944e-38, %v1364_v51  ;;  %1705 = vmatpush.msra.mxu1 %v3455_v46  ;;  %1746 = vmatpush.msra.mxu3 %v3473_v61  ;;  %v3479_v63 = vld [vmem:[#allocation4 + $0x148] sm:$0xff] }
 0x3cc   :  { %v1340_v31 = vsub.f32 1.0, %v1339_v2  ;;  %v3481_v2 = vld [vmem:[#allocation4 + $0x150] sm:$0xff] }
 0x3cd   :  { %v1326_v17 = vmul.f32 %v2314_v57, %v1325_v1  ;;  %vm1363_vm12 = vcmp.eq.f32.partialorder %v1362_v43, 8.507059e+37  ;;  %1706 = vmatpush.msra.mxu1 %v3467_v56  ;;  %v3485_v1 = vld [vmem:[#allocation4 + $0x158] sm:$0xff] }
 0x3ce   :  { %v1341_v53 = vmul.f32 %v2316_v62, %v1340_v31  ;;  %1747 = vmatpush.msra.mxu3 %v3485_v1  ;;  %v3489_v31 = vld [vmem:[#allocation4 + $0x120] sm:$0xff] }
 0x3cf   :  { %v2318_v6 = vpop.eup %2317  ;;  %v1327_v9 = vadd.f32 %v2314_v57, %v1326_v17  ;;  %1707 = vmatpush.msra.mxu1 %v3479_v63  ;;  %v3497_v17 = vld [vmem:[#allocation4 + $0x138] sm:$0xff] }
 0x3d0   :  { %v1354_v24 = vmul.f32 %v2318_v6, %v1322_v49  ;;  %v1342_v3 = vadd.f32 %v2316_v62, %v1341_v53  ;;  %v2320_v8 = vpop.eup %2319  ;;  %vm1359_vm9 = vweird.f32 %v2318_v6  ;;  %v3465_v49 = vld [vmem:[#allocation4 + $0x160] sm:$0xff]  ;;  %1748 = vmatpush.msra.mxu3 %v3497_v17  ;;  %v3503_v53 = vld [vmem:[#allocation4 + $0x108] sm:$0xff] }
 0x3d1   :  { %v1331_v60 = vsel %vm1330_vm5, %v2314_v57, %v1327_v9  ;;  %vm1360_vm11 = vmor %vm1358_vm10, %vm1359_vm9  ;;  %v3469_v57 = vld [vmem:[#allocation4 + $0x170] sm:$0xff]  ;;  %1686 = vmatpush.msra.mxu0 %v3465_v49  ;;  %1708 = vmatpush.msra.mxu1 %v3491_v33 }
 0x3d2   :  { %v1355_v27 = vsub.f32 1.0, %v1354_v24  ;;  %v1336_v22 = vsel %vm1333_vm7, %v1335_v10, %v1331_v60  ;;  %v1346_v7 = vsel %vm1345_vm6, %v2316_v62, %v1342_v3  ;;  %1726 = vmatpush.msra.mxu2 %v3469_v57  ;;  %v3477_v62 = vld [vmem:[#allocation4 + $0x140] sm:$0xff]  ;;  %v3509_v24 = vld [vmem:[#allocation4 + $0x118] sm:$0xff]  ;;  %v3515_v60 = vld [vmem:[#allocation4 + $0xe8] sm:$0xff] }
 0x3d3   :  { %v1351_v41 = vsel %vm1348_vm8, %v1350_v4, %v1346_v7  ;;  %v1373_v0 = vmul.f32 %v2320_v8, %v1336_v22  ;;  %1687 = vmatpush.msra.mxu0 %v3477_v62  ;;  %1709 = vmatpush.msra.mxu1 %v3503_v53  ;;  %v3513_v4 = vld [vmem:[#allocation4 + $0xe0] sm:$0xff]  ;;  %v1379_v8 = vld [vmem:[#allocation2 + $0x8] sm:$0xc] }
 0x3d4   :  { %v1356_v16 = vmul.f32 %v2318_v6, %v1355_v27  ;;  %v1372_v23 = vmul.f32 %v1370_v15, %v1351_v41  ;;  %1727 = vmatpush.msra.mxu2 %v3481_v2  ;;  %1749 = vmatpush.msra.mxu3 %v3509_v24  ;;  %v3517_v15 = vld [vmem:[#allocation4 + $0xf0] sm:$0xff]  ;;  %v3521_v22 = vld [vmem:[#allocation4 + $0xf8] sm:$0xff] }
 0x3d5   :  { %1688 = vmatpush.msra.mxu0 %v3489_v31  ;;  %v1380_v27 = vld [vmem:[#allocation2 + $0x20] sm:$0xc]  ;;  %1710 = vmatpush.msra.mxu1 %v3515_v60 }
 0x3d6   :  { %v3407_v39 = vadd.f32 %v1373_v0, %v1372_v23  ;;  %v1357_v12 = vadd.f32 %v2318_v6, %v1356_v16  ;;  %1728 = vmatpush.msra.mxu2 %v3493_v5  ;;  %1750 = vmatpush.msra.mxu3 %v3521_v22  ;;  %v3525_v0 = vld [vmem:[#allocation4 + $0xc0] sm:$0xff]  ;;  %v3527_v16 = vld [vmem:[#allocation4 + $0xc8] sm:$0xff]  ;;  %v3529_v23 = vld [vmem:[#allocation4 + $0xd0] sm:$0xff] }
 0x3d7   :  { %1689 = vmatpush.msra.mxu0 %v3501_v18  ;;  %1711 = vmatpush.msra.mxu1 %v3527_v16 }
 0x3d8   :  { %2321 = vtanh.f32 %v3407_v39  ;;  %v1361_v42 = vsel %vm1360_vm11, %v2318_v6, %v1357_v12  ;;  %1729 = vmatpush.msra.mxu2 %v3505_v54  ;;  %v3533_v12 = vld [vmem:[#allocation4 + $0xd8] sm:$0xff] }
 0x3d9   :  { %v1366_v58 = vsel %vm1363_vm12, %v1365_v45, %v1361_v42  ;;  %1690 = vmatpush.msra.mxu0 %v3513_v4  ;;  %1751 = vmatpush.msra.mxu3 %v3533_v12  ;;  %v3537_v42 = vld [vmem:[#allocation4 + $0xa0] sm:$0xff]  ;;  %v3539_v45 = vld [vmem:[#allocation4 + $0xa8] sm:$0xff] }
 0x3da   :  { %1730 = vmatpush.msra.mxu2 %v3517_v15  ;;  %1712 = vmatpush.msra.mxu1 %v3539_v45 }
 0x3db   :  { %1691 = vmatpush.msra.mxu0 %v3525_v0 }
 0x3dc   :  { %1731 = vmatpush.msra.mxu2 %v3529_v23 }
 0x3dd   :  { %1692 = vmatpush.msra.mxu0 %v3537_v42 }
 0x3de   :  { %v2322_v50 = vpop.eup %2321 }
 0x3df   :  { %v1376_v29 = vmul.f32 %v2322_v50, %v1366_v58  ;;  %v3543_v50 = vld [vmem:[#allocation4 + $0xb0] sm:$0xff]  ;;  %v3545_v58 = vld [vmem:[#allocation4 + $0xb8] sm:$0xff]  ;;  %1693 = vmatpush.msra.mxu0 %v3547_v59 }
 0x3e0   :  { %1732 = vmatpush.msra.mxu2 %v3543_v50  ;;  %1752 = vmatpush.msra.mxu3 %v3545_v58 }
 0x3e1   :  { %1378 = vst [vmem:[#allocation3 + $0x8] sm:$0x3] %v1376_v29  ;;  %1463 = vmatmul.f32.vlgmr.msrb.gmra.mxu0 %v1376_v29  ;;  %1483 = vmatmul.f32.vlgmr.msrb.gmra.mxu1 %v1376_v29 }
 0x3e2   :  { %1503 = vmatmul.f32.vlgmr.msrb.gmra.mxu2 %v1376_v29  ;;  %1523 = vmatmul.f32.vlgmr.msrb.gmra.mxu3 %v1376_v29  ;;  %v1381_v29 = vld [vmem:[#allocation2 + $0x28] sm:$0xc] }
 0x3e8   :  { %v2114_v32 = vld [vmem:[#allocation3 + $0x8] sm:$0x3] }
 0x3e9   :  { %v2118_v34 = vld [vmem:[#allocation3 + $0x8] sm:$0x3]  ;;  %v2115_v38 = vsel %vm2098_vm13, %v2113_v30, %v2114_v32  ;;  %v3551_v32 = vld [vmem:[#allocation4 + $0x88] sm:$0xff] }
 0x3ea   :  { %v2120_v11 = vsel %vm2098_vm13, %v2118_v34, %v2119_v35  ;;  %2117 = vst [vmem:[#allocation9 + $0x6] sm:$0x3] %v2115_v38  ;;  %v3553_v34 = vld [vmem:[#allocation4 + $0x90] sm:$0xff]  ;;  %v3555_v35 = vld [vmem:[#allocation4 + $0x98] sm:$0xff]  ;;  %1713 = vmatpush.msra.mxu1 %v3551_v32 }
 0x3eb   :  { %2122 = vst [vmem:[#allocation9 + $0x8] sm:$0x3] %v2120_v11  ;;  %v3559_v11 = vld [vmem:[#allocation4 + $0x60] sm:$0xff]  ;;  %1733 = vmatpush.msra.mxu2 %v3553_v34  ;;  %1753 = vmatpush.msra.mxu3 %v3555_v35 }
 0x3ec   :  { %3922 = vst [vmem:[#allocation35_spill] sm:$0xff] %v3559_v11  ;;  %1694 = vmatpush.msra.mxu0 %v3559_v11 }
 0x45e   :  { %v1464_v6 = vpop.f32.mrf.mxu0  ;;  %v1484_v9 = vpop.f32.mrf.mxu1 }
 0x45f   :  { %v1531_v10 = vrot.slane %v1464_v6, 6  ;;  %v1532_v3 = vrot.slane %v1484_v9, 6  ;;  %v3561_v6 = vld [vmem:[#allocation4 + $0x68] sm:$0xff]  ;;  %v3563_v9 = vld [vmem:[#allocation4 + $0x70] sm:$0xff] }
 0x460   :  { %3923 = vst [vmem:[#allocation36_spill] sm:$0xff] %v3561_v6  ;;  %1714 = vmatpush.msra.mxu1 %v3561_v6  ;;  %1734 = vmatpush.msra.mxu2 %v3563_v9 }
 0x461   :  { %v1539_v7 = vadd.f32 %v1531_v10, %v1379_v8  ;;  %v1540_v41 = vadd.f32 %v1532_v3, %v1380_v27  ;;  %3924 = vst [vmem:[#allocation37_spill] sm:$0xff] %v3563_v9  ;;  %v3567_v10 = vld [vmem:[#allocation4 + $0x78] sm:$0xff]  ;;  %v3569_v3 = vld [vmem:[#allocation4 + $0x40] sm:$0xff]  ;;  %v3571_v8 = vld [vmem:[#allocation4 + $0x48] sm:$0xff] }
 0x462   :  { %3925 = vst [vmem:[#allocation38_spill] sm:$0xff] %v3567_v10  ;;  %1754 = vmatpush.msra.mxu3 %v3567_v10  ;;  %1695 = vmatpush.msra.mxu0 %v3569_v3  ;;  %v3593_v9 = vld [vmem:[#allocation4] sm:$0xff]  ;;  %v3595_v10 = vld [vmem:[#allocation4 + $0x8] sm:$0xff] }
 0x463   :  { %v2212_v51 = vmul.f32 -1.442695, %v1539_v7  ;;  %v2213_v43 = vmul.f32 -1.442695, %v1540_v41  ;;  %3926 = vst [vmem:[#allocation39_spill] sm:$0xff] %v3569_v3  ;;  %v3575_v7 = vld [vmem:[#allocation4 + $0x50] sm:$0xff]  ;;  %1715 = vmatpush.msra.mxu1 %v3571_v8 }
 0x464   :  { %3927 = vst [vmem:[#allocation40_spill] sm:$0xff] %v3571_v8  ;;  %v3577_v41 = vld [vmem:[#allocation4 + $0x58] sm:$0xff]  ;;  %1735 = vmatpush.msra.mxu2 %v3575_v7 }
 0x465   :  { %2323 = vpow2.f32 %v2212_v51  ;;  %v1504_v30 = vpop.f32.mrf.mxu2  ;;  %3928 = vst [vmem:[#allocation41_spill] sm:$0xff] %v3575_v7  ;;  %v3581_v51 = vld [vmem:[#allocation4 + $0x20] sm:$0xff]  ;;  %1755 = vmatpush.msra.mxu3 %v3577_v41  ;;  %v3603_v8 = vld [vmem:[#allocation4 + $0x18] sm:$0xff]  ;;  %v1524_v7 = vpop.f32.mrf.mxu3 }
 0x466   :  { %2325 = vpow2.f32 %v2213_v43  ;;  %v1533_v38 = vrot.slane %v1504_v30, 6  ;;  %v3583_v43 = vld [vmem:[#allocation4 + $0x28] sm:$0xff]  ;;  %3929 = vst [vmem:[#allocation19_spill] sm:$0xff] %v3595_v10  ;;  %1696 = vmatpush.msra.mxu0 %v3581_v51 }
 0x467   :  { %1716 = vmatpush.msra.mxu1 %v3583_v43 }
 0x468   :  { %v1541_v27 = vadd.f32 %v1533_v38, %v1381_v29  ;;  %v3587_v29 = vld [vmem:[#allocation4 + $0x30] sm:$0xff]  ;;  %v3589_v38 = vld [vmem:[#allocation4 + $0x38] sm:$0xff]  ;;  %1697 = vmatpush.msra.mxu0 %v3593_v9 }
 0x469   :  { %1736 = vmatpush.msra.mxu2 %v3587_v29  ;;  %1756 = vmatpush.msra.mxu3 %v3589_v38 }
 0x46a   :  { %v2214_v30 = vmul.f32 -1.442695, %v1541_v27  ;;  %v3601_v27 = vld [vmem:[#allocation4 + $0x10] sm:$0xff]  ;;  %1717 = vmatpush.msra.mxu1 %v3595_v10  ;;  %1917 = vmatpush.msrb.mxu0 %v3417_v14  ;;  %v1382_v10 = vld [vmem:[#allocation2 + $0x38] sm:$0xc] }
 0x46b   :  { %v2324_v26 = vpop.eup %2323  ;;  %1737 = vmatpush.msra.mxu2 %v3601_v27  ;;  %1757 = vmatpush.msra.mxu3 %v3603_v8 }
 0x46c   :  { %v2326_v6 = vpop.eup %2325  ;;  %v3597_v11 = vadd.f32 1.0, %v2324_v26  ;;  %2327 = vpow2.f32 %v2214_v30  ;;  %v1534_v26 = vrot.slane %v1524_v7, 6  ;;  %1937 = vmatpush.msrb.mxu1 %v3419_v19  ;;  %1918 = vmatpush.msrb.mxu0 %v3429_v21 }
 0x46d   :  { %v3605_v3 = vadd.f32 1.0, %v2326_v6  ;;  %1957 = vmatpush.msrb.mxu2 %v3421_v20  ;;  %1977 = vmatpush.msrb.mxu3 %v3425_v28 }
 0x46e   :  { %2329 = vrcp.f32 %v3597_v11  ;;  %1938 = vmatpush.msrb.mxu1 %v3431_v36  ;;  %v1542_v14 = vadd.f32 %v1534_v26, %v1382_v10  ;;  %1919 = vmatpush.msrb.mxu0 %v3441_v25  ;;  %vm1560_vm0 = vweird.f32 %v3597_v11 }
 0x46f   :  { %2331 = vrcp.f32 %v3605_v3  ;;  %1958 = vmatpush.msrb.mxu2 %v3433_v13  ;;  %1978 = vmatpush.msrb.mxu3 %v3437_v37  ;;  %v1566_v13 = vand.u32 2147483648, %v3597_v11  ;;  %v1581_v37 = vand.u32 2147483648, %v3605_v3  ;;  %vm1575_vm1 = vweird.f32 %v3605_v3 }
 0x470   :  { %1939 = vmatpush.msrb.mxu1 %v3443_v40  ;;  %1920 = vmatpush.msrb.mxu0 %v3453_v55  ;;  %v1564_v40 = vand.u32 2147483647, %v3597_v11 }
 0x471   :  { %1959 = vmatpush.msrb.mxu2 %v3445_v44  ;;  %1979 = vmatpush.msrb.mxu3 %v3449_v52  ;;  %v1579_v52 = vand.u32 2147483647, %v3605_v3 }
 0x472   :  { %v2328_v6 = vpop.eup %2327  ;;  %1940 = vmatpush.msrb.mxu1 %v3455_v46  ;;  %1921 = vmatpush.msrb.mxu0 %v3465_v49  ;;  %vm1565_vm4 = vcmp.eq.f32.partialorder %v1564_v40, 8.507059e+37 }
 0x473   :  { %v3621_v30 = vadd.f32 1.0, %v2328_v6  ;;  %1960 = vmatpush.msrb.mxu2 %v3457_v47  ;;  %1980 = vmatpush.msrb.mxu3 %v3461_v48  ;;  %v1567_v48 = vor.u32 1.1754944e-38, %v1566_v13  ;;  %vm1580_vm5 = vcmp.eq.f32.partialorder %v1579_v52, 8.507059e+37 }
 0x474   :  { %v2330_v7 = vpop.eup %2329  ;;  %1941 = vmatpush.msrb.mxu1 %v3467_v56  ;;  %1922 = vmatpush.msrb.mxu0 %v3477_v62  ;;  %v1602_v56 = vrot.slane %v3407_v39, 6 }
 0x475   :  { %v2332_v19 = vpop.eup %2331  ;;  %v1556_v20 = vmul.f32 %v2330_v7, %v3597_v11  ;;  %2333 = vrcp.f32 %v3621_v30  ;;  %vm1561_vm14 = vweird.f32 %v2330_v7  ;;  %1961 = vmatpush.msrb.mxu2 %v3469_v57  ;;  %1981 = vmatpush.msrb.mxu3 %v3473_v61  ;;  %v1582_v57 = vor.u32 1.1754944e-38, %v1581_v37  ;;  %v2124_v11 = vld [vmem:[#allocation3 + $0x4] sm:$0x3] }
 0x476   :  { %v1571_v28 = vmul.f32 %v2332_v19, %v3605_v3  ;;  %2335 = vtanh.f32 %v1542_v14  ;;  %vm1576_vm15 = vweird.f32 %v2332_v19  ;;  %1942 = vmatpush.msrb.mxu1 %v3479_v63  ;;  %vm1562_vm2 = vmor %vm1560_vm0, %vm1561_vm14  ;;  %1923 = vmatpush.msrb.mxu0 %v3489_v31  ;;  %vm1590_vm7 = vweird.f32 %v3621_v30 }
 0x477   :  { %v1557_v21 = vsub.f32 1.0, %v1556_v20  ;;  %1962 = vmatpush.msrb.mxu2 %v3481_v2  ;;  %1982 = vmatpush.msrb.mxu3 %v3485_v1  ;;  %vm1577_vm3 = vmor %vm1575_vm1, %vm1576_vm15 }
 0x478   :  { %v1572_v36 = vsub.f32 1.0, %v1571_v28  ;;  %1943 = vmatpush.msrb.mxu1 %v3491_v33  ;;  %1924 = vmatpush.msrb.mxu0 %v3501_v18 }
 0x479   :  { %v1558_v25 = vmul.f32 %v2330_v7, %v1557_v21  ;;  %1963 = vmatpush.msrb.mxu2 %v3493_v5  ;;  %1983 = vmatpush.msrb.mxu3 %v3497_v17 }
 0x47a   :  { %v1573_v44 = vmul.f32 %v2332_v19, %v1572_v36  ;;  %1944 = vmatpush.msrb.mxu1 %v3503_v53  ;;  %1925 = vmatpush.msrb.mxu0 %v3513_v4  ;;  %v1596_v53 = vand.u32 2147483648, %v3621_v30 }
 0x47b   :  { %v3646_v55 = vpop.eup %2333  ;;  %v1559_v46 = vadd.f32 %v2330_v7, %v1558_v25  ;;  %1964 = vmatpush.msrb.mxu2 %v3505_v54  ;;  %1984 = vmatpush.msrb.mxu3 %v3509_v24  ;;  %v1594_v54 = vand.u32 2147483647, %v3621_v30 }
 0x47c   :  { %v1586_v47 = vmul.f32 %v3646_v55, %v3621_v30  ;;  %v1574_v49 = vadd.f32 %v2332_v19, %v1573_v44  ;;  %v2336_v62 = vpop.eup %2335  ;;  %1945 = vmatpush.msrb.mxu1 %v3515_v60  ;;  %1926 = vmatpush.msrb.mxu0 %v3525_v0  ;;  %vm1591_vm6 = vweird.f32 %v3646_v55  ;;  %v1597_v4 = vor.u32 1.1754944e-38, %v1596_v53  ;;  %v3930_v60 = vld [vmem:[#allocation35_spill] sm:$0xff]  ;;  %v3933_v0 = vld [vmem:[#allocation38_spill] sm:$0xff] }
 0x47d   :  { %v1563_v61 = vsel %vm1562_vm2, %v2330_v7, %v1559_v46  ;;  %1965 = vmatpush.msrb.mxu2 %v3517_v15  ;;  %1985 = vmatpush.msrb.mxu3 %v3521_v22  ;;  %vm1592_vm8 = vmor %vm1590_vm7, %vm1591_vm6  ;;  %v3931_v15 = vld [vmem:[#allocation36_spill] sm:$0xff]  ;;  %vm1595_vm9 = vcmp.eq.f32.partialorder %v1594_v54, 8.507059e+37  ;;  %v3932_v22 = vld [vmem:[#allocation37_spill] sm:$0xff] }
 0x47e   :  { %v1587_v63 = vsub.f32 1.0, %v1586_v47  ;;  %v1568_v2 = vsel %vm1565_vm4, %v1567_v48, %v1563_v61  ;;  %v1578_v1 = vsel %vm1577_vm3, %v2332_v19, %v1574_v49  ;;  %1946 = vmatpush.msrb.mxu1 %v3527_v16  ;;  %1927 = vmatpush.msrb.mxu0 %v3537_v42  ;;  %v3935_v42 = vld [vmem:[#allocation40_spill] sm:$0xff]  ;;  %v1613_v19 = vld [vmem:[#allocation2 + $0x28] sm:$0x30] }
 0x47f   :  { %v1583_v31 = vsel %vm1580_vm5, %v1582_v57, %v1578_v1  ;;  %v1605_v39 = vmul.f32 %v2336_v62, %v1568_v2  ;;  %1966 = vmatpush.msrb.mxu2 %v3529_v23  ;;  %1986 = vmatpush.msrb.mxu3 %v3533_v12  ;;  %v3934_v12 = vld [vmem:[#allocation39_spill] sm:$0xff] }
 0x480   :  { %v1604_v33 = vmul.f32 %v1602_v56, %v1583_v31  ;;  %v1588_v5 = vmul.f32 %v3646_v55, %v1587_v63  ;;  %1947 = vmatpush.msrb.mxu1 %v3539_v45  ;;  %1928 = vmatpush.msrb.mxu0 %v3547_v59  ;;  %v3937_v59 = vld [vmem:[#allocation19_spill] sm:$0xff] }
 0x481   :  { %1967 = vmatpush.msrb.mxu2 %v3543_v50  ;;  %1987 = vmatpush.msrb.mxu3 %v3545_v58  ;;  %v3936_v50 = vld [vmem:[#allocation41_spill] sm:$0xff] }
 0x482   :  { %v3670_v17 = vadd.f32 %v1605_v39, %v1604_v33  ;;  %v1589_v18 = vadd.f32 %v3646_v55, %v1588_v5  ;;  %1948 = vmatpush.msrb.mxu1 %v3551_v32  ;;  %1929 = vmatpush.msrb.mxu0 %v3930_v60  ;;  %v2108_v32 = vld [vmem:[#allocation3 + $0x4] sm:$0x3] }
 0x483   :  { %1968 = vmatpush.msrb.mxu2 %v3553_v34  ;;  %1988 = vmatpush.msrb.mxu3 %v3555_v35 }
 0x484   :  { %2337 = vtanh.f32 %v3670_v17  ;;  %v1593_v24 = vsel %vm1592_vm8, %v3646_v55, %v1589_v18  ;;  %1949 = vmatpush.msrb.mxu1 %v3931_v15  ;;  %1930 = vmatpush.msrb.mxu0 %v3934_v12  ;;  %v1614_v55 = vld [vmem:[#allocation2 + $0x38] sm:$0x30] }
 0x485   :  { %1969 = vmatpush.msrb.mxu2 %v3932_v22  ;;  %1989 = vmatpush.msrb.mxu3 %v3933_v0  ;;  %v1598_v23 = vsel %vm1595_vm9, %v1597_v4, %v1593_v24  ;;  %v1837_v24 = vrot.slane %v3670_v17, 6 }
 0x486   :  { %1950 = vmatpush.msrb.mxu1 %v3935_v42  ;;  %1931 = vmatpush.msrb.mxu0 %v3581_v51 }
 0x487   :  { %1970 = vmatpush.msrb.mxu2 %v3936_v50  ;;  %1990 = vmatpush.msrb.mxu3 %v3577_v41 }
 0x488   :  { %1951 = vmatpush.msrb.mxu1 %v3583_v43  ;;  %1932 = vmatpush.msrb.mxu0 %v3593_v9 }
 0x489   :  { %1971 = vmatpush.msrb.mxu2 %v3587_v29  ;;  %1991 = vmatpush.msrb.mxu3 %v3589_v38  ;;  %v1611_v38 = vld [vmem:[#allocation2 + $0x8] sm:$0x30] }
 0x48a   :  { %v2338_v16 = vpop.eup %2337  ;;  %1952 = vmatpush.msrb.mxu1 %v3937_v59 }
 0x48b   :  { %v1608_v45 = vmul.f32 %v2338_v16, %v1598_v23  ;;  %1972 = vmatpush.msrb.mxu2 %v3601_v27  ;;  %1992 = vmatpush.msrb.mxu3 %v3603_v8  ;;  %v1612_v27 = vld [vmem:[#allocation2 + $0x20] sm:$0x30] }
 0x48d   :  { %1610 = vst [vmem:[#allocation3 + $0x8] sm:$0xc] %v1608_v45  ;;  %v1680_v58 = vrot.slane %v1608_v45, 2 }
 0x48f   :  { %1698 = vmatmul.f32.vlgmr.msra.gmra.mxu0 %v1680_v58  ;;  %1718 = vmatmul.f32.vlgmr.msra.gmra.mxu1 %v1680_v58 }
 0x490   :  { %1738 = vmatmul.f32.vlgmr.msra.gmra.mxu2 %v1680_v58  ;;  %1758 = vmatmul.f32.vlgmr.msra.gmra.mxu3 %v1680_v58 }
 0x494   :  { %v2109_v34 = vld [vmem:[#allocation3 + $0xa] sm:$0x3] }
 0x495   :  { %v2123_v35 = vld [vmem:[#allocation3 + $0xa] sm:$0x3]  ;;  %v2110_v3 = vsel %vm2098_vm13, %v2108_v32, %v2109_v34 }
 0x496   :  { %v2125_v9 = vsel %vm2098_vm13, %v2123_v35, %v2124_v11  ;;  %2112 = vst [vmem:[#allocation9 + $0x4] sm:$0x3] %v2110_v3 }
 0x497   :  { %2127 = vst [vmem:[#allocation9 + $0xa] sm:$0x3] %v2125_v9 }
 0x50c   :  { %v1699_v41 = vpop.f32.mrf.mxu0  ;;  %v1719_v51 = vpop.f32.mrf.mxu1 }
 0x50d   :  { %v1766_v43 = vrot.slane %v1699_v41, 4  ;;  %v1767_v29 = vrot.slane %v1719_v51, 4  ;;  %v2103_v41 = vld [vmem:[#allocation3 + $0x2] sm:$0x3] }
 0x50f   :  { %v1774_v26 = vadd.f32 %v1766_v43, %v1611_v38  ;;  %v1775_v8 = vadd.f32 %v1767_v29, %v1612_v27  ;;  %v2129_v29 = vld [vmem:[#allocation3 + $0x2] sm:$0x3] }
 0x511   :  { %v2215_v6 = vmul.f32 -1.442695, %v1774_v26  ;;  %v2216_v30 = vmul.f32 -1.442695, %v1775_v8 }
 0x513   :  { %2339 = vpow2.f32 %v2215_v6  ;;  %v1739_v7 = vpop.f32.mrf.mxu2  ;;  %v1759_v25 = vpop.f32.mrf.mxu3 }
 0x514   :  { %2341 = vpow2.f32 %v2216_v30  ;;  %v1768_v14 = vrot.slane %v1739_v7, 4  ;;  %v1769_v40 = vrot.slane %v1759_v25, 4  ;;  %v1846_v7 = vld [vmem:[#allocation2 + $0x8] sm:$0xc0] }
 0x516   :  { %v1776_v20 = vadd.f32 %v1768_v14, %v1613_v19  ;;  %v1777_v47 = vadd.f32 %v1769_v40, %v1614_v55  ;;  %v1847_v14 = vld [vmem:[#allocation2 + $0x20] sm:$0xc0] }
 0x518   :  { %v2217_v28 = vmul.f32 -1.442695, %v1776_v20 }
 0x519   :  { %v2340_v21 = vpop.eup %2339 }
 0x51a   :  { %v2342_v36 = vpop.eup %2341  ;;  %v1787_v13 = vadd.f32 1.0, %v2340_v21  ;;  %2343 = vpow2.f32 %v2217_v28 }
 0x51b   :  { %v1788_v37 = vadd.f32 1.0, %v2342_v36 }
 0x51c   :  { %2345 = vrcp.f32 %v1787_v13  ;;  %v1801_v62 = vand.u32 2147483648, %v1787_v13  ;;  %v1799_v1 = vand.u32 2147483647, %v1787_v13  ;;  %vm1795_vm12 = vweird.f32 %v1787_v13 }
 0x51d   :  { %2347 = vrcp.f32 %v1788_v37  ;;  %v1816_v63 = vand.u32 2147483648, %v1788_v37  ;;  %v1814_v39 = vand.u32 2147483647, %v1788_v37  ;;  %vm1810_vm14 = vweird.f32 %v1788_v37 }
 0x51e   :  { %v1802_v53 = vor.u32 1.1754944e-38, %v1801_v62  ;;  %vm1800_vm1 = vcmp.eq.f32.partialorder %v1799_v1, 8.507059e+37 }
 0x51f   :  { %v1817_v4 = vor.u32 1.1754944e-38, %v1816_v63  ;;  %vm1815_vm2 = vcmp.eq.f32.partialorder %v1814_v39, 8.507059e+37 }
 0x520   :  { %v2344_v44 = vpop.eup %2343 }
 0x521   :  { %v1789_v52 = vadd.f32 1.0, %v2344_v44 }
 0x522   :  { %v2346_v46 = vpop.eup %2345 }
 0x523   :  { %v2348_v48 = vpop.eup %2347  ;;  %v1791_v49 = vmul.f32 %v2346_v46, %v1787_v13  ;;  %2349 = vrcp.f32 %v1789_v52  ;;  %vm1796_vm10 = vweird.f32 %v2346_v46  ;;  %v1831_v17 = vand.u32 2147483648, %v1789_v52 }
 0x524   :  { %v1806_v56 = vmul.f32 %v2348_v48, %v1788_v37  ;;  %2351 = vtanh.f32 %v1777_v47  ;;  %vm1811_vm11 = vweird.f32 %v2348_v48  ;;  %vm1797_vm15 = vmor %vm1795_vm12, %vm1796_vm10  ;;  %vm1825_vm4 = vweird.f32 %v1789_v52  ;;  %v1848_v37 = vld [vmem:[#allocation2 + $0x28] sm:$0xc0] }
 0x525   :  { %v1792_v57 = vsub.f32 1.0, %v1791_v49  ;;  %vm1812_vm0 = vmor %vm1810_vm14, %vm1811_vm11  ;;  %v1829_v59 = vand.u32 2147483647, %v1789_v52  ;;  %v1832_v34 = vor.u32 1.1754944e-38, %v1831_v17 }
 0x526   :  { %v1807_v61 = vsub.f32 1.0, %v1806_v56 }
 0x527   :  { %v1793_v2 = vmul.f32 %v2346_v46, %v1792_v57  ;;  %vm1830_vm6 = vcmp.eq.f32.partialorder %v1829_v59, 8.507059e+37  ;;  %v1849_v57 = vld [vmem:[#allocation2 + $0x38] sm:$0xc0] }
 0x528   :  { %v1808_v31 = vmul.f32 %v2348_v48, %v1807_v61 }
 0x529   :  { %v2350_v33 = vpop.eup %2349  ;;  %v1794_v5 = vadd.f32 %v2346_v46, %v1793_v2 }
 0x52a   :  { %v1821_v18 = vmul.f32 %v2350_v33, %v1789_v52  ;;  %v1809_v54 = vadd.f32 %v2348_v48, %v1808_v31  ;;  %v2352_v15 = vpop.eup %2351  ;;  %vm1826_vm3 = vweird.f32 %v2350_v33 }
 0x52b   :  { %v1798_v60 = vsel %vm1797_vm15, %v2346_v46, %v1794_v5  ;;  %vm1827_vm5 = vmor %vm1825_vm4, %vm1826_vm3 }
 0x52c   :  { %v1822_v22 = vsub.f32 1.0, %v1821_v18  ;;  %v1803_v0 = vsel %vm1800_vm1, %v1802_v53, %v1798_v60  ;;  %v1813_v16 = vsel %vm1812_vm0, %v2348_v48, %v1809_v54  ;;  %vm2081_vm0 = vcmask 523270  }
 0x52d   :  { %v1818_v23 = vsel %vm1815_vm2, %v1817_v4, %v1813_v16  ;;  %v1840_v12 = vmul.f32 %v2352_v15, %v1803_v0 }
 0x52e   :  { %v1839_v42 = vmul.f32 %v1837_v24, %v1818_v23  ;;  %v1823_v45 = vmul.f32 %v2350_v33, %v1822_v22 }
 0x530   :  { %v3712_v50 = vadd.f32 %v1840_v12, %v1839_v42  ;;  %v1824_v58 = vadd.f32 %v2350_v33, %v1823_v45 }
 0x532   :  { %2353 = vtanh.f32 %v3712_v50  ;;  %v1828_v32 = vsel %vm1827_vm5, %v2350_v33, %v1824_v58  ;;  %v2072_v12 = vrot.slane %v3712_v50, 6 }
 0x533   :  { %v1833_v11 = vsel %vm1830_vm6, %v1832_v34, %v1828_v32 }
 0x538   :  { %v2354_v35 = vpop.eup %2353 }
 0x539   :  { %v1843_v3 = vmul.f32 %v2354_v35, %v1833_v11 }
 0x53b   :  { %1845 = vst [vmem:[#allocation3 + $0x8] sm:$0x30] %v1843_v3  ;;  %v1915_v9 = vrot.slane %v1843_v3, 4 }
 0x53d   :  { %1933 = vmatmul.f32.vlgmr.msrb.gmra.mxu0 %v1915_v9  ;;  %1953 = vmatmul.f32.vlgmr.msrb.gmra.mxu1 %v1915_v9 }
 0x53e   :  { %1973 = vmatmul.f32.vlgmr.msrb.gmra.mxu2 %v1915_v9  ;;  %1993 = vmatmul.f32.vlgmr.msrb.gmra.mxu3 %v1915_v9 }
 0x542   :  { %v2104_v51 = vld [vmem:[#allocation3 + $0xc] sm:$0x3] }
 0x543   :  { %v2128_v43 = vld [vmem:[#allocation3 + $0xc] sm:$0x3]  ;;  %v2105_v38 = vsel %vm2098_vm13, %v2103_v41, %v2104_v51 }
 0x544   :  { %v2130_v27 = vsel %vm2098_vm13, %v2128_v43, %v2129_v29  ;;  %2107 = vst [vmem:[#allocation9 + $0x2] sm:$0x3] %v2105_v38 }
 0x545   :  { %2132 = vst [vmem:[#allocation9 + $0xc] sm:$0x3] %v2130_v27  ;;  %v2099_v27 = vld [vmem:[#allocation3] sm:$0x3] }
 0x5ba   :  { %v1934_v26 = vpop.f32.mrf.mxu0  ;;  %v1954_v8 = vpop.f32.mrf.mxu1 }
 0x5bb   :  { %v2001_v6 = vrot.slane %v1934_v26, 2  ;;  %v2002_v30 = vrot.slane %v1954_v8, 2 }
 0x5bd   :  { %v2009_v19 = vadd.f32 %v2001_v6, %v1846_v7  ;;  %v2010_v20 = vadd.f32 %v2002_v30, %v1847_v14  ;;  %v2134_v6 = vld [vmem:[#allocation3] sm:$0x3] }
 0x5bf   :  { %v2218_v28 = vmul.f32 -1.442695, %v2009_v19  ;;  %v2219_v21 = vmul.f32 -1.442695, %v2010_v20 }
 0x5c1   :  { %2355 = vpow2.f32 %v2218_v28  ;;  %v1974_v36 = vpop.f32.mrf.mxu2  ;;  %v1994_v47 = vpop.f32.mrf.mxu3 }
 0x5c2   :  { %2357 = vpow2.f32 %v2219_v21  ;;  %v2003_v13 = vrot.slane %v1974_v36, 2  ;;  %v2004_v48 = vrot.slane %v1994_v47, 2 }
 0x5c4   :  { %v2011_v25 = vadd.f32 %v2003_v13, %v1848_v37  ;;  %v2012_v62 = vadd.f32 %v2004_v48, %v1849_v57 }
 0x5c6   :  { %v2220_v40 = vmul.f32 -1.442695, %v2011_v25 }
 0x5c7   :  { %v2356_v44 = vpop.eup %2355 }
 0x5c8   :  { %v2358_v52 = vpop.eup %2357  ;;  %v2022_v55 = vadd.f32 1.0, %v2356_v44  ;;  %2359 = vpow2.f32 %v2220_v40 }
 0x5c9   :  { %v2023_v46 = vadd.f32 1.0, %v2358_v52 }
 0x5ca   :  { %2361 = vrcp.f32 %v2022_v55  ;;  %v2036_v33 = vand.u32 2147483648, %v2022_v55  ;;  %v2034_v18 = vand.u32 2147483647, %v2022_v55  ;;  %vm2030_vm9 = vweird.f32 %v2022_v55 }
 0x5cb   :  { %2363 = vrcp.f32 %v2023_v46  ;;  %v2051_v53 = vand.u32 2147483648, %v2023_v46  ;;  %v2049_v24 = vand.u32 2147483647, %v2023_v46  ;;  %vm2045_vm11 = vweird.f32 %v2023_v46 }
 0x5cc   :  { %v2037_v15 = vor.u32 1.1754944e-38, %v2036_v33  ;;  %vm2035_vm12 = vcmp.eq.f32.partialorder %v2034_v18, 8.507059e+37 }
 0x5cd   :  { %v2052_v23 = vor.u32 1.1754944e-38, %v2051_v53  ;;  %vm2050_vm15 = vcmp.eq.f32.partialorder %v2049_v24, 8.507059e+37 }
 0x5ce   :  { %v2360_v49 = vpop.eup %2359 }
 0x5cf   :  { %v2024_v56 = vadd.f32 1.0, %v2360_v49 }
 0x5d0   :  { %v2362_v61 = vpop.eup %2361 }
 0x5d1   :  { %v2364_v63 = vpop.eup %2363  ;;  %v2026_v2 = vmul.f32 %v2362_v61, %v2022_v55  ;;  %2365 = vrcp.f32 %v2024_v56  ;;  %vm2031_vm7 = vweird.f32 %v2362_v61  ;;  %v2066_v9 = vand.u32 2147483648, %v2024_v56 }
 0x5d2   :  { %v2041_v1 = vmul.f32 %v2364_v63, %v2023_v46  ;;  %2367 = vtanh.f32 %v2012_v62  ;;  %vm2046_vm8 = vweird.f32 %v2364_v63  ;;  %vm2032_vm10 = vmor %vm2030_vm9, %vm2031_vm7  ;;  %vm2060_vm2 = vweird.f32 %v2024_v56 }
 0x5d3   :  { %v2027_v31 = vsub.f32 1.0, %v2026_v2  ;;  %vm2047_vm14 = vmor %vm2045_vm11, %vm2046_vm8  ;;  %v2064_v50 = vand.u32 2147483647, %v2024_v56  ;;  %v2067_v51 = vor.u32 1.1754944e-38, %v2066_v9 }
 0x5d4   :  { %v2042_v39 = vsub.f32 1.0, %v2041_v1 }
 0x5d5   :  { %v2028_v5 = vmul.f32 %v2362_v61, %v2027_v31  ;;  %vm2065_vm4 = vcmp.eq.f32.partialorder %v2064_v50, 8.507059e+37 }
 0x5d6   :  { %v2043_v54 = vmul.f32 %v2364_v63, %v2042_v39 }
 0x5d7   :  { %v2366_v4 = vpop.eup %2365  ;;  %v2029_v60 = vadd.f32 %v2362_v61, %v2028_v5 }
 0x5d8   :  { %v2044_v22 = vadd.f32 %v2364_v63, %v2043_v54  ;;  %v2056_v0 = vmul.f32 %v2366_v4, %v2024_v56  ;;  %v2368_v42 = vpop.eup %2367  ;;  %vm2061_vm1 = vweird.f32 %v2366_v4 }
 0x5d9   :  { %v2033_v16 = vsel %vm2032_vm10, %v2362_v61, %v2029_v60  ;;  %vm2062_vm3 = vmor %vm2060_vm2, %vm2061_vm1 }
 0x5da   :  { %v2038_v45 = vsel %vm2035_vm12, %v2037_v15, %v2033_v16  ;;  %v2048_v58 = vsel %vm2047_vm14, %v2364_v63, %v2044_v22  ;;  %v2057_v17 = vsub.f32 1.0, %v2056_v0 }
 0x5db   :  { %v2053_v59 = vsel %vm2050_vm15, %v2052_v23, %v2048_v58  ;;  %v2075_v32 = vmul.f32 %v2368_v42, %v2038_v45 }
 0x5dc   :  { %v2074_v34 = vmul.f32 %v2072_v12, %v2053_v59  ;;  %v2058_v35 = vmul.f32 %v2366_v4, %v2057_v17 }
 0x5de   :  { %v2076_v11 = vadd.f32 %v2075_v32, %v2074_v34  ;;  %v2059_v3 = vadd.f32 %v2366_v4, %v2058_v35 }
 0x5e0   :  { %2091 = vrot.lane.b32.xlu1 %v2076_v11, %s2506_s2  ;;  %2369 = vtanh.f32 %v2076_v11  ;;  %2089 = vst.msk [vmem:[#allocation12 - $0x6] sm:$0xc0] %vm2081_vm0, %v2076_v11  ;;  %v2063_v41 = vsel %vm2062_vm3, %v2366_v4, %v2059_v3 }
 0x5e1   :  { %v2068_v29 = vsel %vm2065_vm4, %v2067_v51, %v2063_v41 }
 0x5e6   :  { %v2370_v43 = vpop.eup %2369 }
 0x5e7   :  { %v2078_v38 = vmul.f32 %v2370_v43, %v2068_v29 }
 0x5e9   :  { %2084 = vrot.lane.b32.xlu2 %v2078_v38, %s2506_s2  ;;  %2080 = vst [vmem:[#allocation3 + $0x8] sm:$0xc0] %v2078_v38 }
 0x5ea   :  { %2082 = vst.msk [vmem:[#allocation10 - $0x6] sm:$0xc0] %vm2081_vm0, %v2078_v38 }
 0x5f0   :  { %v2100_v26 = vld [vmem:[#allocation3 + $0xe] sm:$0x3] }
 0x5f1   :  { %v2133_v8 = vld [vmem:[#allocation3 + $0xe] sm:$0x3]  ;;  %v2101_v30 = vsel %vm2098_vm13, %v2099_v27, %v2100_v26 }
 0x5f2   :  { %v2135_v7 = vsel %vm2098_vm13, %v2133_v8, %v2134_v6  ;;  %2102 = vst [vmem:[#allocation9] sm:$0x3] %v2101_v30 }
 0x5f3   :  { %2137 = vst [vmem:[#allocation9 + $0xe] sm:$0x3] %v2135_v7 }
 0x5f4   :  { %2150 = dma.vmem_to_hbm [thread:$0]  %s2143_s10, 256, %s2145_s13, [#allocation6], %s2501_s14, %s2501_s14, %s2503_s17  }
 0x643   :  { %v2085_v14 = vpop.permute.xlu2 %2084 }
 0x644   :  { %2088 = vst.msk [vmem:[#allocation10 - $0x4] sm:$0xc0] %vm2081_vm0, %v2085_v14 }
 0x645   :  { %2163 = dma.vmem_to_hbm [thread:$0]  %s2156_s6, 64, %s2158_s4, [#allocation11], %s2501_s14, %s2501_s14, %s2503_s17  }
 0x652   :  { %v2092_v10 = vpop.permute.xlu1 %2091 }
 0x653   :  { %2095 = vst.msk [vmem:[#allocation12 - $0x4] sm:$0xc0] %vm2081_vm0, %v2092_v10 }
 0x654   :  { %2176 = dma.vmem_to_hbm [thread:$0]  %s2169_s19, 64, %s2171_s22, [#allocation11], %s2501_s14, %s2501_s14, %s2503_s17  }
 0x655   :  { %2495 = dma.done.wait [#allocation6], 256  }
 0x656   :  { %2496 = vsyncadd [#allocation6], 4294967040 }
 0x657   :  { %2497 = dma.done.wait [#allocation11], 128  }
 0x658   :  { %2498 = vsyncadd [#allocation11], 4294967168 }
 0x659   :  { %2189 = vsyncpa [#allocation5], 1 }
 0x65a   :  { %2190 = vsyncpa [#allocation8], 1 }
 0x65b   :  { %2191 = vsyncpa [#allocation6], 1 }
 0x65c   :  { %2192 = vsyncpa [#allocation11], 1 }

</bundles_post_ra>
